<compile_context>
chip_gen: v7x
topology: tpu7x:2x2x1
jax: 0.10.0
libtpu: 0.0.40
codegen_flags: <defaults>
</compile_context>

<pallas_src>
import functools

import jax
import jax.numpy as jnp
from jax.experimental import pallas as pl
from jax.experimental.pallas import tpu as pltpu


LANES = 128          # TPU lane width
CPAD = LANES         # padded input-channel count fed to every block
NPAD = LANES         # padded per-branch output-channel count (>= planes*num_classes)


def _samples_per_step(nb):
    """Samples per grid step.  Keep >= 2 grid steps (v7x has 2 TensorCores and
    the grid axis is marked "parallel") while batching samples per step to
    amortize the ~0.35us fixed per-step overhead at larger batches."""
    for steps in (8, 4, 2):
        if nb % steps == 0:
            return nb // steps
    return 1


# ---------------------------------------------------------------------------
# Fused per-block Pallas kernels
# ---------------------------------------------------------------------------

def _im2col(x_ref, *, H, W, kk):
    """(TB, Hp, Wp, CPAD) padded block -> (TB*H*W, kk*kk*CPAD) bf16 slab.

    Each shifted window is a full 128-lane chunk (CPAD == 128), so the channel
    concatenate is a clean vreg-group concat with no lane-level repacking."""
    TB = x_ref.shape[0]
    C = x_ref.shape[-1]
    cols = []
    for dy in range(kk):                       # static, kk*kk window reads
        for dx in range(kk):
            cols.append(
                x_ref[:, dy:dy + H, dx:dx + W, :].reshape(TB * H * W, C))
    return jnp.concatenate(cols, axis=-1)


def _gated_core(x_ref, w_ref, b_ref, *, H, W, kk):
    """Gated convex features (TB*H*W, NPAD) in f32 for one grid step.

    One MXU dot against the concatenated [wu | wv] weight; bf16 operands,
    f32 accumulation / bias / gate (v5e-friendly: no bf16 VPU work)."""
    patches = _im2col(x_ref, H=H, W=W, kk=kk)                     # bf16 (M, K)
    y = jnp.dot(patches, w_ref[...],
                preferred_element_type=jnp.float32) + b_ref[...]  # f32 (M, 2*NPAD)
    s = y[:, :NPAD]            # sign-pattern pre-activations (128-aligned slice)
    z = y[:, NPAD:]            # gated-conv pre-activations   (128-aligned slice)
    return z * (s >= 0.0).astype(jnp.float32)


def _next_stage_kernel(x_ref, w_ref, b_ref, o_ref, *, H, W, kk, pad):
    TB = x_ref.shape[0]
    gated = _gated_core(x_ref, w_ref, b_ref, H=H, W=W, kk=kk)
    # Producer writes the next block's input PRE-PADDED (halo zeros) so no
    # jnp.pad pass exists between blocks; all 128 channels are stored (the
    # padded channels are exactly zero), keeping the store lane-dense.
    o_ref[...] = jnp.zeros(o_ref.shape, o_ref.dtype)
    o_ref[:, pad:pad + H, pad:pad + W, :] = (
        gated.reshape(TB, H, W, NPAD).astype(o_ref.dtype))


def _head_kernel(x_ref, w_ref, b_ref, sel_ref, hb_ref, o_ref, *, H, W, kk):
    TB = x_ref.shape[0]
    HW = H * W
    gated = _gated_core(x_ref, w_ref, b_ref, H=H, W=W, kk=kk)    # (TB*HW, NPAD)
    # avg_pool(avg)^2 then per-class sum == scaled global spatial sum followed
    # by a class selector (scale folded into sel at init).  The spatial
    # reduction runs on the MXU via a per-sample pooling matrix.
    out_s = jax.lax.broadcasted_iota(jnp.int32, (TB, TB * HW), 0)
    row_s = jax.lax.broadcasted_iota(jnp.int32, (TB, TB * HW), 1) // HW
    pool = (out_s == row_s).astype(jnp.float32)                  # (TB, TB*HW)
    colsum = jnp.dot(pool, gated, preferred_element_type=jnp.float32)
    o_ref[...] = (jnp.dot(colsum, sel_ref[...],
                          preferred_element_type=jnp.float32)
                  + hb_ref[...])[:, None, :]


def fused_next_stage(x_pad, w_cat, b_cat, *, H, W, kk, pad, tb):
    Nb, Hp, Wp, C = x_pad.shape
    steps = Nb // tb
    kern = functools.partial(_next_stage_kernel, H=H, W=W, kk=kk, pad=pad)
    return pl.pallas_call(
        kern,
        out_shape=jax.ShapeDtypeStruct((Nb, Hp, Wp, NPAD), jnp.bfloat16),
        grid=(steps,),
        in_specs=[pl.BlockSpec((tb, Hp, Wp, C), lambda n: (n, 0, 0, 0)),
                  pl.BlockSpec(w_cat.shape, lambda n: (0, 0)),
                  pl.BlockSpec(b_cat.shape, lambda n: (0, 0))],
        out_specs=pl.BlockSpec((tb, Hp, Wp, NPAD), lambda n: (n, 0, 0, 0)),
        compiler_params=pltpu.CompilerParams(
            dimension_semantics=("parallel",)),
    )(x_pad, w_cat, b_cat)


def fused_head(x_pad, w_cat, b_cat, sel, head_b, *, H, W, kk, tb):
    Nb, Hp, Wp, C = x_pad.shape
    steps = Nb // tb
    kern = functools.partial(_head_kernel, H=H, W=W, kk=kk)
    out = pl.pallas_call(
        kern,
        out_shape=jax.ShapeDtypeStruct((Nb, 1, NPAD), jnp.float32),
        grid=(steps,),
        in_specs=[pl.BlockSpec((tb, Hp, Wp, C), lambda n: (n, 0, 0, 0)),
                  pl.BlockSpec(w_cat.shape, lambda n: (0, 0)),
                  pl.BlockSpec(b_cat.shape, lambda n: (0, 0)),
                  pl.BlockSpec(sel.shape, lambda n: (0, 0)),
                  pl.BlockSpec(head_b.shape, lambda n: (0, 0))],
        out_specs=pl.BlockSpec((tb, 1, NPAD), lambda n: (n, 0, 0)),
        compiler_params=pltpu.CompilerParams(
            dimension_semantics=("parallel",)),
    )(x_pad, w_cat, b_cat, sel, head_b)
    return out[:, 0, :]


# ---------------------------------------------------------------------------
# Convex sign-pattern block + greedy container
# ---------------------------------------------------------------------------

class ConvexBlock:
    def __init__(self, key, in_planes, planes, in_size, kernel_size,
                 avg_size, num_classes, groups=1):
        self.in_planes = in_planes
        self.planes = planes
        self.num_classes = num_classes
        self.avg_size = avg_size
        self.groups = groups
        self.kernel_size = kernel_size
        self.pad = kernel_size // 2
        kk = kernel_size
        P, K, G = planes, num_classes, groups
        PK = P * K
        assert in_planes <= CPAD and PK <= NPAD

        k1, k2, k3, k4, k5 = jax.random.split(key, 5)
        # fixed random sign-pattern generator conv (not trainable), groups=1
        self.u_w = 0.2 * jax.random.normal(k1, (P, in_planes, kk, kk),
                                           jnp.float32)
        self.u_b = 0.2 * jax.random.normal(k2, (P,), jnp.float32)
        # trainable conv producing planes*num_classes channels (class-major)
        self.v_w = 0.2 * jax.random.normal(
            k3, (PK, in_planes // G, kk, kk), jnp.float32)
        self.v_b = 0.2 * jax.random.normal(k4, (PK,), jnp.float32)
        self.head_b = 0.2 * jax.random.normal(k5, (K,), jnp.float32)
        # natural selector (reference only): sums the P planes of each class
        self.sel = jnp.repeat(jnp.eye(K, dtype=jnp.float32), P, axis=0)

        # ---- precomputed fused-kernel operands (built once at init) ----
        # TODO(synk): the grouped->dense fold assumes the previous stage's
        # channels are class-major (channel = class*P + plane), matching
        # PyTorch's contiguous-channel grouping for this container.
        u_flat = jnp.transpose(self.u_w, (2, 3, 1, 0)).reshape(
            kk * kk, in_planes, P)
        u_rep = jnp.tile(u_flat, (1, 1, K))                    # class-major cols
        cout_g, cin_g = PK // G, in_planes // G
        v_dense = jnp.zeros((PK, in_planes, kk, kk), jnp.float32)
        for g in range(G):
            v_dense = v_dense.at[g * cout_g:(g + 1) * cout_g,
                                 g * cin_g:(g + 1) * cin_g].set(
                self.v_w[g * cout_g:(g + 1) * cout_g])
        v_flat = jnp.transpose(v_dense, (2, 3, 1, 0)).reshape(
            kk * kk, in_planes, PK)

        # single concatenated [wu | wv] weight; rows for padded input channels
        # and columns beyond PK are zero so padding is numerically inert.
        wu = jnp.zeros((kk * kk, CPAD, NPAD),
                       jnp.float32).at[:, :in_planes, :PK].set(u_rep)
        wv = jnp.zeros((kk * kk, CPAD, NPAD),
                       jnp.float32).at[:, :in_planes, :PK].set(v_flat)
        self.w_cat = jnp.concatenate([wu, wv], axis=-1).reshape(
            kk * kk * CPAD, 2 * NPAD).astype(jnp.bfloat16)
        b_cat = jnp.zeros((1, 2 * NPAD), jnp.float32)
        b_cat = b_cat.at[0, :PK].set(jnp.tile(self.u_b, K))
        b_cat = b_cat.at[0, NPAD:NPAD + PK].set(self.v_b)
        self.b_cat = b_cat

        # head: avg-pool scale folded into the class selector
        # TODO(synk): the avg-pool identity assumes H, W divisible by avg_size
        # with non-overlapping pooling (true here: 16 / 4).
        scale = 1.0 / float(avg_size * avg_size)
        self.sel_scaled = jnp.zeros((NPAD, NPAD),
                                    jnp.float32).at[:PK, :K].set(self.sel * scale)
        self.head_b_pad = jnp.zeros((1, NPAD),
                                    jnp.float32).at[0, :K].set(self.head_b)

    def forward_next_stage(self, x_pad):
        Nb, Hp, Wp, _ = x_pad.shape
        H, W = Hp - 2 * self.pad, Wp - 2 * self.pad
        tb = _samples_per_step(Nb)
        return fused_next_stage(x_pad, self.w_cat, self.b_cat,
                                H=H, W=W, kk=self.kernel_size,
                                pad=self.pad, tb=tb)

    def forward(self, x_pad):
        Nb, Hp, Wp, _ = x_pad.shape
        H, W = Hp - 2 * self.pad, Wp - 2 * self.pad
        tb = _samples_per_step(Nb)
        out = fused_head(x_pad, self.w_cat, self.b_cat, self.sel_scaled,
                         self.head_b_pad, H=H, W=W, kk=self.kernel_size, tb=tb)
        return out[:, :self.num_classes]


class ConvexGreedyNet:
    """JAX/Pallas counterpart of convexGreedyNet.forward (defaults: no
    downsample, no burer-monteiro, no decompose, no nonneg aggregation,
    store_activations=False)."""

    def __init__(self, key, num_blocks, feature_size=8, avg_size=4,
                 num_classes=4, in_size=16, in_planes=3, kernel_size=3):
        keys = jax.random.split(key, num_blocks)
        self.padding = kernel_size // 2
        self.blocks = []
        cur_in = in_planes
        next_in = feature_size
        groups = 1
        for n in range(num_blocks):
            if n != 0:
                cur_in = cur_in * num_classes
                groups = num_classes
            self.blocks.append(
                ConvexBlock(keys[n], cur_in, next_in, in_size, kernel_size,
                            avg_size, num_classes, groups=groups))
            cur_in = next_in

    def forward(self, a):
        x, N = a                                  # x: (Nb, H, W, Cin) NHWC
        p = self.padding
        cin = x.shape[-1]
        # one-time cast + spatial halo + channel pad to the 128-lane width;
        # all later blocks consume the previous kernel's pre-padded output.
        out = jnp.pad(x.astype(jnp.bfloat16),
                      ((0, 0), (p, p), (p, p), (0, CPAD - cin)))
        for n in range(N + 1):
            if n < N:
                out = jax.lax.stop_gradient(
                    self.blocks[n].forward_next_stage(out))      # .detach()
            else:
                out = self.blocks[n].forward(out)
        return out


# ---------------------------------------------------------------------------
# Plain-jnp reference of the same math (bf16 operands, f32 accumulation)
# ---------------------------------------------------------------------------

def _ref_forward(net, x_nhwc, N):
    out = x_nhwc
    for n in range(N + 1):
        blk = net.blocks[n]
        kk, p = blk.kernel_size, blk.pad
        P, K, G = blk.planes, blk.num_classes, blk.groups
        x = out.astype(jnp.bfloat16).astype(jnp.float32)
        Nb, H, W, Cin = x.shape
        xp = jnp.pad(x, ((0, 0), (p, p), (p, p), (0, 0)))
        uw = blk.u_w.astype(jnp.bfloat16).astype(jnp.float32)
        vw = blk.v_w.astype(jnp.bfloat16).astype(jnp.float32)
        s = sum(jnp.einsum('nhwc,oc->nhwo', xp[:, dy:dy + H, dx:dx + W, :],
                           uw[:, :, dy, dx])
                for dy in range(kk) for dx in range(kk)) + blk.u_b
        cin_g, cout_g = Cin // G, (P * K) // G
        zs = []
        for g in range(G):
            xg = xp[:, :, :, g * cin_g:(g + 1) * cin_g]
            wg = vw[g * cout_g:(g + 1) * cout_g]
            zs.append(sum(jnp.einsum('nhwc,oc->nhwo',
                                     xg[:, dy:dy + H, dx:dx + W, :],
                                     wg[:, :, dy, dx])
                          for dy in range(kk) for dx in range(kk)))
        z = jnp.concatenate(zs, axis=-1) + blk.v_b
        gated = z * jnp.tile((s >= 0.0).astype(jnp.float32), (1, 1, 1, K))
        if n < N:
            out = gated
        else:
            scale = 1.0 / float(blk.avg_size * blk.avg_size)
            out = ((gated.reshape(Nb, H * W, P * K).sum(axis=1) @ blk.sel)
                   * scale + blk.head_b)
    return out


# ---------------------------------------------------------------------------

if __name__ == "__main__":
    key = jax.random.PRNGKey(0)
    kx, kp = jax.random.split(key)

    batch, in_ch, in_size = 2, 3, 16
    feature_size, num_classes, avg_size, num_blocks = 8, 4, 4, 2

    # PyTorch-convention NCHW input; kernels use NHWC (see # layout comment).
    x_nchw = jax.random.normal(kx, (batch, in_ch, in_size, in_size),
                               jnp.float32)
    x_nhwc = jnp.transpose(x_nchw, (0, 2, 3, 1))

    net = ConvexGreedyNet(kp, num_blocks, feature_size=feature_size,
                          avg_size=avg_size, num_classes=num_classes,
                          in_size=in_size, in_planes=in_ch)

    out = net.forward((x_nhwc, num_blocks - 1))
    out = jax.block_until_ready(out)

    assert out.shape == (batch, num_classes)
    assert bool(jnp.all(jnp.isfinite(out)))

    # numerics check against the plain-jnp reference of the same math
    ref = _ref_forward(net, x_nhwc, num_blocks - 1)
    assert jnp.allclose(out, ref, atol=5e-2, rtol=5e-2), (out, ref)

    print("KERNEL_OK")
</pallas_src>

<mosaic_0001>
module attributes {stable_mosaic.version = 11 : i64} {
  func.func @_next_stage_kernel(%arg0: i32, %arg1: memref<1x18x18x128xbf16, #tpu.memory_space<vmem>>, %arg2: memref<1152x256xbf16, #tpu.memory_space<vmem>>, %arg3: memref<1x256xf32, #tpu.memory_space<vmem>>, %arg4: memref<1x18x18x128xbf16, #tpu.memory_space<vmem>>) attributes {dimension_semantics = [#tpu.dimension_semantics<parallel>], iteration_bounds = array<i64: 2>, scalar_prefetch = 0 : i64, scratch_operands = 0 : i64, tpu.core_type = #tpu.core_type<tc>, window_params = [{transform_indices = @transform_0, window_bounds = array<i64: 1, 18, 18, 128>}, {pipeline_mode = #tpu.pipeline_mode<synchronous>, transform_indices = @transform_1, window_bounds = array<i64: 1152, 256>}, {pipeline_mode = #tpu.pipeline_mode<synchronous>, transform_indices = @transform_2, window_bounds = array<i64: 1, 256>}, {transform_indices = @transform_3, window_bounds = array<i64: 1, 18, 18, 128>}]} {
    %c0 = arith.constant 0 : index
    %c0_0 = arith.constant 0 : index
    %c0_1 = arith.constant 0 : index
    %c0_2 = arith.constant 0 : index
    %0 = vector.load %arg1[%c0, %c0_0, %c0_1, %c0_2] : memref<1x18x18x128xbf16, #tpu.memory_space<vmem>>, vector<1x16x16x128xbf16>
    %1 = vector.shape_cast %0 : vector<1x16x16x128xbf16> to vector<256x128xbf16>
    %c0_3 = arith.constant 0 : index
    %c0_4 = arith.constant 0 : index
    %c1 = arith.constant 1 : index
    %c0_5 = arith.constant 0 : index
    %2 = vector.load %arg1[%c0_3, %c0_4, %c1, %c0_5] : memref<1x18x18x128xbf16, #tpu.memory_space<vmem>>, vector<1x16x16x128xbf16>
    %3 = vector.shape_cast %2 : vector<1x16x16x128xbf16> to vector<256x128xbf16>
    %c0_6 = arith.constant 0 : index
    %c0_7 = arith.constant 0 : index
    %c2 = arith.constant 2 : index
    %c0_8 = arith.constant 0 : index
    %4 = vector.load %arg1[%c0_6, %c0_7, %c2, %c0_8] : memref<1x18x18x128xbf16, #tpu.memory_space<vmem>>, vector<1x16x16x128xbf16>
    %5 = vector.shape_cast %4 : vector<1x16x16x128xbf16> to vector<256x128xbf16>
    %c0_9 = arith.constant 0 : index
    %c1_10 = arith.constant 1 : index
    %c0_11 = arith.constant 0 : index
    %c0_12 = arith.constant 0 : index
    %6 = vector.load %arg1[%c0_9, %c1_10, %c0_11, %c0_12] : memref<1x18x18x128xbf16, #tpu.memory_space<vmem>>, vector<1x16x16x128xbf16>
    %7 = vector.shape_cast %6 : vector<1x16x16x128xbf16> to vector<256x128xbf16>
    %c0_13 = arith.constant 0 : index
    %c1_14 = arith.constant 1 : index
    %c1_15 = arith.constant 1 : index
    %c0_16 = arith.constant 0 : index
    %8 = vector.load %arg1[%c0_13, %c1_14, %c1_15, %c0_16] : memref<1x18x18x128xbf16, #tpu.memory_space<vmem>>, vector<1x16x16x128xbf16>
    %9 = vector.shape_cast %8 : vector<1x16x16x128xbf16> to vector<256x128xbf16>
    %c0_17 = arith.constant 0 : index
    %c1_18 = arith.constant 1 : index
    %c2_19 = arith.constant 2 : index
    %c0_20 = arith.constant 0 : index
    %10 = vector.load %arg1[%c0_17, %c1_18, %c2_19, %c0_20] : memref<1x18x18x128xbf16, #tpu.memory_space<vmem>>, vector<1x16x16x128xbf16>
    %11 = vector.shape_cast %10 : vector<1x16x16x128xbf16> to vector<256x128xbf16>
    %c0_21 = arith.constant 0 : index
    %c2_22 = arith.constant 2 : index
    %c0_23 = arith.constant 0 : index
    %c0_24 = arith.constant 0 : index
    %12 = vector.load %arg1[%c0_21, %c2_22, %c0_23, %c0_24] : memref<1x18x18x128xbf16, #tpu.memory_space<vmem>>, vector<1x16x16x128xbf16>
    %13 = vector.shape_cast %12 : vector<1x16x16x128xbf16> to vector<256x128xbf16>
    %c0_25 = arith.constant 0 : index
    %c2_26 = arith.constant 2 : index
    %c1_27 = arith.constant 1 : index
    %c0_28 = arith.constant 0 : index
    %14 = vector.load %arg1[%c0_25, %c2_26, %c1_27, %c0_28] : memref<1x18x18x128xbf16, #tpu.memory_space<vmem>>, vector<1x16x16x128xbf16>
    %15 = vector.shape_cast %14 : vector<1x16x16x128xbf16> to vector<256x128xbf16>
    %c0_29 = arith.constant 0 : index
    %c2_30 = arith.constant 2 : index
    %c2_31 = arith.constant 2 : index
    %c0_32 = arith.constant 0 : index
    %16 = vector.load %arg1[%c0_29, %c2_30, %c2_31, %c0_32] : memref<1x18x18x128xbf16, #tpu.memory_space<vmem>>, vector<1x16x16x128xbf16>
    %17 = vector.shape_cast %16 : vector<1x16x16x128xbf16> to vector<256x128xbf16>
    %18 = tpu.concatenate %1, %3, %5, %7, %9, %11, %13, %15, %17 in 1 : vector<256x128xbf16>, vector<256x128xbf16>, vector<256x128xbf16>, vector<256x128xbf16>, vector<256x128xbf16>, vector<256x128xbf16>, vector<256x128xbf16>, vector<256x128xbf16>, vector<256x128xbf16> -> vector<256x1152xbf16>
    %c0_33 = arith.constant 0 : index
    %c0_34 = arith.constant 0 : index
    %19 = vector.load %arg2[%c0_33, %c0_34] : memref<1152x256xbf16, #tpu.memory_space<vmem>>, vector<1152x256xbf16>
    %cst = arith.constant dense<0.000000e+00> : vector<256x256xf32>
    %20 = tpu.matmul %18, %19, %cst {dimension_numbers = #tpu.dot_dimension_numbers<[1], [0], [0], [1], [0, 0, 1, 1], [], []>} : vector<256x1152xbf16>, vector<1152x256xbf16>, vector<256x256xf32> -> vector<256x256xf32>
    %c0_35 = arith.constant 0 : index
    %c0_36 = arith.constant 0 : index
    %21 = vector.load %arg3[%c0_35, %c0_36] : memref<1x256xf32, #tpu.memory_space<vmem>>, vector<1x256xf32>
    %22 = vector.broadcast %21 : vector<1x256xf32> to vector<256x256xf32>
    %23 = arith.addf %20, %22 : vector<256x256xf32>
    %24 = vector.extract_strided_slice %23 {offsets = [0, 0], sizes = [256, 128], strides = [1, 1]} : vector<256x256xf32> to vector<256x128xf32>
    %25 = vector.extract_strided_slice %23 {offsets = [0, 128], sizes = [256, 128], strides = [1, 1]} : vector<256x256xf32> to vector<256x128xf32>
    %cst_37 = arith.constant 0.000000e+00 : f32
    %26 = vector.broadcast %cst_37 : f32 to vector<256x128xf32>
    %27 = arith.cmpf oge, %24, %26 : vector<256x128xf32>
    %28 = arith.extui %27 : vector<256x128xi1> to vector<256x128xi32>
    %29 = arith.sitofp %28 : vector<256x128xi32> to vector<256x128xf32>
    %30 = arith.mulf %25, %29 : vector<256x128xf32>
    %cst_38 = arith.constant 0.000000e+00 : bf16
    %31 = vector.broadcast %cst_38 : bf16 to vector<1x18x18x128xbf16>
    %c0_39 = arith.constant 0 : index
    %c0_40 = arith.constant 0 : index
    %c0_41 = arith.constant 0 : index
    %c0_42 = arith.constant 0 : index
    %32 = vector.load %arg4[%c0_39, %c0_40, %c0_41, %c0_42] : memref<1x18x18x128xbf16, #tpu.memory_space<vmem>>, vector<1x18x18x128xbf16>
    tpu.vector_store %arg4[%c0_39, %c0_40, %c0_41, %c0_42], %31 {strides = array<i32>} : memref<1x18x18x128xbf16, #tpu.memory_space<vmem>>, vector<1x18x18x128xbf16>,
    %33 = vector.shape_cast %30 : vector<256x128xf32> to vector<1x16x16x128xf32>
    %34 = arith.truncf %33 : vector<1x16x16x128xf32> to vector<1x16x16x128xbf16>
    %c0_43 = arith.constant 0 : index
    %c1_44 = arith.constant 1 : index
    %c1_45 = arith.constant 1 : index
    %c0_46 = arith.constant 0 : index
    %35 = vector.load %arg4[%c0_43, %c1_44, %c1_45, %c0_46] : memref<1x18x18x128xbf16, #tpu.memory_space<vmem>>, vector<1x16x16x128xbf16>
    tpu.vector_store %arg4[%c0_43, %c1_44, %c1_45, %c0_46], %34 {strides = array<i32>} : memref<1x18x18x128xbf16, #tpu.memory_space<vmem>>, vector<1x16x16x128xbf16>,
    return
  }
  func.func @transform_0(%arg0: i32) -> (i32, i32, i32, i32) {
    %c0_i32 = arith.constant 0 : i32
    %c0_i32_0 = arith.constant 0 : i32
    %c0_i32_1 = arith.constant 0 : i32
    %c0_i32_2 = arith.constant 0 : i32
    return %arg0, %c0_i32, %c0_i32_0, %c0_i32_1 : i32, i32, i32, i32
  }
  func.func @transform_1(%arg0: i32) -> (i32, i32) {
    %c0_i32 = arith.constant 0 : i32
    %c0_i32_0 = arith.constant 0 : i32
    %c0_i32_1 = arith.constant 0 : i32
    return %c0_i32, %c0_i32_0 : i32, i32
  }
  func.func @transform_2(%arg0: i32) -> (i32, i32) {
    %c0_i32 = arith.constant 0 : i32
    %c0_i32_0 = arith.constant 0 : i32
    %c0_i32_1 = arith.constant 0 : i32
    return %c0_i32, %c0_i32_0 : i32, i32
  }
  func.func @transform_3(%arg0: i32) -> (i32, i32, i32, i32) {
    %c0_i32 = arith.constant 0 : i32
    %c0_i32_0 = arith.constant 0 : i32
    %c0_i32_1 = arith.constant 0 : i32
    %c0_i32_2 = arith.constant 0 : i32
    return %arg0, %c0_i32, %c0_i32_0, %c0_i32_1 : i32, i32, i32, i32
  }
}

</mosaic_0001>

<bundles_post_ra>
// kernel: tpu_custom_call.1
= control target key start
LH: loop header
LB: loop body
LE: loop exit
PB: predicated region body
PF: predicated region fallthrough
CT: control target
= control target key end

     0   :  { %8 = vsyncpa [#allocation3], 0  ;;  %s6736_s12 = smov 0   ;;  %s8456_s0 = inlined_call_operand.vmem [shape: bf16[2,18,18,128], index: 0, kind: input, shape index: {}]   ;;  %s8457_s1 = inlined_call_operand.hbm [shape: bf16[1152,256], index: 1, kind: input, shape index: {}]   ;;  %s8458_s2 = inlined_call_operand.vmem [shape: f32[1,256], index: 2, kind: input, shape index: {}]   ;;  %s8459_s3 = inlined_call_operand.vmem [shape: bf16[2,18,18,128], index: 3, kind: output, shape index: {}]  }
   0x1 LB: > { %s6742_s13 = sadd.s32 4294967295, %s6709_s12   ;;  %p5272_p0 = scmp.ge.s32.totalorder %s6709_s12, 1  ;;  %s6709_s12 = sphi %s6736_s12, %s14_s12  }
   0x2   : > { %p113_p1 = scmp.lt.s32.totalorder %s6709_s12, 3  ;;  %s6711_s14 = smov [#allocation2]  }
   0x3   : > { %s125_s15 = sshll.u32 %s6711_s14, 4  ;;  %p8460_p3 = scmp.eq.s32.totalorder %s6742_s13, 0  ;;  %s126_s15 = int_to_ptr.vmem [resolvable:$true] %s125_s15 }
   0x4   : > { %p6746_p2 = pnand %p5272_p0, %p113_p1  ;;  %s6671_s20 = scalar_lea.hbm %s8457_s1, 18432 }
   0x5   : > { %p6672_p6 = scmp.ne.s32.totalorder %s8457_s1, %s6671_s20  ;;  %p6678_p10 = scmp.lt.u32.totalorder %s6671_s20, %s8457_s1 }
   0x6   : > { %s8462_s16 = scalar_select %p6746_p2, 1, 0 }
   0x7   : > { %p6278_p4 = pneg %p6746_p2 }
   0x9   : > { %p6755_p5 = pnand %p8460_p3, %p6278_p4 }
   0xb   : > { %p6673_p7 = pneg %p6755_p5 }
   0xd   : > { %p6674_p8 = pnand %p6673_p7, %p6672_p6 }
   0xf   : > { %p6675_p9 = pneg %p6674_p8 }
  0x11   : > { %p6680_p11 = pnand %p6678_p10, %p6675_p9 }
  0x13   : > { %6683 = shalt.err (!%p6680_p11)
}
  0x14   : > { %s6684_s25 = scalar_lea.vmem %s126_s15, 18432  ;;  %p6692_p1 = scmp.lt.s32.totalorder %s126_s15, %s126_s15 }
  0x15   : > { %p6685_p12 = scmp.ne.s32.totalorder %s126_s15, %s6684_s25  ;;  %p6693_p4 = scmp.lt.s32.totalorder %s6684_s25, %s6684_s25 }
  0x17   : > { %p6687_p13 = pnand %p6685_p12, %p6673_p7  ;;  %p6694_p3 = por %p6693_p4, %p6692_p1 }
  0x19   : > { %p6688_p0 = pneg %p6687_p13 }
  0x1b   : > { %p6695_p2 = pnand %p6694_p3, %p6688_p0 }
  0x1d   : > { %6698 = shalt.err (!%p6695_p2)
}
  0x1e   : > { %s6712_s26 = smov 128   ;;  %s6713_s27 = smov 8  }
  0x1f   : > { %6281 = dma.hbm_to_vmem [thread:$0]  (!%p6755_p5), %s8457_s1, 18432, %s126_s15, [#allocation3], %s6712_s26, %s6712_s26, %s6713_s27  }
  0x20   : > { %p8464_p6 = scmp.ne.s32.totalorder %s8462_s16, 0 }
  0x21   : > { %p8465_p8 = scmp.eq.s32.totalorder (!%p8464_p6), %s6742_s13, 0 }
  0x22   : > { %152 = sbr.rel (%p8464_p6) target bundleno = 669 (0x29d), region = 32 }
  0x29   : > { %6704 = dma.done.wait (%p8465_p8), [#allocation3], 18432   ;;  %p8466_p7 = pmov %p8465_p8 }
  0x2a   : > { %p176_p2 = scmp.lt.s32.totalorder %s6742_s13, 1  ;;  %v6714_v0 = vmov 0   ;;  %v6297_v1 = vld [vmem:[#allocation2 + $0x4] ss:$8 sps:$4 sm:$0xff]   ;;  %v6301_v3 = vld [vmem:[#allocation2] ss:$8 sps:$4 sm:$0xff]  }
  0x2b   : > { %6706 = vsyncadd (%p8466_p7), [#allocation3], 4294948864  ;;  %v6299_v2 = vld [vmem:[#allocation2 + $0x204] ss:$8 sps:$4 sm:$0xff]   ;;  %3519 = vmatprep.subr.bf16.mxu1 %v6297_v1  ;;  %v6302_v4 = vld [vmem:[#allocation2 + $0x200] ss:$8 sps:$4 sm:$0xff]  }
  0x2c   : > { %s8478_s13 = smov (!%p176_p2, %s6742_s13), 1  ;;  %3905 = vmatprep.subr.bf16.mxu0 %v6299_v2  ;;  %v6303_v5 = vld [vmem:[#allocation2 + $0x14] ss:$8 sps:$4 sm:$0xff]   ;;  %3520 = vmatpush1.bf16.msra.mxu1 %v6301_v3  ;;  %v6307_v7 = vld [vmem:[#allocation2 + $0x10] ss:$8 sps:$4 sm:$0xff]   ;;  %vm686_vm2 = vcmask 1042432  }
  0x2d   : > { %s6273_s30 = smul.u32 216, %s8478_s13  ;;  %3906 = vmatpush1.bf16.msra.mxu0 %v6302_v4  ;;  %v6305_v6 = vld [vmem:[#allocation2 + $0x214] ss:$8 sps:$4 sm:$0xff]   ;;  %3521 = vmatprep.subr.bf16.mxu1 %v6303_v5  ;;  %v6308_v8 = vld [vmem:[#allocation2 + $0x210] ss:$8 sps:$4 sm:$0xff]   ;;  %vm687_vm3 = vcmask 1046532  }
  0x2e   : > { %3907 = vmatprep.subr.bf16.mxu0 %v6305_v6  ;;  %v6309_v9 = vld [vmem:[#allocation2 + $0x24] ss:$8 sps:$4 sm:$0xff]   ;;  %v6313_v11 = vld [vmem:[#allocation2 + $0x20] ss:$8 sps:$4 sm:$0xff]   ;;  %v6315_v13 = vld [vmem:[#allocation2 + $0x34] ss:$8 sps:$4 sm:$0xff]  }
  0x2f   : > { %s6791_s6 = scalar_lea.vmem %s8459_s3, %s6273_s30  ;;  %v6311_v10 = vld [vmem:[#allocation2 + $0x224] ss:$8 sps:$4 sm:$0xff]   ;;  %v6314_v12 = vld [vmem:[#allocation2 + $0x220] ss:$8 sps:$4 sm:$0xff]   ;;  %v6317_v14 = vld [vmem:[#allocation2 + $0x234] ss:$8 sps:$4 sm:$0xff]   ;;  %s6906_s9 = scalar_lea.vmem %s8456_s0, %s6273_s30 }
  0x30   : > { %4612 = vst [vmem:[%s6791_s6] sm:$0xf] %v6714_v0  ;;  %4613 = vst [vmem:[%s6791_s6 + $0x4] sm:$0xf] %v6714_v0  ;;  %3522 = vmatpush1.bf16.msra.mxu1 %v6307_v7  ;;  %v6319_v15 = vld [vmem:[#allocation2 + $0x30] ss:$8 sps:$4 sm:$0xff]   ;;  %vm5086_vm8 = vcmask 1043456  }
  0x31   : > { %4614 = vst [vmem:[%s6791_s6 + $0x8] sm:$0x1] %v6714_v0  ;;  %4663 = vst [vmem:[%s6791_s6 + $0xcc] sm:$0xf] %v6714_v0  ;;  %3908 = vmatpush1.bf16.msra.mxu0 %v6308_v8  ;;  %3523 = vmatprep.subr.bf16.mxu1 %v6309_v9  ;;  %v6320_v16 = vld [vmem:[#allocation2 + $0x230] ss:$8 sps:$4 sm:$0xff]  }
  0x32   : > { %4664 = vst [vmem:[%s6791_s6 + $0xd0] sm:$0xf] %v6714_v0  ;;  %4665 = vst [vmem:[%s6791_s6 + $0xd4] sm:$0x1] %v6714_v0  ;;  %3909 = vmatprep.subr.bf16.mxu0 %v6311_v10  ;;  %v6321_v17 = vld [vmem:[#allocation2 + $0x44] ss:$8 sps:$4 sm:$0xff]  }
  0x33   : > { %4615 = vst [vmem:[%s6791_s6 + $0xc] sm:$0xf] %v6714_v0  ;;  %4616 = vst [vmem:[%s6791_s6 + $0x10] sm:$0xf] %v6714_v0  ;;  %v6323_v18 = vld [vmem:[#allocation2 + $0x244] ss:$8 sps:$4 sm:$0xff]  }
  0x34   : > { %4617 = vst [vmem:[%s6791_s6 + $0x14] sm:$0x1] %v6714_v0  ;;  %4618 = vst [vmem:[%s6791_s6 + $0x18] sm:$0xf] %v6714_v0  ;;  %3524 = vmatpush1.bf16.msra.mxu1 %v6313_v11  ;;  %v6325_v19 = vld [vmem:[#allocation2 + $0x40] ss:$8 sps:$4 sm:$0xff]  }
  0x35   : > { %4619 = vst [vmem:[%s6791_s6 + $0x1c] sm:$0xf] %v6714_v0  ;;  %4620 = vst [vmem:[%s6791_s6 + $0x20] sm:$0x1] %v6714_v0  ;;  %3910 = vmatpush1.bf16.msra.mxu0 %v6314_v12  ;;  %3525 = vmatprep.subr.bf16.mxu1 %v6315_v13  ;;  %v6326_v20 = vld [vmem:[#allocation2 + $0x240] ss:$8 sps:$4 sm:$0xff]  }
  0x36   : > { %4621 = vst [vmem:[%s6791_s6 + $0x24] sm:$0xf] %v6714_v0  ;;  %4622 = vst [vmem:[%s6791_s6 + $0x28] sm:$0xf] %v6714_v0  ;;  %3911 = vmatprep.subr.bf16.mxu0 %v6317_v14  ;;  %v6327_v21 = vld [vmem:[#allocation2 + $0x54] ss:$8 sps:$4 sm:$0xff]  }
  0x37   : > { %4623 = vst [vmem:[%s6791_s6 + $0x2c] sm:$0x1] %v6714_v0  ;;  %4624 = vst [vmem:[%s6791_s6 + $0x30] sm:$0xf] %v6714_v0  ;;  %v6329_v22 = vld [vmem:[#allocation2 + $0x254] ss:$8 sps:$4 sm:$0xff]  }
  0x38   : > { %4625 = vst [vmem:[%s6791_s6 + $0x34] sm:$0xf] %v6714_v0  ;;  %4626 = vst [vmem:[%s6791_s6 + $0x38] sm:$0x1] %v6714_v0  ;;  %3526 = vmatpush1.bf16.msra.mxu1 %v6319_v15  ;;  %v6331_v23 = vld [vmem:[#allocation2 + $0x50] ss:$8 sps:$4 sm:$0xff]  }
  0x39   : > { %4627 = vst [vmem:[%s6791_s6 + $0x3c] sm:$0xf] %v6714_v0  ;;  %4628 = vst [vmem:[%s6791_s6 + $0x40] sm:$0xf] %v6714_v0  ;;  %3912 = vmatpush1.bf16.msra.mxu0 %v6320_v16  ;;  %3527 = vmatprep.subr.bf16.mxu1 %v6321_v17  ;;  %v6332_v24 = vld [vmem:[#allocation2 + $0x250] ss:$8 sps:$4 sm:$0xff]  }
  0x3a   : > { %4629 = vst [vmem:[%s6791_s6 + $0x44] sm:$0x1] %v6714_v0  ;;  %4630 = vst [vmem:[%s6791_s6 + $0x48] sm:$0xf] %v6714_v0  ;;  %3913 = vmatprep.subr.bf16.mxu0 %v6323_v18  ;;  %v6333_v25 = vld [vmem:[#allocation2 + $0x64] ss:$8 sps:$4 sm:$0xff]  }
  0x3b   : > { %4631 = vst [vmem:[%s6791_s6 + $0x4c] sm:$0xf] %v6714_v0  ;;  %4632 = vst [vmem:[%s6791_s6 + $0x50] sm:$0x1] %v6714_v0  ;;  %v6335_v26 = vld [vmem:[#allocation2 + $0x264] ss:$8 sps:$4 sm:$0xff]  }
  0x3c   : > { %4633 = vst [vmem:[%s6791_s6 + $0x54] sm:$0xf] %v6714_v0  ;;  %4634 = vst [vmem:[%s6791_s6 + $0x58] sm:$0xf] %v6714_v0  ;;  %3528 = vmatpush1.bf16.msra.mxu1 %v6325_v19  ;;  %v6337_v27 = vld [vmem:[#allocation2 + $0x60] ss:$8 sps:$4 sm:$0xff]  }
  0x3d   : > { %4635 = vst [vmem:[%s6791_s6 + $0x5c] sm:$0x1] %v6714_v0  ;;  %4636 = vst [vmem:[%s6791_s6 + $0x60] sm:$0xf] %v6714_v0  ;;  %3914 = vmatpush1.bf16.msra.mxu0 %v6326_v20  ;;  %3529 = vmatprep.subr.bf16.mxu1 %v6327_v21  ;;  %v6338_v28 = vld [vmem:[#allocation2 + $0x260] ss:$8 sps:$4 sm:$0xff]  }
  0x3e   : > { %4637 = vst [vmem:[%s6791_s6 + $0x64] sm:$0xf] %v6714_v0  ;;  %4638 = vst [vmem:[%s6791_s6 + $0x68] sm:$0x1] %v6714_v0  ;;  %3915 = vmatprep.subr.bf16.mxu0 %v6329_v22  ;;  %v6339_v29 = vld [vmem:[#allocation2 + $0x74] ss:$8 sps:$4 sm:$0xff]  }
  0x3f   : > { %4639 = vst [vmem:[%s6791_s6 + $0x6c] sm:$0xf] %v6714_v0  ;;  %4640 = vst [vmem:[%s6791_s6 + $0x70] sm:$0xf] %v6714_v0  ;;  %v6341_v30 = vld [vmem:[#allocation2 + $0x274] ss:$8 sps:$4 sm:$0xff]  }
  0x40   : > { %4641 = vst [vmem:[%s6791_s6 + $0x74] sm:$0x1] %v6714_v0  ;;  %4642 = vst [vmem:[%s6791_s6 + $0x78] sm:$0xf] %v6714_v0  ;;  %3530 = vmatpush1.bf16.msra.mxu1 %v6331_v23  ;;  %v6343_v31 = vld [vmem:[#allocation2 + $0x70] ss:$8 sps:$4 sm:$0xff]  }
  0x41   : > { %4643 = vst [vmem:[%s6791_s6 + $0x7c] sm:$0xf] %v6714_v0  ;;  %4644 = vst [vmem:[%s6791_s6 + $0x80] sm:$0x1] %v6714_v0  ;;  %3916 = vmatpush1.bf16.msra.mxu0 %v6332_v24  ;;  %3531 = vmatprep.subr.bf16.mxu1 %v6333_v25  ;;  %v6344_v32 = vld [vmem:[#allocation2 + $0x270] ss:$8 sps:$4 sm:$0xff]  }
  0x42   : > { %4645 = vst [vmem:[%s6791_s6 + $0x84] sm:$0xf] %v6714_v0  ;;  %4646 = vst [vmem:[%s6791_s6 + $0x88] sm:$0xf] %v6714_v0  ;;  %3917 = vmatprep.subr.bf16.mxu0 %v6335_v26  ;;  %v6345_v33 = vld [vmem:[#allocation2 + $0x84] ss:$8 sps:$4 sm:$0xff]  }
  0x43   : > { %4647 = vst [vmem:[%s6791_s6 + $0x8c] sm:$0x1] %v6714_v0  ;;  %4648 = vst [vmem:[%s6791_s6 + $0x90] sm:$0xf] %v6714_v0  ;;  %v6347_v34 = vld [vmem:[#allocation2 + $0x284] ss:$8 sps:$4 sm:$0xff]  }
  0x44   : > { %4649 = vst [vmem:[%s6791_s6 + $0x94] sm:$0xf] %v6714_v0  ;;  %4650 = vst [vmem:[%s6791_s6 + $0x98] sm:$0x1] %v6714_v0  ;;  %3532 = vmatpush1.bf16.msra.mxu1 %v6337_v27  ;;  %v6349_v35 = vld [vmem:[#allocation2 + $0x80] ss:$8 sps:$4 sm:$0xff]  }
  0x45   : > { %4651 = vst [vmem:[%s6791_s6 + $0x9c] sm:$0xf] %v6714_v0  ;;  %4652 = vst [vmem:[%s6791_s6 + $0xa0] sm:$0xf] %v6714_v0  ;;  %3918 = vmatpush1.bf16.msra.mxu0 %v6338_v28  ;;  %3533 = vmatprep.subr.bf16.mxu1 %v6339_v29  ;;  %v6350_v36 = vld [vmem:[#allocation2 + $0x280] ss:$8 sps:$4 sm:$0xff]  }
  0x46   : > { %4653 = vst [vmem:[%s6791_s6 + $0xa4] sm:$0x1] %v6714_v0  ;;  %4654 = vst [vmem:[%s6791_s6 + $0xa8] sm:$0xf] %v6714_v0  ;;  %3919 = vmatprep.subr.bf16.mxu0 %v6341_v30  ;;  %v6351_v37 = vld [vmem:[#allocation2 + $0x94] ss:$8 sps:$4 sm:$0xff]  }
  0x47   : > { %4655 = vst [vmem:[%s6791_s6 + $0xac] sm:$0xf] %v6714_v0  ;;  %4656 = vst [vmem:[%s6791_s6 + $0xb0] sm:$0x1] %v6714_v0  ;;  %v6353_v38 = vld [vmem:[#allocation2 + $0x294] ss:$8 sps:$4 sm:$0xff]  }
  0x48   : > { %4657 = vst [vmem:[%s6791_s6 + $0xb4] sm:$0xf] %v6714_v0  ;;  %4658 = vst [vmem:[%s6791_s6 + $0xb8] sm:$0xf] %v6714_v0  ;;  %3534 = vmatpush1.bf16.msra.mxu1 %v6343_v31  ;;  %v6355_v39 = vld [vmem:[#allocation2 + $0x90] ss:$8 sps:$4 sm:$0xff]  }
  0x49   : > { %4659 = vst [vmem:[%s6791_s6 + $0xbc] sm:$0x1] %v6714_v0  ;;  %4660 = vst [vmem:[%s6791_s6 + $0xc0] sm:$0xf] %v6714_v0  ;;  %3920 = vmatpush1.bf16.msra.mxu0 %v6344_v32  ;;  %3535 = vmatprep.subr.bf16.mxu1 %v6345_v33  ;;  %v6356_v40 = vld [vmem:[#allocation2 + $0x290] ss:$8 sps:$4 sm:$0xff]  }
  0x4a   : > { %4661 = vst [vmem:[%s6791_s6 + $0xc4] sm:$0xf] %v6714_v0  ;;  %4662 = vst [vmem:[%s6791_s6 + $0xc8] sm:$0x1] %v6714_v0  ;;  %3921 = vmatprep.subr.bf16.mxu0 %v6347_v34  ;;  %v6357_v41 = vld [vmem:[#allocation2 + $0xa4] ss:$8 sps:$4 sm:$0xff]  }
  0x4b   : > { %v6359_v42 = vld [vmem:[#allocation2 + $0x2a4] ss:$8 sps:$4 sm:$0xff]   ;;  %v6361_v43 = vld [vmem:[#allocation2 + $0xa0] ss:$8 sps:$4 sm:$0xff]   ;;  %vm235_vm0 = vsmask.f32 3328  ;;  %vm6924_vm4 = vmor %vm686_vm2, %vm687_vm3 }
  0x4c   : > { %3536 = vmatpush1.bf16.msra.mxu1 %v6349_v35  ;;  %v6362_v44 = vld [vmem:[#allocation2 + $0x2a0] ss:$8 sps:$4 sm:$0xff]   ;;  %v6363_v45 = vld [vmem:[#allocation2 + $0xb4] ss:$8 sps:$4 sm:$0xff]   ;;  %vm236_vm1 = vsmask.f32 7440 }
  0x4d   : > { %3922 = vmatpush1.bf16.msra.mxu0 %v6350_v36  ;;  %3537 = vmatprep.subr.bf16.mxu1 %v6351_v37  ;;  %v6365_v46 = vld [vmem:[#allocation2 + $0x2b4] ss:$8 sps:$4 sm:$0xff]   ;;  %v6367_v47 = vld [vmem:[#allocation2 + $0xb0] ss:$8 sps:$4 sm:$0xff]   ;;  %v6909_v49 = vld [vmem:[%s6906_s9] sm:$0xf] }
  0x4e   : > { %3923 = vmatprep.subr.bf16.mxu0 %v6353_v38  ;;  %v6368_v48 = vld [vmem:[#allocation2 + $0x2b0] ss:$8 sps:$4 sm:$0xff]   ;;  %v6369_v50 = vld [vmem:[#allocation2 + $0xc4] ss:$8 sps:$4 sm:$0xff]   ;;  %v219_v53 = vld [vmem:[%s6906_s9 + $0x8] sm:$0x1] }
  0x4f   : > { %v6371_v51 = vld [vmem:[#allocation2 + $0x2c4] ss:$8 sps:$4 sm:$0xff]   ;;  %v239_v54 = vshrl.u32 %v6909_v49, 16  ;;  %v242_v55 = vshll.u32 %v6909_v49, 16  ;;  %v258_v58 = vshll.u32 %v219_v53, 16  ;;  %v694_v63 = vrot.slane %v219_v53, 5  ;;  %vm6933_vm5 = vmor %vm235_vm0, %vm236_vm1 }
  0x50   : > { %3538 = vmatpush1.bf16.msra.mxu1 %v6355_v39  ;;  %v6912_v52 = vld [vmem:[%s6906_s9 + $0x4] sm:$0xf]  ;;  %v5296_v60 = vld [vmem:[%s6906_s9 + $0x10] sm:$0xf]  ;;  %v5327_v1 = vld [vmem:[%s6906_s9 + $0x14] sm:$0x1] }
  0x51   : > { %3924 = vmatpush1.bf16.msra.mxu0 %v6356_v40  ;;  %3539 = vmatprep.subr.bf16.mxu1 %v6357_v41  ;;  %v248_v56 = vshll.u32 %v6912_v52, 16  ;;  %v252_v57 = vshrl.u32 %v6912_v52, 16  ;;  %v691_v59 = vrot.slane %v6912_v52, 5  ;;  %v241_v61 = vrot.slane %v239_v54, 4  ;;  %v6373_v3 = vld [vmem:[#allocation2 + $0xc0] ss:$8 sps:$4 sm:$0xff]  }
  0x52   : > { %3925 = vmatprep.subr.bf16.mxu0 %v6359_v42  ;;  %v244_v62 = vrot.slane %v242_v55, 5  ;;  %v1300_v2 = vrot.slane %v5296_v60, 5  ;;  %v6374_v4 = vld [vmem:[#allocation2 + $0x2c0] ss:$8 sps:$4 sm:$0xff]   ;;  %v5343_v9 = vld [vmem:[%s6906_s9 + $0xc] sm:$0xe] }
  0x53   : > { %v250_v5 = vrot.slane %v248_v56, 5  ;;  %v254_v6 = vrot.slane %v252_v57, 4  ;;  %v693_v8 = vrot.slane %v691_v59, 4  ;;  %v6375_v10 = vld [vmem:[#allocation2 + $0xd4] ss:$8 sps:$4 sm:$0xff]   ;;  %v260_v12 = vrot.slane %v258_v58, 5 }
  0x54   : > { %3540 = vmatpush1.bf16.msra.mxu1 %v6361_v43  ;;  %v245_v11 = vor.u32 %v244_v62, %v241_v61  ;;  %v5359_v13 = vrot.slane %v5343_v9, 9  ;;  %v1302_v14 = vrot.slane %v1300_v2, 4  ;;  %v6377_v15 = vld [vmem:[#allocation2 + $0x2d4] ss:$8 sps:$4 sm:$0xff]   ;;  %v870_v19 = vshll.u32 %v5327_v1, 16 }
  0x55   : > { %3926 = vmatpush1.bf16.msra.mxu0 %v6362_v44  ;;  %3541 = vmatprep.subr.bf16.mxu1 %v6363_v45  ;;  %v255_v17 = vor.u32 %v254_v6, %v250_v5  ;;  %v6939_v18 = vsel %vm6924_vm4, %v693_v8, %v694_v63  ;;  %v1303_v20 = vrot.slane %v5327_v1, 5  ;;  %v5295_v23 = vld [vmem:[%s6906_s9 + $0xc] sm:$0xf]  ;;  %v860_v24 = vshll.u32 %v5296_v60, 16  ;;  %v6379_v25 = vld [vmem:[#allocation2 + $0xd0] ss:$8 sps:$4 sm:$0xff]  }
  0x56   : > { %3927 = vmatprep.subr.bf16.mxu0 %v6365_v46  ;;  %v246_v21 = vrot.slane %v245_v11, 4  ;;  %v1301_v22 = vsel %vm6924_vm4, %v5359_v13, %v1300_v2  ;;  %v6380_v26 = vld [vmem:[#allocation2 + $0x2d0] ss:$8 sps:$4 sm:$0xff]   ;;  %v851_v29 = vshrl.u32 %v5295_v23, 16  ;;  %v854_v30 = vshll.u32 %v5295_v23, 16 }
  0x57   : > { %v256_v27 = vrot.slane %v255_v17, 4  ;;  %v1304_v28 = vsel %vm6924_vm4, %v1302_v14, %v1303_v20  ;;  %v6381_v31 = vld [vmem:[#allocation2 + $0xe4] ss:$8 sps:$4 sm:$0xff]   ;;  %v862_v35 = vrot.slane %v860_v24, 5  ;;  %v864_v36 = vshrl.u32 %v5296_v60, 16 }
  0x58   : > { %3542 = vmatpush1.bf16.msra.mxu1 %v6367_v47  ;;  %v6383_v32 = vld [vmem:[#allocation2 + $0x2e4] ss:$8 sps:$4 sm:$0xff]   ;;  %v251_v33 = vsel %vm6933_vm5, %v246_v21, %v250_v5  ;;  %v5535_v34 = vcombine.low %v1301_v22, %v1304_v28  ;;  %v872_v38 = vrot.slane %v870_v19, 5  ;;  %v853_v39 = vrot.slane %v851_v29, 4  ;;  %v6956_v45 = vld [vmem:[%s6906_s9 + $0x10] sm:$0xf] }
  0x59   : > { %3928 = vmatpush1.bf16.msra.mxu0 %v6368_v48  ;;  %3543 = vmatprep.subr.bf16.mxu1 %v6369_v50  ;;  %v261_v37 = vsel %vm6933_vm5, %v256_v27, %v260_v12  ;;  %v856_v40 = vrot.slane %v854_v30, 5  ;;  %v6951_v41 = vld [vmem:[%s6906_s9 + $0xc] sm:$0xf]  ;;  %v5455_v43 = vcombine.low %v6909_v49, %v6912_v52  ;;  %v866_v44 = vrot.slane %v864_v36, 4  ;;  %v220_v46 = vld [vmem:[%s6906_s9 + $0x14] sm:$0x1] }
  0x5a   : > { %3929 = vmatprep.subr.bf16.mxu0 %v6371_v51  ;;  %v5471_v42 = vcombine.low %v251_v33, %v261_v37  ;;  %v263_v47 = vshrl.u32 %v6951_v41, 16  ;;  %v6385_v48 = vld [vmem:[#allocation2 + $0xe0] ss:$8 sps:$4 sm:$0xff]   ;;  %3937 = vmatprep.mubr.bf16.mxu0 %v5535_v34  ;;  %v266_v53 = vshll.u32 %v6951_v41, 16  ;;  %v272_v54 = vshll.u32 %v6956_v45, 16 }
  0x5b   : > { %v6386_v50 = vld [vmem:[#allocation2 + $0x2e0] ss:$8 sps:$4 sm:$0xff]   ;;  %v857_v51 = vor.u32 %v856_v40, %v853_v39  ;;  %v276_v55 = vshrl.u32 %v6956_v45, 16  ;;  %v5298_v56 = vld [vmem:[%s6906_s9 + $0x1c] sm:$0xf]  ;;  %v867_v58 = vor.u32 %v866_v44, %v862_v35  ;;  %v282_v61 = vshll.u32 %v220_v46, 16 }
  0x5c   : > { %3544 = vmatpush1.bf16.msra.mxu1 %v6373_v3  ;;  %v6387_v57 = vld [vmem:[#allocation2 + $0xf4] ss:$8 sps:$4 sm:$0xff]   ;;  %3551 = vmatprep.mubr.bf16.mxu1 %v5471_v42  ;;  %v265_v60 = vrot.slane %v263_v47, 4  ;;  %v6965_v62 = vld [vmem:[%s6906_s9 + $0x20] sm:$0x1]  ;;  %v5456_v1 = vcombine.low %v6951_v41, %v6956_v45  ;;  %v268_v3 = vrot.slane %v266_v53, 5 }
  0x5d   : > { %3930 = vmatpush1.bf16.msra.mxu0 %v6374_v4  ;;  %3545 = vmatprep.subr.bf16.mxu1 %v6375_v10  ;;  %v5344_v63 = vld [vmem:[%s6906_s9 + $0x18] sm:$0xe]  ;;  %v858_v2 = vrot.slane %v857_v51, 4  ;;  %v274_v4 = vrot.slane %v272_v54, 5  ;;  %v278_v5 = vrot.slane %v276_v55, 4  ;;  %v868_v8 = vrot.slane %v867_v58, 4 }
  0x5e   : > { %3931 = vmatprep.subr.bf16.mxu0 %v6377_v15  ;;  %v6389_v6 = vld [vmem:[#allocation2 + $0x2f4] ss:$8 sps:$4 sm:$0xff]   ;;  %v284_v9 = vrot.slane %v282_v61, 5  ;;  %v5360_v10 = vrot.slane %v5344_v63, 9  ;;  %v1307_v11 = vrot.slane %v5298_v56, 5  ;;  %v269_v14 = vor.u32 %v268_v3, %v265_v60 }
  0x5f   : > { %v6391_v12 = vld [vmem:[#allocation2 + $0xf0] ss:$8 sps:$4 sm:$0xff]   ;;  %v863_v13 = vsel %vm6933_vm5, %v858_v2, %v862_v35  ;;  %v279_v15 = vor.u32 %v278_v5, %v274_v4  ;;  %v1310_v17 = vrot.slane %v6965_v62, 5  ;;  %v6396_v21 = vld [vmem:[#allocation2 + $0x104] ss:$8 sps:$4 sm:$0xff]   ;;  %v873_v22 = vsel %vm6933_vm5, %v868_v8, %v872_v38 }
  0x60   : > { %3546 = vmatpush1.bf16.msra.mxu1 %v6379_v25  ;;  %v5297_v19 = vld [vmem:[%s6906_s9 + $0x18] sm:$0xf]  ;;  %v6978_v23 = vsel %vm6924_vm4, %v5360_v10, %v1307_v11  ;;  %v1309_v24 = vrot.slane %v1307_v11, 4  ;;  %v270_v27 = vrot.slane %v269_v14, 4  ;;  %v6399_v30 = vld [vmem:[#allocation2 + $0x304] ss:$8 sps:$4 sm:$0xff]  }
  0x61   : > { %3932 = vmatpush1.bf16.msra.mxu0 %v6380_v26  ;;  %3547 = vmatprep.subr.bf16.mxu1 %v6381_v31  ;;  %v6392_v20 = vld [vmem:[#allocation2 + $0x2f0] ss:$8 sps:$4 sm:$0xff]   ;;  %v875_v25 = vshrl.u32 %v5297_v19, 16  ;;  %v5519_v26 = vcombine.low %v863_v13, %v873_v22  ;;  %v280_v28 = vrot.slane %v279_v15, 4  ;;  %v878_v29 = vshll.u32 %v5297_v19, 16 }
  0x62   : > { %3933 = vmatprep.subr.bf16.mxu0 %v6383_v32  ;;  %v1311_v31 = vsel %vm6924_vm4, %v1309_v24, %v1310_v17  ;;  %v884_v33 = vshll.u32 %v5298_v56, 16  ;;  %v888_v34 = vshrl.u32 %v5298_v56, 16  ;;  %v6394_v35 = vld [vmem:[#allocation2 + $0x100] ss:$8 sps:$4 sm:$0xff]   ;;  %v275_v37 = vsel %vm6933_vm5, %v270_v27, %v274_v4  ;;  %v6988_v42 = vld [vmem:[%s6906_s9 + $0x18] sm:$0xf] }
  0x63   : > { %v877_v32 = vrot.slane %v875_v25, 4  ;;  %v6397_v36 = vld [vmem:[#allocation2 + $0x300] ss:$8 sps:$4 sm:$0xff]   ;;  %v285_v38 = vsel %vm6933_vm5, %v280_v28, %v284_v9  ;;  %v5536_v39 = vcombine.low %v6978_v23, %v1311_v31  ;;  %v880_v40 = vrot.slane %v878_v29, 5  ;;  %v6402_v44 = vld [vmem:[#allocation2 + $0x314] ss:$8 sps:$4 sm:$0xff]  }
  0x64   : > { %3548 = vmatpush1.bf16.msra.mxu1 %v6385_v48  ;;  %v5472_v46 = vcombine.low %v275_v37, %v285_v38  ;;  %v886_v47 = vrot.slane %v884_v33, 5  ;;  %v890_v48 = vrot.slane %v888_v34, 4  ;;  %v6992_v51 = vld [vmem:[%s6906_s9 + $0x1c] sm:$0xf]  ;;  %v221_v55 = vld [vmem:[%s6906_s9 + $0x20] sm:$0x1] }
  0x65   : > { %3934 = vmatpush1.bf16.msra.mxu0 %v6386_v50  ;;  %3549 = vmatprep.subr.bf16.mxu1 %v6387_v57  ;;  %v894_v50 = vshll.u32 %v6965_v62, 16  ;;  %v6406_v53 = vld [vmem:[#allocation2 + $0x114] ss:$8 sps:$4 sm:$0xff]   ;;  %v881_v54 = vor.u32 %v880_v40, %v877_v32  ;;  %v287_v56 = vshrl.u32 %v6988_v42, 16  ;;  %v290_v57 = vshll.u32 %v6988_v42, 16 }
  0x66   : > { %3935 = vmatprep.subr.bf16.mxu0 %v6389_v6  ;;  %v296_v58 = vshll.u32 %v6992_v51, 16  ;;  %v891_v60 = vor.u32 %v890_v48, %v886_v47  ;;  %v300_v62 = vshrl.u32 %v6992_v51, 16  ;;  %v306_v63 = vshll.u32 %v221_v55, 16  ;;  %v5300_v2 = vld [vmem:[%s6906_s9 + $0x28] sm:$0xf] }
  0x67   : > { %v896_v61 = vrot.slane %v894_v50, 5  ;;  %v6400_v3 = vld [vmem:[#allocation2 + $0x310] ss:$8 sps:$4 sm:$0xff]   ;;  %v882_v4 = vrot.slane %v881_v54, 4  ;;  %v289_v5 = vrot.slane %v287_v56, 4  ;;  %v292_v6 = vrot.slane %v290_v57, 5 }
  0x68   : > { %3550 = vmatpush1.bf16.msra.mxu1 %v6391_v12  ;;  %v298_v8 = vrot.slane %v296_v58, 5  ;;  %v5329_v9 = vld [vmem:[%s6906_s9 + $0x2c] sm:$0x1]  ;;  %v892_v10 = vrot.slane %v891_v60, 4  ;;  %v302_v11 = vrot.slane %v300_v62, 4  ;;  %v308_v12 = vrot.slane %v306_v63, 5 }
  0x69   : > { %3936 = vmatpush1.bf16.msra.mxu0 %v6392_v20  ;;  %3712 = vmatprep.subr.bf16.mxu1 %v6396_v21  ;;  %v5345_v13 = vld [vmem:[%s6906_s9 + $0x24] sm:$0xe]  ;;  %v1314_v14 = vrot.slane %v5300_v2, 5  ;;  %v6404_v15 = vld [vmem:[#allocation2 + $0x110] ss:$8 sps:$4 sm:$0xff]   ;;  %v887_v17 = vsel %vm6933_vm5, %v882_v4, %v886_v47  ;;  %v293_v20 = vor.u32 %v292_v6, %v289_v5  ;;  %v1317_v22 = vrot.slane %v5329_v9, 5 }
  0x6a   : > { %4098 = vmatprep.subr.bf16.mxu0 %v6399_v30  ;;  %v6409_v19 = vld [vmem:[#allocation2 + $0x324] ss:$8 sps:$4 sm:$0xff]   ;;  %v5361_v21 = vrot.slane %v5345_v13, 9  ;;  %v897_v49 = vsel %vm6933_vm5, %v892_v10, %v896_v61  ;;  %v5457_v24 = vcombine.low %v6988_v42, %v6992_v51  ;;  %v6407_v28 = vld [vmem:[#allocation2 + $0x320] ss:$8 sps:$4 sm:$0xff]   ;;  %v912_v40 = vshrl.u32 %v5300_v2, 16 }
  0x6b   : > { %3552 = vmatmul.mubr.bf16.vlgmr.msra.gmra.mrb[0].mxu1 %v5455_v43  ;;  %v303_v43 = vor.u32 %v302_v11, %v298_v8  ;;  %v1316_v23 = vrot.slane %v1314_v14, 4  ;;  %v6416_v25 = vld [vmem:[#allocation2 + $0x124] ss:$8 sps:$4 sm:$0xff]   ;;  %v5520_v27 = vcombine.low %v887_v17, %v897_v49  ;;  %v294_v29 = vrot.slane %v293_v20, 4  ;;  %v6412_v32 = vld [vmem:[#allocation2 + $0x334] ss:$8 sps:$4 sm:$0xff]  }
  0x6c   : > { %3938 = vmatmul.mubr.bf16.vlgmr.msra.gmra.mrb[0].mxu0 %v5519_v26  ;;  %3713 = vmatpush1.bf16.msra.mxu1 %v6394_v35  ;;  %v5299_v26 = vld [vmem:[%s6906_s9 + $0x24] sm:$0xf]  ;;  %v1315_v30 = vsel %vm6924_vm4, %v5361_v21, %v1314_v14  ;;  %v222_v54 = vld [vmem:[%s6906_s9 + $0x2c] sm:$0x1]  ;;  %v6410_v55 = vld [vmem:[#allocation2 + $0x330] ss:$8 sps:$4 sm:$0xff]  }
  0x6d   : > { %4099 = vmatpush1.bf16.msra.mxu0 %v6397_v36  ;;  %3561 = vmatprep.mubr.bf16.mxu1 %v5472_v46  ;;  %v899_v31 = vshrl.u32 %v5299_v26, 16  ;;  %v304_v33 = vrot.slane %v303_v43, 4  ;;  %v1318_v34 = vsel %vm6924_vm4, %v1316_v23, %v1317_v22  ;;  %v902_v35 = vshll.u32 %v5299_v26, 16  ;;  %v7022_v46 = vld [vmem:[%s6906_s9 + $0x28] sm:$0xf] }
  0x6e   : > { %4100 = vmatprep.subr.bf16.mxu0 %v6402_v44  ;;  %3947 = vmatprep.mubr.bf16.mxu0 %v5536_v39  ;;  %v908_v36 = vshll.u32 %v5300_v2, 16  ;;  %v299_v37 = vsel %vm6933_vm5, %v294_v29, %v298_v8  ;;  %v5537_v38 = vcombine.low %v1315_v30, %v1318_v34  ;;  %v7019_v44 = vld [vmem:[%s6906_s9 + $0x24] sm:$0xf]  ;;  %v6414_v57 = vld [vmem:[#allocation2 + $0x120] ss:$8 sps:$4 sm:$0xff]   ;;  %v914_v58 = vrot.slane %v912_v40, 4 }
  0x6f   : > { %3714 = vmatprep.subr.bf16.mxu1 %v6406_v53  ;;  %v901_v39 = vrot.slane %v899_v31, 4  ;;  %v309_v47 = vsel %vm6933_vm5, %v304_v33, %v308_v12  ;;  %v904_v48 = vrot.slane %v902_v35, 5  ;;  %v918_v53 = vshll.u32 %v5329_v9, 16  ;;  %v6419_v2 = vld [vmem:[#allocation2 + $0x344] ss:$8 sps:$4 sm:$0xff]  }
  0x70   : > { %3715 = vmatpush1.bf16.msra.mxu1 %v6404_v15  ;;  %v910_v50 = vrot.slane %v908_v36, 5  ;;  %v5473_v56 = vcombine.low %v299_v37, %v309_v47  ;;  %v311_v60 = vshrl.u32 %v7019_v44, 16  ;;  %v314_v61 = vshll.u32 %v7019_v44, 16  ;;  %v5302_v5 = vld [vmem:[%s6906_s9 + $0x34] sm:$0xf] }
  0x71   : > { %4101 = vmatpush1.bf16.msra.mxu0 %v6400_v3  ;;  %3716 = vmatprep.subr.bf16.mxu1 %v6416_v25  ;;  %v905_v62 = vor.u32 %v904_v48, %v901_v39  ;;  %v920_v63 = vrot.slane %v918_v53, 5  ;;  %v320_v3 = vshll.u32 %v7022_v46, 16  ;;  %v324_v4 = vshrl.u32 %v7022_v46, 16  ;;  %v7036_v6 = vld [vmem:[%s6906_s9 + $0x38] sm:$0x1] }
  0x72   : > { %4102 = vmatprep.subr.bf16.mxu0 %v6409_v19  ;;  %v915_v8 = vor.u32 %v914_v58, %v910_v50  ;;  %v313_v9 = vrot.slane %v311_v60, 4  ;;  %v316_v10 = vrot.slane %v314_v61, 5  ;;  %v330_v11 = vshll.u32 %v222_v54, 16  ;;  %v5346_v41 = vld [vmem:[%s6906_s9 + $0x30] sm:$0xe] }
  0x73   : > { %3562 = vmatmul.mubr.bf16.gmra.mrb[4].mxu1 %v5456_v1  ;;  %v906_v45 = vrot.slane %v905_v62, 4  ;;  %v322_v1 = vrot.slane %v320_v3, 5  ;;  %v326_v12 = vrot.slane %v324_v4, 4  ;;  %v5362_v13 = vrot.slane %v5346_v41, 9  ;;  %v6424_v14 = vld [vmem:[#allocation2 + $0x130] ss:$8 sps:$4 sm:$0xff]  }
  0x74   : > { %3948 = vmatmul.mubr.bf16.gmra.mrb[4].mxu0 %v5520_v27  ;;  %3571 = vmatprep.mubr.bf16.mxu1 %v5473_v56  ;;  %v916_v15 = vrot.slane %v915_v8, 4  ;;  %v317_v17 = vor.u32 %v316_v10, %v313_v9  ;;  %v332_v19 = vrot.slane %v330_v11, 5  ;;  %v1321_v20 = vrot.slane %v5302_v5, 5  ;;  %v6426_v21 = vld [vmem:[#allocation2 + $0x134] ss:$8 sps:$4 sm:$0xff]  }
  0x75   : > { %4103 = vmatpush1.bf16.msra.mxu0 %v6407_v28  ;;  %3957 = vmatprep.mubr.bf16.mxu0 %v5537_v38  ;;  %v911_v22 = vsel %vm6933_vm5, %v906_v45, %v910_v50  ;;  %v327_v49 = vor.u32 %v326_v12, %v322_v1  ;;  %v1324_v43 = vrot.slane %v7036_v6, 5  ;;  %v5458_v23 = vcombine.low %v7019_v44, %v7022_v46  ;;  %v5301_v25 = vld [vmem:[%s6906_s9 + $0x30] sm:$0xf]  ;;  %v6417_v27 = vld [vmem:[#allocation2 + $0x340] ss:$8 sps:$4 sm:$0xff]  }
  0x76   : > { %4104 = vmatprep.subr.bf16.mxu0 %v6412_v32  ;;  %3717 = vmatpush1.bf16.msra.mxu1 %v6414_v57  ;;  %v921_v26 = vsel %vm6933_vm5, %v916_v15, %v920_v63  ;;  %v318_v28 = vrot.slane %v317_v17, 4  ;;  %v1322_v29 = vsel %vm6924_vm4, %v5362_v13, %v1321_v20  ;;  %v1323_v30 = vrot.slane %v1321_v20, 4  ;;  %v6422_v32 = vld [vmem:[#allocation2 + $0x354] ss:$8 sps:$4 sm:$0xff]   ;;  %v6420_v36 = vld [vmem:[#allocation2 + $0x350] ss:$8 sps:$4 sm:$0xff]  }
  0x77   : > { %3718 = vmatprep.subr.bf16.mxu1 %v6426_v21  ;;  %v5521_v31 = vcombine.low %v911_v22, %v921_v26  ;;  %v328_v33 = vrot.slane %v327_v49, 4  ;;  %v923_v34 = vshrl.u32 %v5301_v25, 16  ;;  %v926_v35 = vshll.u32 %v5301_v25, 16  ;;  %v7054_v47 = vld [vmem:[%s6906_s9 + $0x30] sm:$0xf] }
  0x78   : > { %v323_v37 = vsel %vm6933_vm5, %v318_v28, %v322_v1  ;;  %v1325_v38 = vsel %vm6924_vm4, %v1323_v30, %v1324_v43  ;;  %v932_v39 = vshll.u32 %v5302_v5, 16  ;;  %v936_v40 = vshrl.u32 %v5302_v5, 16  ;;  %v7057_v48 = vld [vmem:[%s6906_s9 + $0x34] sm:$0xf]  ;;  %v6429_v56 = vld [vmem:[#allocation2 + $0x364] ss:$8 sps:$4 sm:$0xff]  }
  0x79   : > { %4105 = vmatpush1.bf16.msra.mxu0 %v6410_v55  ;;  %v333_v50 = vsel %vm6933_vm5, %v328_v33, %v332_v19  ;;  %v5538_v53 = vcombine.low %v1322_v29, %v1325_v38  ;;  %v925_v54 = vrot.slane %v923_v34, 4  ;;  %v928_v55 = vrot.slane %v926_v35, 5  ;;  %v223_v57 = vld [vmem:[%s6906_s9 + $0x38] sm:$0x1]  ;;  %v7067_v63 = vld [vmem:[%s6906_s9 + $0x44] sm:$0x1] }
  0x7a   : > { %4106 = vmatprep.subr.bf16.mxu0 %v6419_v2  ;;  %3719 = vmatpush1.bf16.msra.mxu1 %v6424_v14  ;;  %v5474_v58 = vcombine.low %v323_v37, %v333_v50  ;;  %v934_v60 = vrot.slane %v932_v39, 5  ;;  %v938_v61 = vrot.slane %v936_v40, 4  ;;  %v942_v62 = vshll.u32 %v7036_v6, 16  ;;  %v5347_v3 = vld [vmem:[%s6906_s9 + $0x3c] sm:$0xe] }
  0x7b   : > { %3572 = vmatmul.mubr.bf16.gmra.mrb[8].mxu1 %v5457_v24  ;;  %v929_v42 = vor.u32 %v928_v55, %v925_v54  ;;  %v335_v51 = vshrl.u32 %v7054_v47, 16  ;;  %v338_v24 = vshll.u32 %v7054_v47, 16  ;;  %v344_v2 = vshll.u32 %v7057_v48, 16  ;;  %v6427_v8 = vld [vmem:[#allocation2 + $0x360] ss:$8 sps:$4 sm:$0xff]  }
  0x7c   : > { %3958 = vmatmul.mubr.bf16.gmra.mrb[8].mxu0 %v5521_v31  ;;  %3581 = vmatprep.mubr.bf16.mxu1 %v5474_v58  ;;  %v939_v4 = vor.u32 %v938_v61, %v934_v60  ;;  %v944_v5 = vrot.slane %v942_v62, 5  ;;  %v348_v9 = vshrl.u32 %v7057_v48, 16  ;;  %v354_v6 = vshll.u32 %v223_v57, 16  ;;  %v5304_v10 = vld [vmem:[%s6906_s9 + $0x40] sm:$0xf] }
  0x7d   : > { %4107 = vmatpush1.bf16.msra.mxu0 %v6417_v27  ;;  %3967 = vmatprep.mubr.bf16.mxu0 %v5538_v53  ;;  %v6434_v11 = vld [vmem:[#allocation2 + $0x140] ss:$8 sps:$4 sm:$0xff]   ;;  %v930_v41 = vrot.slane %v929_v42, 4  ;;  %v337_v45 = vrot.slane %v335_v51, 4  ;;  %v340_v1 = vrot.slane %v338_v24, 5  ;;  %v346_v12 = vrot.slane %v344_v2, 5 }
  0x7e   : > { %4108 = vmatprep.subr.bf16.mxu0 %v6422_v32  ;;  %v6436_v13 = vld [vmem:[#allocation2 + $0x144] ss:$8 sps:$4 sm:$0xff]   ;;  %v940_v14 = vrot.slane %v939_v4, 4  ;;  %v350_v15 = vrot.slane %v348_v9, 4  ;;  %v356_v17 = vrot.slane %v354_v6, 5  ;;  %v5363_v19 = vrot.slane %v5347_v3, 9 }
  0x7f   : > { %v5303_v20 = vld [vmem:[%s6906_s9 + $0x3c] sm:$0xf]  ;;  %v935_v21 = vsel %vm6933_vm5, %v930_v41, %v934_v60  ;;  %v341_v49 = vor.u32 %v340_v1, %v337_v45  ;;  %v1328_v43 = vrot.slane %v5304_v10, 5  ;;  %v1331_v25 = vrot.slane %v7067_v63, 5  ;;  %3720 = vmatprep.subr.bf16.mxu1 %v6436_v13  ;;  %v6430_v31 = vld [vmem:[#allocation2 + $0x370] ss:$8 sps:$4 sm:$0xff]  }
  0x80   : > { %v6432_v22 = vld [vmem:[#allocation2 + $0x374] ss:$8 sps:$4 sm:$0xff]   ;;  %v945_v26 = vsel %vm6933_vm5, %v940_v14, %v944_v5  ;;  %v351_v27 = vor.u32 %v350_v15, %v346_v12  ;;  %v5459_v28 = vcombine.low %v7054_v47, %v7057_v48  ;;  %v947_v29 = vshrl.u32 %v5303_v20, 16  ;;  %3721 = vmatpush1.bf16.msra.mxu1 %v6434_v11  ;;  %v6439_v35 = vld [vmem:[#allocation2 + $0x384] ss:$8 sps:$4 sm:$0xff]  }
  0x81   : > { %4109 = vmatpush1.bf16.msra.mxu0 %v6420_v36  ;;  %v5522_v30 = vcombine.low %v935_v21, %v945_v26  ;;  %v342_v32 = vrot.slane %v341_v49, 4  ;;  %v1329_v33 = vsel %vm6924_vm4, %v5363_v19, %v1328_v43  ;;  %v1330_v34 = vrot.slane %v1328_v43, 4  ;;  %v7089_v40 = vld [vmem:[%s6906_s9 + $0x3c] sm:$0xf]  ;;  %v7097_v48 = vld [vmem:[%s6906_s9 + $0x40] sm:$0xf] }
  0x82   : > { %4110 = vmatprep.subr.bf16.mxu0 %v6429_v56  ;;  %v352_v36 = vrot.slane %v351_v27, 4  ;;  %v949_v37 = vrot.slane %v947_v29, 4  ;;  %v950_v38 = vshll.u32 %v5303_v20, 16  ;;  %v956_v39 = vshll.u32 %v5304_v10, 16  ;;  %v224_v50 = vld [vmem:[%s6906_s9 + $0x44] sm:$0x1] }
  0x83   : > { %3582 = vmatmul.mubr.bf16.gmra.mrb[12].mxu1 %v5458_v23  ;;  %v347_v44 = vsel %vm6933_vm5, %v342_v32, %v346_v12  ;;  %v1332_v46 = vsel %vm6924_vm4, %v1330_v34, %v1331_v25  ;;  %v960_v23 = vshrl.u32 %v5304_v10, 16  ;;  %v966_v47 = vshll.u32 %v7067_v63, 16  ;;  %v6437_v57 = vld [vmem:[#allocation2 + $0x380] ss:$8 sps:$4 sm:$0xff]   ;;  %v6442_v42 = vld [vmem:[#allocation2 + $0x394] ss:$8 sps:$4 sm:$0xff]  }
  0x84   : > { %3968 = vmatmul.mubr.bf16.gmra.mrb[12].mxu0 %v5522_v30  ;;  %v357_v53 = vsel %vm6933_vm5, %v352_v36, %v356_v17  ;;  %v5539_v54 = vcombine.low %v1329_v33, %v1332_v46  ;;  %v952_v55 = vrot.slane %v950_v38, 5  ;;  %v958_v56 = vrot.slane %v956_v39, 5  ;;  %v5348_v58 = vld [vmem:[%s6906_s9 + $0x48] sm:$0xe]  ;;  %v7105_v24 = vld [vmem:[%s6906_s9 + $0x50] sm:$0x1] }
  0x85   : > { %4111 = vmatpush1.bf16.msra.mxu0 %v6427_v8  ;;  %v5475_v60 = vcombine.low %v347_v44, %v357_v53  ;;  %v962_v61 = vrot.slane %v960_v23, 4  ;;  %v968_v62 = vrot.slane %v966_v47, 5  ;;  %v359_v51 = vshrl.u32 %v7089_v40, 16  ;;  %v5306_v5 = vld [vmem:[%s6906_s9 + $0x4c] sm:$0xf] }
  0x86   : > { %4112 = vmatprep.subr.bf16.mxu0 %v6432_v22  ;;  %3977 = vmatprep.mubr.bf16.mxu0 %v5539_v54  ;;  %v953_v63 = vor.u32 %v952_v55, %v949_v37  ;;  %v362_v2 = vshll.u32 %v7089_v40, 16  ;;  %v368_v3 = vshll.u32 %v7097_v48, 16  ;;  %v372_v4 = vshrl.u32 %v7097_v48, 16  ;;  %v6446_v8 = vld [vmem:[#allocation2 + $0x154] ss:$8 sps:$4 sm:$0xff]  }
  0x87   : > { %3591 = vmatprep.mubr.bf16.mxu1 %v5475_v60  ;;  %v963_v9 = vor.u32 %v962_v61, %v958_v56  ;;  %v361_v6 = vrot.slane %v359_v51, 4  ;;  %v378_v10 = vshll.u32 %v224_v50, 16  ;;  %v5364_v11 = vrot.slane %v5348_v58, 9  ;;  %v6444_v41 = vld [vmem:[#allocation2 + $0x150] ss:$8 sps:$4 sm:$0xff]   ;;  %3722 = vmatprep.subr.bf16.mxu1 %v6446_v8 }
  0x88   : > { %v954_v45 = vrot.slane %v953_v63, 4  ;;  %v364_v1 = vrot.slane %v362_v2, 5  ;;  %v370_v12 = vrot.slane %v368_v3, 5  ;;  %v374_v13 = vrot.slane %v372_v4, 4  ;;  %v5305_v14 = vld [vmem:[%s6906_s9 + $0x48] sm:$0xf]  ;;  %3723 = vmatpush1.bf16.msra.mxu1 %v6444_v41 }
  0x89   : > { %4113 = vmatpush1.bf16.msra.mxu0 %v6430_v31  ;;  %v964_v15 = vrot.slane %v963_v9, 4  ;;  %v380_v17 = vrot.slane %v378_v10, 5  ;;  %v1335_v19 = vrot.slane %v5306_v5, 5  ;;  %v1338_v20 = vrot.slane %v7105_v24, 5  ;;  %v6440_v26 = vld [vmem:[#allocation2 + $0x390] ss:$8 sps:$4 sm:$0xff]  }
  0x8a   : > { %4114 = vmatprep.subr.bf16.mxu0 %v6439_v35  ;;  %v959_v21 = vsel %vm6933_vm5, %v954_v45, %v958_v56  ;;  %v365_v22 = vor.u32 %v364_v1, %v361_v6  ;;  %v375_v49 = vor.u32 %v374_v13, %v370_v12  ;;  %v5460_v43 = vcombine.low %v7089_v40, %v7097_v48  ;;  %v6449_v30 = vld [vmem:[#allocation2 + $0x3a4] ss:$8 sps:$4 sm:$0xff]   ;;  %v7122_v35 = vld [vmem:[%s6906_s9 + $0x48] sm:$0xf]  ;;  %v6452_v50 = vld [vmem:[#allocation2 + $0x3b4] ss:$8 sps:$4 sm:$0xff]  }
  0x8b   : > { %3592 = vmatmul.mubr.bf16.gmra.mrb[16].mxu1 %v5459_v28  ;;  %v969_v25 = vsel %vm6933_vm5, %v964_v15, %v968_v62  ;;  %v1336_v27 = vsel %vm6924_vm4, %v5364_v11, %v1335_v19  ;;  %v1337_v28 = vrot.slane %v1335_v19, 4  ;;  %v971_v29 = vshrl.u32 %v5305_v14, 16  ;;  %v6447_v40 = vld [vmem:[#allocation2 + $0x3a0] ss:$8 sps:$4 sm:$0xff]   ;;  %v7127_v44 = vld [vmem:[%s6906_s9 + $0x4c] sm:$0xf] }
  0x8c   : > { %v5523_v31 = vcombine.low %v959_v21, %v969_v25  ;;  %v366_v32 = vrot.slane %v365_v22, 4  ;;  %v376_v33 = vrot.slane %v375_v49, 4  ;;  %v974_v34 = vshll.u32 %v5305_v14, 16  ;;  %v225_v53 = vld [vmem:[%s6906_s9 + $0x50] sm:$0x1] }
  0x8d   : > { %4115 = vmatpush1.bf16.msra.mxu0 %v6437_v57  ;;  %v1339_v36 = vsel %vm6924_vm4, %v1337_v28, %v1338_v20  ;;  %v973_v37 = vrot.slane %v971_v29, 4  ;;  %v980_v38 = vshll.u32 %v5306_v5, 16  ;;  %v984_v39 = vshrl.u32 %v5306_v5, 16  ;;  %v6454_v54 = vld [vmem:[#allocation2 + $0x160] ss:$8 sps:$4 sm:$0xff]  }
  0x8e   : > { %4116 = vmatprep.subr.bf16.mxu0 %v6442_v42  ;;  %3978 = vmatmul.mubr.bf16.gmra.mrb[16].mxu0 %v5523_v31  ;;  %v371_v46 = vsel %vm6933_vm5, %v366_v32, %v370_v12  ;;  %v381_v23 = vsel %vm6933_vm5, %v376_v33, %v380_v17  ;;  %v5540_v47 = vcombine.low %v1336_v27, %v1339_v36  ;;  %v976_v48 = vrot.slane %v974_v34, 5  ;;  %v6456_v60 = vld [vmem:[#allocation2 + $0x164] ss:$8 sps:$4 sm:$0xff]   ;;  %v5349_v63 = vld [vmem:[%s6906_s9 + $0x54] sm:$0xe] }
  0x8f   : > { %v5476_v55 = vcombine.low %v371_v46, %v381_v23  ;;  %v982_v56 = vrot.slane %v980_v38, 5  ;;  %v986_v57 = vrot.slane %v984_v39, 4  ;;  %v990_v58 = vshll.u32 %v7105_v24, 16  ;;  %v6450_v4 = vld [vmem:[#allocation2 + $0x3b0] ss:$8 sps:$4 sm:$0xff]   ;;  %3724 = vmatprep.subr.bf16.mxu1 %v6456_v60 }
  0x90   : > { %3987 = vmatprep.mubr.bf16.mxu0 %v5540_v47  ;;  %v977_v61 = vor.u32 %v976_v48, %v973_v37  ;;  %v383_v62 = vshrl.u32 %v7122_v35, 16  ;;  %v386_v42 = vshll.u32 %v7122_v35, 16  ;;  %v392_v51 = vshll.u32 %v7127_v44, 16  ;;  %v5333_v8 = vld [vmem:[%s6906_s9 + $0x5c] sm:$0x1]  ;;  %3725 = vmatpush1.bf16.msra.mxu1 %v6454_v54 }
  0x91   : > { %4117 = vmatpush1.bf16.msra.mxu0 %v6440_v26  ;;  %3601 = vmatprep.mubr.bf16.mxu1 %v5476_v55  ;;  %v987_v2 = vor.u32 %v986_v57, %v982_v56  ;;  %v992_v3 = vrot.slane %v990_v58, 5  ;;  %v396_v5 = vshrl.u32 %v7127_v44, 16  ;;  %v402_v24 = vshll.u32 %v225_v53, 16  ;;  %v5307_v41 = vld [vmem:[%s6906_s9 + $0x54] sm:$0xf] }
  0x92   : > { %4118 = vmatprep.subr.bf16.mxu0 %v6449_v30  ;;  %v978_v9 = vrot.slane %v977_v61, 4  ;;  %v385_v6 = vrot.slane %v383_v62, 4  ;;  %v388_v10 = vrot.slane %v386_v42, 5  ;;  %v394_v11 = vrot.slane %v392_v51, 5  ;;  %v5308_v13 = vld [vmem:[%s6906_s9 + $0x58] sm:$0xf] }
  0x93   : > { %3602 = vmatmul.mubr.bf16.gmra.mrb[20].mxu1 %v5460_v43  ;;  %v988_v45 = vrot.slane %v987_v2, 4  ;;  %v398_v1 = vrot.slane %v396_v5, 4  ;;  %v404_v12 = vrot.slane %v402_v24, 5  ;;  %v5365_v14 = vrot.slane %v5349_v63, 9  ;;  %v6459_v21 = vld [vmem:[#allocation2 + $0x3c4] ss:$8 sps:$4 sm:$0xff]  }
  0x94   : > { %v983_v15 = vsel %vm6933_vm5, %v978_v9, %v982_v56  ;;  %v389_v17 = vor.u32 %v388_v10, %v385_v6  ;;  %v1342_v19 = vrot.slane %v5308_v13, 5  ;;  %v1345_v20 = vrot.slane %v5333_v8, 5  ;;  %v6457_v26 = vld [vmem:[#allocation2 + $0x3c0] ss:$8 sps:$4 sm:$0xff]   ;;  %v6462_v31 = vld [vmem:[#allocation2 + $0x3d4] ss:$8 sps:$4 sm:$0xff]  }
  0x95   : > { %4119 = vmatpush1.bf16.msra.mxu0 %v6447_v40  ;;  %v993_v22 = vsel %vm6933_vm5, %v988_v45, %v992_v3  ;;  %v399_v49 = vor.u32 %v398_v1, %v394_v11  ;;  %v5461_v43 = vcombine.low %v7122_v35, %v7127_v44  ;;  %v995_v25 = vshrl.u32 %v5307_v41, 16  ;;  %v7152_v32 = vld [vmem:[%s6906_s9 + $0x54] sm:$0xf]  ;;  %v7155_v38 = vld [vmem:[%s6906_s9 + $0x58] sm:$0xf] }
  0x96   : > { %4120 = vmatprep.subr.bf16.mxu0 %v6452_v50  ;;  %v5524_v27 = vcombine.low %v983_v15, %v993_v22  ;;  %v390_v28 = vrot.slane %v389_v17, 4  ;;  %v1343_v29 = vsel %vm6924_vm4, %v5365_v14, %v1342_v19  ;;  %v1344_v30 = vrot.slane %v1342_v19, 4  ;;  %v226_v46 = vld [vmem:[%s6906_s9 + $0x5c] sm:$0x1]  ;;  %v6460_v53 = vld [vmem:[#allocation2 + $0x3d0] ss:$8 sps:$4 sm:$0xff]  }
  0x97   : > { %v400_v33 = vrot.slane %v399_v49, 4  ;;  %v997_v34 = vrot.slane %v995_v25, 4  ;;  %v998_v36 = vshll.u32 %v5307_v41, 16  ;;  %v1004_v37 = vshll.u32 %v5308_v13, 16  ;;  %v5350_v54 = vld [vmem:[%s6906_s9 + $0x60] sm:$0xe] }
  0x98   : > { %3988 = vmatmul.mubr.bf16.gmra.mrb[20].mxu0 %v5524_v27  ;;  %v395_v35 = vsel %vm6933_vm5, %v390_v28, %v394_v11  ;;  %v1346_v39 = vsel %vm6924_vm4, %v1344_v30, %v1345_v20  ;;  %v1008_v40 = vshrl.u32 %v5308_v13, 16  ;;  %v1014_v44 = vshll.u32 %v5333_v8, 16  ;;  %v6466_v55 = vld [vmem:[#allocation2 + $0x174] ss:$8 sps:$4 sm:$0xff]   ;;  %v6464_v61 = vld [vmem:[#allocation2 + $0x170] ss:$8 sps:$4 sm:$0xff]  }
  0x99   : > { %4121 = vmatpush1.bf16.msra.mxu0 %v6450_v4  ;;  %v405_v23 = vsel %vm6933_vm5, %v400_v33, %v404_v12  ;;  %v5541_v47 = vcombine.low %v1343_v29, %v1346_v39  ;;  %v1000_v48 = vrot.slane %v998_v36, 5  ;;  %v1006_v50 = vrot.slane %v1004_v37, 5  ;;  %v5310_v2 = vld [vmem:[%s6906_s9 + $0x64] sm:$0xf]  ;;  %v7171_v3 = vld [vmem:[%s6906_s9 + $0x68] sm:$0x1]  ;;  %3726 = vmatprep.subr.bf16.mxu1 %v6466_v55 }
  0x9a   : > { %4122 = vmatprep.subr.bf16.mxu0 %v6459_v21  ;;  %v5477_v56 = vcombine.low %v395_v35, %v405_v23  ;;  %v1010_v57 = vrot.slane %v1008_v40, 4  ;;  %v1016_v58 = vrot.slane %v1014_v44, 5  ;;  %v407_v60 = vshrl.u32 %v7152_v32, 16  ;;  %v6469_v9 = vld [vmem:[#allocation2 + $0x3e4] ss:$8 sps:$4 sm:$0xff]   ;;  %3727 = vmatpush1.bf16.msra.mxu1 %v6464_v61 }
  0x9b   : > { %3997 = vmatprep.mubr.bf16.mxu0 %v5541_v47  ;;  %v1001_v62 = vor.u32 %v1000_v48, %v997_v34  ;;  %v410_v42 = vshll.u32 %v7152_v32, 16  ;;  %v416_v51 = vshll.u32 %v7155_v38, 16  ;;  %v420_v63 = vshrl.u32 %v7155_v38, 16  ;;  %v5309_v45 = vld [vmem:[%s6906_s9 + $0x60] sm:$0xf] }
  0x9c   : > { %3611 = vmatprep.mubr.bf16.mxu1 %v5477_v56  ;;  %v1011_v4 = vor.u32 %v1010_v57, %v1006_v50  ;;  %v409_v5 = vrot.slane %v407_v60, 4  ;;  %v426_v24 = vshll.u32 %v226_v46, 16  ;;  %v5366_v8 = vrot.slane %v5350_v54, 9  ;;  %v6467_v21 = vld [vmem:[#allocation2 + $0x3e0] ss:$8 sps:$4 sm:$0xff]  }
  0x9d   : > { %4123 = vmatpush1.bf16.msra.mxu0 %v6457_v26  ;;  %3612 = vmatmul.mubr.bf16.gmra.mrb[24].mxu1 %v5461_v43  ;;  %v1002_v6 = vrot.slane %v1001_v62, 4  ;;  %v412_v10 = vrot.slane %v410_v42, 5  ;;  %v418_v11 = vrot.slane %v416_v51, 5  ;;  %v422_v41 = vrot.slane %v420_v63, 4  ;;  %v6472_v22 = vld [vmem:[#allocation2 + $0x3f4] ss:$8 sps:$4 sm:$0xff]  }
  0x9e   : > { %4124 = vmatprep.subr.bf16.mxu0 %v6462_v31  ;;  %v1012_v1 = vrot.slane %v1011_v4, 4  ;;  %v428_v12 = vrot.slane %v426_v24, 5  ;;  %v1349_v13 = vrot.slane %v5310_v2, 5  ;;  %v1352_v14 = vrot.slane %v7171_v3, 5  ;;  %v7184_v27 = vld [vmem:[%s6906_s9 + $0x60] sm:$0xf] }
  0x9f   : > { %v1007_v15 = vsel %vm6933_vm5, %v1002_v6, %v1006_v50  ;;  %v413_v17 = vor.u32 %v412_v10, %v409_v5  ;;  %v423_v19 = vor.u32 %v422_v41, %v418_v11  ;;  %v5462_v20 = vcombine.low %v7152_v32, %v7155_v38  ;;  %v7187_v28 = vld [vmem:[%s6906_s9 + $0x64] sm:$0xf]  ;;  %v6470_v38 = vld [vmem:[#allocation2 + $0x3f0] ss:$8 sps:$4 sm:$0xff]   ;;  %v227_v35 = vld [vmem:[%s6906_s9 + $0x68] sm:$0x1] }
  0xa0   : > { %v1017_v49 = vsel %vm6933_vm5, %v1012_v1, %v1016_v58  ;;  %v1350_v43 = vsel %vm6924_vm4, %v5366_v8, %v1349_v13  ;;  %v1351_v25 = vrot.slane %v1349_v13, 4  ;;  %v1019_v26 = vshrl.u32 %v5309_v45, 16  ;;  %v7197_v23 = vld [vmem:[%s6906_s9 + $0x18] sm:$0xf]  ;;  %v6476_v47 = vld [vmem:[#allocation2 + $0x184] ss:$8 sps:$4 sm:$0xff]  }
  0xa1   : > { %4125 = vmatpush1.bf16.msra.mxu0 %v6460_v53  ;;  %v5525_v29 = vcombine.low %v1007_v15, %v1017_v49  ;;  %v414_v30 = vrot.slane %v413_v17, 4  ;;  %v424_v31 = vrot.slane %v423_v19, 4  ;;  %v1022_v32 = vshll.u32 %v5309_v45, 16  ;;  %v6474_v55 = vld [vmem:[#allocation2 + $0x180] ss:$8 sps:$4 sm:$0xff]   ;;  %3728 = vmatprep.subr.bf16.mxu1 %v6476_v47 }
  0xa2   : > { %4126 = vmatprep.subr.bf16.mxu0 %v6469_v9  ;;  %v1353_v33 = vsel %vm6924_vm4, %v1351_v25, %v1352_v14  ;;  %v1021_v34 = vrot.slane %v1019_v26, 4  ;;  %v1028_v36 = vshll.u32 %v5310_v2, 16  ;;  %v1032_v37 = vshrl.u32 %v5310_v2, 16  ;;  %v6480_v61 = vld [vmem:[#allocation2 + $0x404] ss:$8 sps:$4 sm:$0xff]   ;;  %3729 = vmatpush1.bf16.msra.mxu1 %v6474_v55 }
  0xa3   : > { %3998 = vmatmul.mubr.bf16.gmra.mrb[24].mxu0 %v5525_v29  ;;  %v419_v39 = vsel %vm6933_vm5, %v414_v30, %v418_v11  ;;  %v429_v40 = vsel %vm6933_vm5, %v424_v31, %v428_v12  ;;  %v5542_v44 = vcombine.low %v1350_v43, %v1353_v33  ;;  %v1024_v46 = vrot.slane %v1022_v32, 5  ;;  %v7205_v2 = vld [vmem:[%s6906_s9 + $0x1c] sm:$0xf]  ;;  %v5407_v45 = vld [vmem:[%s6906_s9 + $0x20] sm:$0x1] }
  0xa4   : > { %v5478_v48 = vcombine.low %v419_v39, %v429_v40  ;;  %v1030_v50 = vrot.slane %v1028_v36, 5  ;;  %v1034_v53 = vrot.slane %v1032_v37, 4  ;;  %v1038_v54 = vshll.u32 %v7171_v3, 16  ;;  %v6482_v19 = vld [vmem:[#allocation2 + $0x190] ss:$8 sps:$4 sm:$0xff]  }
  0xa5   : > { %4127 = vmatpush1.bf16.msra.mxu0 %v6467_v21  ;;  %4007 = vmatprep.mubr.bf16.mxu0 %v5542_v44  ;;  %v1025_v56 = vor.u32 %v1024_v46, %v1021_v34  ;;  %v431_v57 = vshrl.u32 %v7184_v27, 16  ;;  %v434_v58 = vshll.u32 %v7184_v27, 16  ;;  %v440_v60 = vshll.u32 %v7187_v28, 16  ;;  %v7217_v25 = vld [vmem:[%s6906_s9 + $0x6c] sm:$0xf] }
  0xa6   : > { %4128 = vmatprep.subr.bf16.mxu0 %v6472_v22  ;;  %3621 = vmatprep.mubr.bf16.mxu1 %v5478_v48  ;;  %v1035_v62 = vor.u32 %v1034_v53, %v1030_v50  ;;  %v1040_v42 = vrot.slane %v1038_v54, 5  ;;  %v444_v51 = vshrl.u32 %v7187_v28, 16  ;;  %v450_v63 = vshll.u32 %v227_v35, 16  ;;  %v7220_v31 = vld [vmem:[%s6906_s9 + $0x70] sm:$0xf] }
  0xa7   : > { %3622 = vmatmul.mubr.bf16.gmra.mrb[28].mxu1 %v5462_v20  ;;  %v1026_v3 = vrot.slane %v1025_v56, 4  ;;  %v433_v4 = vrot.slane %v431_v57, 4  ;;  %v436_v5 = vrot.slane %v434_v58, 5  ;;  %v442_v24 = vrot.slane %v440_v60, 5  ;;  %v6484_v20 = vld [vmem:[#allocation2 + $0x194] ss:$8 sps:$4 sm:$0xff]  }
  0xa8   : > { %v1036_v8 = vrot.slane %v1035_v62, 4  ;;  %v446_v9 = vrot.slane %v444_v51, 4  ;;  %v452_v6 = vrot.slane %v450_v63, 5  ;;  %v1460_v10 = vshrl.u32 %v7197_v23, 16  ;;  %3730 = vmatprep.subr.bf16.mxu1 %v6484_v20  ;;  %v228_v37 = vld [vmem:[%s6906_s9 + $0x74] sm:$0x1] }
  0xa9   : > { %4129 = vmatpush1.bf16.msra.mxu0 %v6470_v38  ;;  %v1031_v11 = vsel %vm6933_vm5, %v1026_v3, %v1030_v50  ;;  %v437_v41 = vor.u32 %v436_v5, %v433_v4  ;;  %v1463_v1 = vshll.u32 %v7197_v23, 16  ;;  %v1469_v12 = vshll.u32 %v7205_v2, 16  ;;  %v7233_v44 = vld [vmem:[%s6906_s9 + $0x24] sm:$0xf]  ;;  %3731 = vmatpush1.bf16.msra.mxu1 %v6482_v19  ;;  %v6487_v46 = vld [vmem:[#allocation2 + $0x1a0] ss:$8 sps:$4 sm:$0xff]  }
  0xaa   : > { %4291 = vmatprep.subr.bf16.mxu0 %v6480_v61  ;;  %v1041_v13 = vsel %vm6933_vm5, %v1036_v8, %v1040_v42  ;;  %v447_v14 = vor.u32 %v446_v9, %v442_v24  ;;  %v1462_v15 = vrot.slane %v1460_v10, 4  ;;  %v1473_v17 = vshrl.u32 %v7205_v2, 16  ;;  %v7239_v56 = vld [vmem:[%s6906_s9 + $0x28] sm:$0xf]  ;;  %v5408_v61 = vld [vmem:[%s6906_s9 + $0x2c] sm:$0x1] }
  0xab   : > { %v5526_v21 = vcombine.low %v1031_v11, %v1041_v13  ;;  %v438_v22 = vrot.slane %v437_v41, 4  ;;  %v1465_v49 = vrot.slane %v1463_v1, 5  ;;  %v1471_v43 = vrot.slane %v1469_v12, 5  ;;  %v6478_v51 = vld [vmem:[#allocation2 + $0x400] ss:$8 sps:$4 sm:$0xff]  }
  0xac   : > { %v448_v26 = vrot.slane %v447_v14, 4  ;;  %v1475_v29 = vrot.slane %v1473_v17, 4  ;;  %v1479_v30 = vshll.u32 %v5407_v45, 16  ;;  %v5463_v34 = vcombine.low %v7184_v27, %v7187_v28  ;;  %v7250_v9 = vld [vmem:[%s6906_s9 + $0x78] sm:$0xf] }
  0xad   : > { %4008 = vmatmul.mubr.bf16.gmra.mrb[28].mxu0 %v5526_v21  ;;  %v443_v32 = vsel %vm6933_vm5, %v438_v22, %v442_v24  ;;  %v1466_v33 = vor.u32 %v1465_v49, %v1462_v15  ;;  %v5551_v36 = vcombine.low %v7197_v23, %v7205_v2  ;;  %v455_v40 = vshrl.u32 %v7217_v25, 16  ;;  %v6489_v23 = vld [vmem:[#allocation2 + $0x1a4] ss:$8 sps:$4 sm:$0xff]   ;;  %v6493_v1 = vld [vmem:[#allocation2 + $0x414] ss:$8 sps:$4 sm:$0xff]  }
  0xae   : > { %v453_v38 = vsel %vm6933_vm5, %v448_v26, %v452_v6  ;;  %v1476_v35 = vor.u32 %v1475_v29, %v1471_v43  ;;  %v1481_v39 = vrot.slane %v1479_v30, 5  ;;  %v458_v27 = vshll.u32 %v7217_v25, 16  ;;  %3732 = vmatprep.subr.bf16.mxu1 %v6489_v23  ;;  %v7253_v6 = vld [vmem:[%s6906_s9 + $0x7c] sm:$0xf]  ;;  %v229_v17 = vld [vmem:[%s6906_s9 + $0x80] sm:$0x1] }
  0xaf   : > { %v5479_v47 = vcombine.low %v443_v32, %v453_v38  ;;  %v1467_v48 = vrot.slane %v1466_v33, 4  ;;  %v464_v28 = vshll.u32 %v7220_v31, 16  ;;  %v457_v53 = vrot.slane %v455_v40, 4  ;;  %3733 = vmatpush1.bf16.msra.mxu1 %v6487_v46  ;;  %v6491_v19 = vld [vmem:[#allocation2 + $0x410] ss:$8 sps:$4 sm:$0xff]  }
  0xb0   : > { %v1477_v50 = vrot.slane %v1476_v35, 4  ;;  %v468_v54 = vshrl.u32 %v7220_v31, 16  ;;  %v474_v55 = vshll.u32 %v228_v37, 16  ;;  %v460_v58 = vrot.slane %v458_v27, 5  ;;  %v7270_v37 = vld [vmem:[%s6906_s9 + $0x30] sm:$0xf] }
  0xb1   : > { %3631 = vmatprep.mubr.bf16.mxu1 %v5479_v47  ;;  %v1472_v57 = vsel %vm6933_vm5, %v1467_v48, %v1471_v43  ;;  %v466_v60 = vrot.slane %v464_v28, 5  ;;  %v1484_v62 = vshrl.u32 %v7233_v44, 16  ;;  %v1487_v3 = vshll.u32 %v7233_v44, 16  ;;  %v6495_v43 = vld [vmem:[#allocation2 + $0x1b0] ss:$8 sps:$4 sm:$0xff]  }
  0xb2   : > { %v1482_v42 = vsel %vm6933_vm5, %v1477_v50, %v1481_v39  ;;  %3632 = vmatmul.mubr.bf16.gmra.mrb[32].mxu1 %v5463_v34  ;;  %v470_v63 = vrot.slane %v468_v54, 4  ;;  %v476_v2 = vrot.slane %v474_v55, 5  ;;  %v461_v5 = vor.u32 %v460_v58, %v457_v53  ;;  %v7273_v38 = vld [vmem:[%s6906_s9 + $0x34] sm:$0xf]  ;;  %v5409_v23 = vld [vmem:[%s6906_s9 + $0x38] sm:$0x1] }
  0xb3   : > { %v5567_v4 = vcombine.low %v1472_v57, %v1482_v42  ;;  %v1486_v24 = vrot.slane %v1484_v62, 4  ;;  %v1493_v8 = vshll.u32 %v7239_v56, 16  ;;  %v1489_v11 = vrot.slane %v1487_v3, 5  ;;  %v7282_v57 = vld [vmem:[%s6906_s9 + $0x84] sm:$0xf] }
  0xb4   : > { %v471_v10 = vor.u32 %v470_v63, %v466_v60  ;;  %v1497_v41 = vshrl.u32 %v7239_v56, 16  ;;  %v1503_v45 = vshll.u32 %v5408_v61, 16  ;;  %v462_v12 = vrot.slane %v461_v5, 4  ;;  %v7288_v42 = vld [vmem:[%s6906_s9 + $0x88] sm:$0xf] }
  0xb5   : > { %4130 = vmatprep.mubr.bf16.mxu0 %v5567_v4  ;;  %v1495_v13 = vrot.slane %v1493_v8, 5  ;;  %v5464_v14 = vcombine.low %v7217_v25, %v7220_v31  ;;  %v5552_v15 = vcombine.low %v7233_v44, %v7239_v56  ;;  %v1490_v21 = vor.u32 %v1489_v11, %v1486_v24  ;;  %v6497_v31 = vld [vmem:[#allocation2 + $0x1b4] ss:$8 sps:$4 sm:$0xff]   ;;  %v6502_v5 = vld [vmem:[#allocation2 + $0x1c4] ss:$8 sps:$4 sm:$0xff]  }
  0xb6   : > { %4131 = vmatmul.mubr.bf16.vlgmr.msra.gmra.mrb[0].mxu0 %v5551_v36  ;;  %v472_v20 = vrot.slane %v471_v10, 4  ;;  %v1499_v22 = vrot.slane %v1497_v41, 4  ;;  %v1505_v49 = vrot.slane %v1503_v45, 5  ;;  %v467_v26 = vsel %vm6933_vm5, %v462_v12, %v466_v60  ;;  %3734 = vmatprep.subr.bf16.mxu1 %v6497_v31  ;;  %v6504_v41 = vld [vmem:[#allocation2 + $0x420] ss:$8 sps:$4 sm:$0xff]  }
  0xb7   : > { %4292 = vmatpush1.bf16.msra.mxu0 %v6478_v51  ;;  %v479_v29 = vshrl.u32 %v7250_v9, 16  ;;  %v482_v25 = vshll.u32 %v7250_v9, 16  ;;  %v488_v30 = vshll.u32 %v7253_v6, 16  ;;  %v1491_v33 = vrot.slane %v1490_v21, 4  ;;  %3735 = vmatpush1.bf16.msra.mxu1 %v6495_v43  ;;  %v6500_v51 = vld [vmem:[#allocation2 + $0x1c0] ss:$8 sps:$4 sm:$0xff]  }
  0xb8   : > { %v477_v32 = vsel %vm6933_vm5, %v472_v20, %v476_v2  ;;  %v1500_v34 = vor.u32 %v1499_v22, %v1495_v13  ;;  %v492_v36 = vshrl.u32 %v7253_v6, 16  ;;  %4293 = vmatprep.subr.bf16.mxu0 %v6493_v1  ;;  %v498_v28 = vshll.u32 %v229_v17, 16  ;;  %v6506_v17 = vld [vmem:[#allocation2 + $0x424] ss:$8 sps:$4 sm:$0xff]   ;;  %3736 = vmatprep.subr.bf16.mxu1 %v6502_v5  ;;  %v7333_v5 = vld [vmem:[%s6906_s9 + $0x48] sm:$0xf] }
  0xb9   : > { %v5480_v35 = vcombine.low %v467_v26, %v477_v32  ;;  %v481_v39 = vrot.slane %v479_v29, 4  ;;  %v484_v40 = vrot.slane %v482_v25, 5  ;;  %v490_v46 = vrot.slane %v488_v30, 5  ;;  %v7309_v29 = vld [vmem:[%s6906_s9 + $0x40] sm:$0xf] }
  0xba   : > { %v1496_v47 = vsel %vm6933_vm5, %v1491_v33, %v1495_v13  ;;  %v1501_v48 = vrot.slane %v1500_v34, 4  ;;  %v494_v27 = vrot.slane %v492_v36, 4  ;;  %v1508_v53 = vshrl.u32 %v7270_v37, 16  ;;  %v5410_v30 = vld [vmem:[%s6906_s9 + $0x44] sm:$0x1] }
  0xbb   : > { %3641 = vmatprep.mubr.bf16.mxu1 %v5480_v35  ;;  %v485_v50 = vor.u32 %v484_v40, %v481_v39  ;;  %v1511_v54 = vshll.u32 %v7270_v37, 16  ;;  %v1517_v55 = vshll.u32 %v7273_v38, 16  ;;  %4294 = vmatpush1.bf16.msra.mxu0 %v6491_v19  ;;  %v500_v61 = vrot.slane %v498_v28, 5  ;;  %v6508_v36 = vld [vmem:[#allocation2 + $0x1d0] ss:$8 sps:$4 sm:$0xff]  }
  0xbc   : > { %v1506_v58 = vsel %vm6933_vm5, %v1501_v48, %v1505_v49  ;;  %3642 = vmatmul.mubr.bf16.gmra.mrb[36].mxu1 %v5464_v14  ;;  %v495_v60 = vor.u32 %v494_v27, %v490_v46  ;;  %v1521_v62 = vshrl.u32 %v7273_v38, 16  ;;  %v1510_v3 = vrot.slane %v1508_v53, 4  ;;  %v230_v14 = vld [vmem:[%s6906_s9 + $0x8c] sm:$0x1]  ;;  %v7304_v49 = vld [vmem:[%s6906_s9 + $0x3c] sm:$0xf]  ;;  %4295 = vmatprep.subr.bf16.mxu0 %v6506_v17 }
  0xbd   : > { %v5568_v63 = vcombine.low %v1496_v47, %v1506_v58  ;;  %v486_v2 = vrot.slane %v485_v50, 4  ;;  %v1513_v4 = vrot.slane %v1511_v54, 5  ;;  %v1519_v8 = vrot.slane %v1517_v55, 5  ;;  %3737 = vmatpush1.bf16.msra.mxu1 %v6500_v51  ;;  %v6510_v40 = vld [vmem:[#allocation2 + $0x1d4] ss:$8 sps:$4 sm:$0xff]  }
  0xbe   : > { %v496_v24 = vrot.slane %v495_v60, 4  ;;  %v1523_v10 = vrot.slane %v1521_v62, 4  ;;  %v1527_v11 = vshll.u32 %v5409_v23, 16  ;;  %v5465_v12 = vcombine.low %v7250_v9, %v7253_v6  ;;  %v7321_v28 = vld [vmem:[%s6906_s9 + $0x90] sm:$0xf]  ;;  %3738 = vmatprep.subr.bf16.mxu1 %v6510_v40 }
  0xbf   : > { %4140 = vmatprep.mubr.bf16.mxu0 %v5568_v63  ;;  %v491_v45 = vsel %vm6933_vm5, %v486_v2, %v490_v46  ;;  %v1514_v1 = vor.u32 %v1513_v4, %v1510_v3  ;;  %v5553_v13 = vcombine.low %v7270_v37, %v7273_v38  ;;  %v503_v22 = vshrl.u32 %v7282_v57, 16  ;;  %4296 = vmatpush1.bf16.msra.mxu0 %v6504_v41  ;;  %v7325_v55 = vld [vmem:[%s6906_s9 + $0x94] sm:$0xf]  ;;  %v231_v51 = vld [vmem:[%s6906_s9 + $0x98] sm:$0x1] }
  0xc0   : > { %4141 = vmatmul.mubr.bf16.gmra.mrb[4].mxu0 %v5552_v15  ;;  %v501_v19 = vsel %vm6933_vm5, %v496_v24, %v500_v61  ;;  %v1524_v20 = vor.u32 %v1523_v10, %v1519_v8  ;;  %v1529_v21 = vrot.slane %v1527_v11, 5  ;;  %v506_v43 = vshll.u32 %v7282_v57, 16  ;;  %v7336_v24 = vld [vmem:[%s6906_s9 + $0x4c] sm:$0xf]  ;;  %v6513_v11 = vld [vmem:[#allocation2 + $0x1e0] ss:$8 sps:$4 sm:$0xff]  }
  0xc1   : > { %v5481_v9 = vcombine.low %v491_v45, %v501_v19  ;;  %v1515_v6 = vrot.slane %v1514_v1, 4  ;;  %v512_v26 = vshll.u32 %v7288_v42, 16  ;;  %v505_v56 = vrot.slane %v503_v22, 4  ;;  %3739 = vmatpush1.bf16.msra.mxu1 %v6508_v36  ;;  %v6519_v22 = vld [vmem:[#allocation2 + $0x434] ss:$8 sps:$4 sm:$0xff]  }
  0xc2   : > { %v1525_v44 = vrot.slane %v1524_v20, 4  ;;  %v516_v15 = vshrl.u32 %v7288_v42, 16  ;;  %v522_v25 = vshll.u32 %v230_v14, 16  ;;  %v508_v32 = vrot.slane %v506_v43, 5  ;;  %v6517_v14 = vld [vmem:[#allocation2 + $0x430] ss:$8 sps:$4 sm:$0xff]   ;;  %4297 = vmatprep.subr.bf16.mxu0 %v6519_v22 }
  0xc3   : > { %3651 = vmatprep.mubr.bf16.mxu1 %v5481_v9  ;;  %v1520_v31 = vsel %vm6933_vm5, %v1515_v6, %v1519_v8  ;;  %v514_v33 = vrot.slane %v512_v26, 5  ;;  %v1532_v34 = vshrl.u32 %v7304_v49, 16  ;;  %v1535_v39 = vshll.u32 %v7304_v49, 16  ;;  %4298 = vmatpush1.bf16.msra.mxu0 %v6517_v14 }
  0xc4   : > { %v1530_v37 = vsel %vm6933_vm5, %v1525_v44, %v1529_v21  ;;  %3652 = vmatmul.mubr.bf16.gmra.mrb[40].mxu1 %v5465_v12  ;;  %v518_v38 = vrot.slane %v516_v15, 4  ;;  %v524_v35 = vrot.slane %v522_v25, 5  ;;  %v509_v47 = vor.u32 %v508_v32, %v505_v56 }
  0xc5   : > { %v5569_v46 = vcombine.low %v1520_v31, %v1530_v37  ;;  %v1534_v48 = vrot.slane %v1532_v34, 4  ;;  %v1541_v27 = vshll.u32 %v7309_v29, 16  ;;  %v1537_v50 = vrot.slane %v1535_v39, 5 }
  0xc6   : > { %v519_v23 = vor.u32 %v518_v38, %v514_v33  ;;  %v1545_v53 = vshrl.u32 %v7309_v29, 16  ;;  %v1551_v54 = vshll.u32 %v5410_v30, 16  ;;  %v510_v58 = vrot.slane %v509_v47, 4  ;;  %v7356_v38 = vld [vmem:[%s6906_s9 + $0x9c] sm:$0xf] }
  0xc7   : > { %4150 = vmatprep.mubr.bf16.mxu0 %v5569_v46  ;;  %v1543_v60 = vrot.slane %v1541_v27, 5  ;;  %v5466_v61 = vcombine.low %v7282_v57, %v7288_v42  ;;  %v5554_v62 = vcombine.low %v7304_v49, %v7309_v29  ;;  %v1538_v2 = vor.u32 %v1537_v50, %v1534_v48  ;;  %v5411_v29 = vld [vmem:[%s6906_s9 + $0x50] sm:$0x1]  ;;  %v7359_v47 = vld [vmem:[%s6906_s9 + $0xa0] sm:$0xf] }
  0xc8   : > { %4151 = vmatmul.mubr.bf16.gmra.mrb[8].mxu0 %v5553_v13  ;;  %v520_v63 = vrot.slane %v519_v23, 4  ;;  %v1547_v3 = vrot.slane %v1545_v53, 4  ;;  %v1553_v4 = vrot.slane %v1551_v54, 5  ;;  %v515_v8 = vsel %vm6933_vm5, %v510_v58, %v514_v33  ;;  %v6515_v13 = vld [vmem:[#allocation2 + $0x1e4] ss:$8 sps:$4 sm:$0xff]  }
  0xc9   : > { %v527_v10 = vshrl.u32 %v7321_v28, 16  ;;  %v530_v57 = vshll.u32 %v7321_v28, 16  ;;  %v536_v42 = vshll.u32 %v7325_v55, 16  ;;  %v1539_v45 = vrot.slane %v1538_v2, 4  ;;  %3740 = vmatprep.subr.bf16.mxu1 %v6515_v13  ;;  %v232_v53 = vld [vmem:[%s6906_s9 + $0xa4] sm:$0x1] }
  0xca   : > { %v525_v41 = vsel %vm6933_vm5, %v520_v63, %v524_v35  ;;  %v1548_v1 = vor.u32 %v1547_v3, %v1543_v60  ;;  %v540_v12 = vshrl.u32 %v7325_v55, 16  ;;  %v546_v43 = vshll.u32 %v231_v51, 16  ;;  %3741 = vmatpush1.bf16.msra.mxu1 %v6513_v11  ;;  %v6521_v54 = vld [vmem:[#allocation2 + $0x1f0] ss:$8 sps:$4 sm:$0xff]   ;;  %v6523_v58 = vld [vmem:[#allocation2 + $0x1f4] ss:$8 sps:$4 sm:$0xff]  }
  0xcb   : > { %v5482_v17 = vcombine.low %v515_v8, %v525_v41  ;;  %v529_v19 = vrot.slane %v527_v10, 4  ;;  %v532_v20 = vrot.slane %v530_v57, 5  ;;  %v538_v21 = vrot.slane %v536_v42, 5  ;;  %v7372_v2 = vld [vmem:[%s6906_s9 + $0x54] sm:$0xf]  ;;  %3742 = vmatprep.subr.bf16.mxu1 %v6523_v58 }
  0xcc   : > { %v1544_v49 = vsel %vm6933_vm5, %v1539_v45, %v1543_v60  ;;  %v1549_v9 = vrot.slane %v1548_v1, 4  ;;  %v542_v6 = vrot.slane %v540_v12, 4  ;;  %v1556_v44 = vshrl.u32 %v7333_v5, 16  ;;  %v7375_v3 = vld [vmem:[%s6906_s9 + $0x58] sm:$0xf] }
  0xcd   : > { %3661 = vmatprep.mubr.bf16.mxu1 %v5482_v17  ;;  %v533_v26 = vor.u32 %v532_v20, %v529_v19  ;;  %v1559_v56 = vshll.u32 %v7333_v5, 16  ;;  %v1565_v15 = vshll.u32 %v7336_v24, 16  ;;  %v548_v31 = vrot.slane %v546_v43, 5  ;;  %v6527_v42 = vld [vmem:[#allocation2 + $0x440] ss:$8 sps:$4 sm:$0xff]  }
  0xce   : > { %v1554_v25 = vsel %vm6933_vm5, %v1549_v9, %v1553_v4  ;;  %3662 = vmatmul.mubr.bf16.gmra.mrb[44].mxu1 %v5466_v61  ;;  %v543_v30 = vor.u32 %v542_v6, %v538_v21  ;;  %v1569_v32 = vshrl.u32 %v7336_v24, 16  ;;  %v1558_v36 = vrot.slane %v1556_v44, 4  ;;  %v6561_v12 = vld [vmem:[#allocation2 + $0x204] ss:$8 sps:$4 sm:$0xff]   ;;  %v7389_v6 = vld [vmem:[%s6906_s9 + $0xa8] sm:$0xf] }
  0xcf   : > { %v5570_v33 = vcombine.low %v1544_v49, %v1554_v25  ;;  %v534_v34 = vrot.slane %v533_v26, 4  ;;  %v1561_v37 = vrot.slane %v1559_v56, 5  ;;  %v1567_v39 = vrot.slane %v1565_v15, 5  ;;  %3743 = vmatpush1.bf16.msra.mxu1 %v6521_v54  ;;  %v6529_v13 = vld [vmem:[#allocation2 + $0x444] ss:$8 sps:$4 sm:$0xff]  }
  0xd0   : > { %v544_v35 = vrot.slane %v543_v30, 4  ;;  %v1571_v40 = vrot.slane %v1569_v32, 4  ;;  %v1575_v46 = vshll.u32 %v5411_v29, 16  ;;  %v5467_v23 = vcombine.low %v7321_v28, %v7325_v55  ;;  %5921 = vmatprep.subr.bf16.mxu1 %v6561_v12  ;;  %4299 = vmatprep.subr.bf16.mxu0 %v6529_v13  ;;  %v7393_v56 = vld [vmem:[%s6906_s9 + $0xac] sm:$0xf] }
  0xd1   : > { %4160 = vmatprep.mubr.bf16.mxu0 %v5570_v33  ;;  %v539_v48 = vsel %vm6933_vm5, %v534_v34, %v538_v21  ;;  %v1562_v27 = vor.u32 %v1561_v37, %v1558_v36  ;;  %v5555_v50 = vcombine.low %v7333_v5, %v7336_v24  ;;  %v551_v63 = vshrl.u32 %v7356_v38, 16  ;;  %v5412_v24 = vld [vmem:[%s6906_s9 + $0x5c] sm:$0x1]  ;;  %4300 = vmatpush1.bf16.msra.mxu0 %v6527_v42  ;;  %v233_v32 = vld [vmem:[%s6906_s9 + $0xb0] sm:$0x1] }
  0xd2   : > { %4161 = vmatmul.mubr.bf16.gmra.mrb[12].mxu0 %v5554_v62  ;;  %v549_v60 = vsel %vm6933_vm5, %v544_v35, %v548_v31  ;;  %v1572_v61 = vor.u32 %v1571_v40, %v1567_v39  ;;  %v1577_v51 = vrot.slane %v1575_v46, 5  ;;  %v554_v4 = vshll.u32 %v7356_v38, 16  ;;  %v7401_v35 = vld [vmem:[%s6906_s9 + $0x60] sm:$0xf]  ;;  %v6536_v54 = vld [vmem:[#allocation2 + $0x454] ss:$8 sps:$4 sm:$0xff]  }
  0xd3   : > { %v5483_v28 = vcombine.low %v539_v48, %v549_v60  ;;  %v1563_v55 = vrot.slane %v1562_v27, 4  ;;  %v560_v5 = vshll.u32 %v7359_v47, 16  ;;  %v553_v8 = vrot.slane %v551_v63, 4  ;;  %4301 = vmatprep.subr.bf16.mxu0 %v6536_v54  ;;  %v7424_v12 = vld [vmem:[%s6906_s9 + $0xb4] sm:$0xf] }
  0xd4   : > { %v1573_v62 = vrot.slane %v1572_v61, 4  ;;  %v564_v10 = vshrl.u32 %v7359_v47, 16  ;;  %v570_v57 = vshll.u32 %v232_v53, 16  ;;  %v556_v41 = vrot.slane %v554_v4, 5  ;;  %v6534_v53 = vld [vmem:[#allocation2 + $0x450] ss:$8 sps:$4 sm:$0xff]  }
  0xd5   : > { %3671 = vmatprep.mubr.bf16.mxu1 %v5483_v28  ;;  %v1568_v11 = vsel %vm6933_vm5, %v1563_v55, %v1567_v39  ;;  %v562_v45 = vrot.slane %v560_v5, 5  ;;  %v1580_v1 = vshrl.u32 %v7372_v2, 16  ;;  %v1583_v20 = vshll.u32 %v7372_v2, 16  ;;  %v5413_v4 = vld [vmem:[%s6906_s9 + $0x68] sm:$0x1]  ;;  %4302 = vmatpush1.bf16.msra.mxu0 %v6534_v53 }
  0xd6   : > { %v1578_v14 = vsel %vm6933_vm5, %v1573_v62, %v1577_v51  ;;  %3672 = vmatmul.mubr.bf16.gmra.mrb[48].mxu1 %v5467_v23  ;;  %v566_v17 = vrot.slane %v564_v10, 4  ;;  %v572_v19 = vrot.slane %v570_v57, 5  ;;  %v557_v22 = vor.u32 %v556_v41, %v553_v8 }
  0xd7   : > { %v5571_v21 = vcombine.low %v1568_v11, %v1578_v14  ;;  %v1582_v49 = vrot.slane %v1580_v1, 4  ;;  %v1589_v9 = vshll.u32 %v7375_v3, 16  ;;  %v1585_v26 = vrot.slane %v1583_v20, 5  ;;  %v7427_v20 = vld [vmem:[%s6906_s9 + $0xb8] sm:$0xf] }
  0xd8   : > { %v567_v43 = vor.u32 %v566_v17, %v562_v45  ;;  %v1593_v29 = vshrl.u32 %v7375_v3, 16  ;;  %v1599_v44 = vshll.u32 %v5412_v24, 16  ;;  %v558_v15 = vrot.slane %v557_v22, 4 }
  0xd9   : > { %4170 = vmatprep.mubr.bf16.mxu0 %v5571_v21  ;;  %v1591_v25 = vrot.slane %v1589_v9, 5  ;;  %v5468_v30 = vcombine.low %v7356_v38, %v7359_v47  ;;  %v5556_v31 = vcombine.low %v7372_v2, %v7375_v3  ;;  %v1586_v34 = vor.u32 %v1585_v26, %v1582_v49  ;;  %v7409_v47 = vld [vmem:[%s6906_s9 + $0x64] sm:$0xf]  ;;  %v6541_v26 = vld [vmem:[#allocation2 + $0x460] ss:$8 sps:$4 sm:$0xff]  }
  0xda   : > { %4171 = vmatmul.mubr.bf16.gmra.mrb[16].mxu0 %v5555_v50  ;;  %v568_v33 = vrot.slane %v567_v43, 4  ;;  %v1595_v36 = vrot.slane %v1593_v29, 4  ;;  %v1601_v37 = vrot.slane %v1599_v44, 5  ;;  %v563_v39 = vsel %vm6933_vm5, %v558_v15, %v562_v45  ;;  %v234_v43 = vld [vmem:[%s6906_s9 + $0xbc] sm:$0x1] }
  0xdb   : > { %v575_v40 = vshrl.u32 %v7389_v6, 16  ;;  %v578_v46 = vshll.u32 %v7389_v6, 16  ;;  %v584_v38 = vshll.u32 %v7393_v56, 16  ;;  %v1587_v27 = vrot.slane %v1586_v34, 4  ;;  %v6543_v29 = vld [vmem:[#allocation2 + $0x464] ss:$8 sps:$4 sm:$0xff]  }
  0xdc   : > { %v573_v48 = vsel %vm6933_vm5, %v568_v33, %v572_v19  ;;  %v1596_v23 = vor.u32 %v1595_v36, %v1591_v25  ;;  %v588_v50 = vshrl.u32 %v7393_v56, 16  ;;  %v594_v28 = vshll.u32 %v233_v32, 16  ;;  %v7440_v32 = vld [vmem:[%s6906_s9 + $0x6c] sm:$0xf]  ;;  %4303 = vmatprep.subr.bf16.mxu0 %v6543_v29 }
  0xdd   : > { %v5484_v58 = vcombine.low %v563_v39, %v573_v48  ;;  %v577_v60 = vrot.slane %v575_v40, 4  ;;  %v580_v61 = vrot.slane %v578_v46, 5  ;;  %v586_v51 = vrot.slane %v584_v38, 5  ;;  %v7446_v39 = vld [vmem:[%s6906_s9 + $0x70] sm:$0xf]  ;;  %4304 = vmatpush1.bf16.msra.mxu0 %v6541_v26 }
  0xde   : > { %v1592_v63 = vsel %vm6933_vm5, %v1587_v27, %v1591_v25  ;;  %v1597_v2 = vrot.slane %v1596_v23, 4  ;;  %v590_v3 = vrot.slane %v588_v50, 4  ;;  %v1604_v5 = vshrl.u32 %v7401_v35, 16 }
  0xdf   : > { %3681 = vmatprep.mubr.bf16.mxu1 %v5484_v58  ;;  %v581_v55 = vor.u32 %v580_v61, %v577_v60  ;;  %v1607_v24 = vshll.u32 %v7401_v35, 16  ;;  %v1613_v62 = vshll.u32 %v7409_v47, 16  ;;  %v596_v57 = vrot.slane %v594_v28, 5 }
  0xe0   : > { %v1602_v8 = vsel %vm6933_vm5, %v1597_v2, %v1601_v37  ;;  %3682 = vmatmul.mubr.bf16.gmra.mrb[52].mxu1 %v5468_v30  ;;  %v591_v10 = vor.u32 %v590_v3, %v586_v51  ;;  %v1617_v42 = vshrl.u32 %v7409_v47, 16  ;;  %v1606_v45 = vrot.slane %v1604_v5, 4 }
  0xe1   : > { %v5572_v11 = vcombine.low %v1592_v63, %v1602_v8  ;;  %v582_v41 = vrot.slane %v581_v55, 4  ;;  %v1609_v1 = vrot.slane %v1607_v24, 5  ;;  %v1615_v14 = vrot.slane %v1613_v62, 5  ;;  %v6548_v55 = vld [vmem:[#allocation2 + $0x470] ss:$8 sps:$4 sm:$0xff]  }
  0xe2   : > { %v592_v13 = vrot.slane %v591_v10, 4  ;;  %v1619_v17 = vrot.slane %v1617_v42, 4  ;;  %v1623_v19 = vshll.u32 %v5413_v4, 16  ;;  %v5469_v49 = vcombine.low %v7389_v6, %v7393_v56  ;;  %v7463_v62 = vld [vmem:[%s6906_s9 + $0x7c] sm:$0xf] }
  0xe3   : > { %4180 = vmatprep.mubr.bf16.mxu0 %v5572_v11  ;;  %v587_v21 = vsel %vm6933_vm5, %v582_v41, %v586_v51  ;;  %v1610_v22 = vor.u32 %v1609_v1, %v1606_v45  ;;  %v5557_v9 = vcombine.low %v7401_v35, %v7409_v47  ;;  %v599_v30 = vshrl.u32 %v7424_v12, 16  ;;  %v5414_v47 = vld [vmem:[%s6906_s9 + $0x74] sm:$0x1]  ;;  %v7457_v51 = vld [vmem:[%s6906_s9 + $0x78] sm:$0xf] }
  0xe4   : > { %4181 = vmatmul.mubr.bf16.gmra.mrb[20].mxu0 %v5556_v31  ;;  %v597_v44 = vsel %vm6933_vm5, %v592_v13, %v596_v57  ;;  %v1620_v15 = vor.u32 %v1619_v17, %v1615_v14  ;;  %v1625_v25 = vrot.slane %v1623_v19, 5  ;;  %v602_v56 = vshll.u32 %v7424_v12, 16  ;;  %v6550_v8 = vld [vmem:[#allocation2 + $0x474] ss:$8 sps:$4 sm:$0xff]   ;;  %v6562_v45 = vld [vmem:[%s6906_s9 + $0x10] sm:$0xf] }
  0xe5   : > { %v5485_v33 = vcombine.low %v587_v21, %v597_v44  ;;  %v1611_v6 = vrot.slane %v1610_v22, 4  ;;  %v608_v34 = vshll.u32 %v7427_v20, 16  ;;  %v601_v37 = vrot.slane %v599_v30, 4  ;;  %v6563_v1 = vld [vmem:[%s6906_s9 + $0xc] sm:$0xf]  ;;  %4305 = vmatprep.subr.bf16.mxu0 %v6550_v8 }
  0xe6   : > { %v1621_v36 = vrot.slane %v1620_v15, 4  ;;  %v612_v31 = vshrl.u32 %v7427_v20, 16  ;;  %v618_v35 = vshll.u32 %v234_v43, 16  ;;  %v604_v46 = vrot.slane %v602_v56, 5  ;;  %4306 = vmatpush1.bf16.msra.mxu0 %v6548_v55  ;;  %v7478_v44 = vld [vmem:[%s6906_s9 + $0x84] sm:$0xf] }
  0xe7   : > { %3691 = vmatprep.mubr.bf16.mxu1 %v5485_v33  ;;  %v1616_v40 = vsel %vm6933_vm5, %v1611_v6, %v1615_v14  ;;  %v610_v38 = vrot.slane %v608_v34, 5  ;;  %v1628_v48 = vshrl.u32 %v7440_v32, 16  ;;  %v1631_v53 = vshll.u32 %v7440_v32, 16  ;;  %v5415_v14 = vld [vmem:[%s6906_s9 + $0x80] sm:$0x1] }
  0xe8   : > { %v1626_v27 = vsel %vm6933_vm5, %v1621_v36, %v1625_v25  ;;  %3692 = vmatmul.mubr.bf16.gmra.mrb[56].mxu1 %v5469_v49  ;;  %v614_v23 = vrot.slane %v612_v31, 4  ;;  %v620_v50 = vrot.slane %v618_v35, 5  ;;  %v605_v58 = vor.u32 %v604_v46, %v601_v37  ;;  %v622_v49 = vld [vmem:[%s6906_s9] sm:$0xe]  ;;  %v7483_v36 = vld [vmem:[%s6906_s9 + $0x88] sm:$0xf] }
  0xe9   : > { %v5573_v54 = vcombine.low %v1616_v40, %v1626_v27  ;;  %v1630_v60 = vrot.slane %v1628_v48, 4  ;;  %v1637_v61 = vshll.u32 %v7446_v39, 16  ;;  %v1633_v2 = vrot.slane %v1631_v53, 5  ;;  %v5416_v40 = vld [vmem:[%s6906_s9 + $0x8c] sm:$0x1] }
  0xea   : > { %v615_v63 = vor.u32 %v614_v23, %v610_v38  ;;  %v1641_v3 = vshrl.u32 %v7446_v39, 16  ;;  %v1647_v28 = vshll.u32 %v5414_v47, 16  ;;  %v606_v4 = vrot.slane %v605_v58, 4  ;;  %v623_v23 = vld [vmem:[%s6906_s9 + $0xc] sm:$0xe] }
  0xeb   : > { %4190 = vmatprep.mubr.bf16.mxu0 %v5573_v54  ;;  %v1639_v5 = vrot.slane %v1637_v61, 5  ;;  %v5470_v24 = vcombine.low %v7424_v12, %v7427_v20  ;;  %v1634_v57 = vor.u32 %v1633_v2, %v1630_v60  ;;  %v5503_v13 = vcombine.low %v6563_v1, %v6562_v45  ;;  %v6565_v55 = vld [vmem:[%s6906_s9 + $0x1c] sm:$0xf]  ;;  %v6567_v8 = vld [vmem:[%s6906_s9 + $0x14] sm:$0x1] }
  0xec   : > { %4191 = vmatmul.mubr.bf16.gmra.mrb[24].mxu0 %v5557_v9  ;;  %v616_v10 = vrot.slane %v615_v63, 4  ;;  %v1643_v42 = vrot.slane %v1641_v3, 4  ;;  %v1649_v11 = vrot.slane %v1647_v28, 5  ;;  %v611_v41 = vsel %vm6933_vm5, %v606_v4, %v610_v38  ;;  %v6564_v63 = vld [vmem:[%s6906_s9 + $0x10] sm:$0xf] }
  0xed   : > { %v1652_v17 = vshrl.u32 %v7457_v51, 16  ;;  %v1655_v12 = vshll.u32 %v7457_v51, 16  ;;  %v1635_v20 = vrot.slane %v1634_v57, 4  ;;  %v1661_v22 = vshll.u32 %v7463_v62, 16  ;;  %v7504_v3 = vld [vmem:[%s6906_s9 + $0x90] sm:$0xf] }
  0xee   : > { %v621_v19 = vsel %vm6933_vm5, %v616_v10, %v620_v50  ;;  %v1644_v21 = vor.u32 %v1643_v42, %v1639_v5  ;;  %v1665_v29 = vshrl.u32 %v7463_v62, 16  ;;  %v1671_v33 = vshll.u32 %v5415_v14, 16  ;;  %v6566_v4 = vld [vmem:[%s6906_s9 + $0x18] sm:$0xf]  ;;  %v7512_v57 = vld [vmem:[%s6906_s9 + $0x94] sm:$0xf] }
  0xef   : > { %v5486_v9 = vcombine.low %v611_v41, %v621_v19  ;;  %v1654_v43 = vrot.slane %v1652_v17, 4  ;;  %v1657_v26 = vrot.slane %v1655_v12, 5  ;;  %v1640_v15 = vsel %vm6933_vm5, %v1635_v20, %v1639_v5  ;;  %v5417_v14 = vld [vmem:[%s6906_s9 + $0x98] sm:$0x1] }
  0xf0   : > { %v1645_v25 = vrot.slane %v1644_v21, 4  ;;  %v1663_v30 = vrot.slane %v1661_v22, 5  ;;  %v1667_v56 = vrot.slane %v1665_v29, 4  ;;  %v5279_v34 = vrot.slane %v622_v49, 9  ;;  %v624_v22 = vld [vmem:[%s6906_s9 + $0x18] sm:$0xe] }
  0xf1   : > { %3701 = vmatprep.mubr.bf16.mxu1 %v5486_v9  ;;  %v1658_v6 = vor.u32 %v1657_v26, %v1654_v43  ;;  %v5558_v31 = vcombine.low %v7440_v32, %v7446_v39  ;;  %v1673_v35 = vrot.slane %v1671_v33, 5  ;;  %v1676_v46 = vshrl.u32 %v7478_v44, 16  ;;  %v6568_v49 = vld [vmem:[#allocation2 + $0x200] ss:$8 sps:$4 sm:$0xff]   ;;  %v6569_v29 = vld [vmem:[#allocation2 + $0x214] ss:$8 sps:$4 sm:$0xff]  }
  0xf2   : > { %v1650_v37 = vsel %vm6933_vm5, %v1645_v25, %v1649_v11  ;;  %3702 = vmatmul.mubr.bf16.gmra.mrb[60].mxu1 %v5470_v24  ;;  %v1668_v48 = vor.u32 %v1667_v56, %v1663_v30  ;;  %v692_v27 = vsel %vm6924_vm4, %v5279_v34, %v691_v59  ;;  %v1679_v32 = vshll.u32 %v7478_v44, 16  ;;  %v6570_v34 = vld [vmem:[%s6906_s9 + $0x1c] sm:$0xf] }
  0xf3   : > { %v5574_v38 = vcombine.low %v1640_v15, %v1650_v37  ;;  %3744 = vmatprep.mubr.bf16.mxu1 %v5503_v13  ;;  %v1659_v47 = vrot.slane %v1658_v6, 4  ;;  %v5487_v50 = vcombine.low %v692_v27, %v6939_v18  ;;  %v1678_v53 = vrot.slane %v1676_v46, 4  ;;  %v6572_v27 = vld [vmem:[#allocation2 + $0x210] ss:$8 sps:$4 sm:$0xff]  }
  0xf4   : > { %v1685_v39 = vshll.u32 %v7483_v36, 16  ;;  %v1669_v52 = vrot.slane %v1668_v48, 4  ;;  %v1689_v58 = vshrl.u32 %v7483_v36, 16  ;;  %v1695_v59 = vshll.u32 %v5416_v40, 16  ;;  %v7536_v48 = vld [vmem:[%s6906_s9 + $0xa0] sm:$0xf] }
  0xf5   : > { %4200 = vmatprep.mubr.bf16.mxu0 %v5574_v38  ;;  %v1664_v54 = vsel %vm6933_vm5, %v1659_v47, %v1663_v30  ;;  %v1681_v60 = vrot.slane %v1679_v32, 5  ;;  %v5280_v61 = vrot.slane %v623_v23, 9  ;;  %v698_v2 = vrot.slane %v6564_v63, 5  ;;  %v6571_v38 = vld [vmem:[%s6906_s9 + $0x20] sm:$0x1] }
  0xf6   : > { %4201 = vmatmul.mubr.bf16.gmra.mrb[28].mxu0 %v5558_v31  ;;  %v1687_v18 = vrot.slane %v1685_v39, 5  ;;  %v1674_v28 = vsel %vm6933_vm5, %v1669_v52, %v1673_v35  ;;  %v5504_v5 = vcombine.low %v6566_v4, %v6565_v55  ;;  %v1691_v24 = vrot.slane %v1689_v58, 4  ;;  %v7532_v31 = vld [vmem:[%s6906_s9 + $0x9c] sm:$0xf]  ;;  %v6573_v23 = vld [vmem:[%s6906_s9 + $0x28] sm:$0xf] }
  0xf7   : > { %v701_v10 = vrot.slane %v6567_v8, 5  ;;  %v5575_v42 = vcombine.low %v1664_v54, %v1674_v28  ;;  %v1682_v11 = vor.u32 %v1681_v60, %v1678_v53  ;;  %v700_v41 = vrot.slane %v698_v2, 4  ;;  %v5418_v60 = vld [vmem:[%s6906_s9 + $0xa4] sm:$0x1]  ;;  %v625_v4 = vld [vmem:[%s6906_s9 + $0x24] sm:$0xe] }
  0xf8   : > { %v5559_v45 = vcombine.low %v7457_v51, %v7463_v62  ;;  %v1692_v1 = vor.u32 %v1691_v24, %v1687_v18  ;;  %v1697_v13 = vrot.slane %v1695_v59, 5  ;;  %v1700_v17 = vshrl.u32 %v7504_v3, 16  ;;  %v6575_v59 = vld [vmem:[#allocation2 + $0x224] ss:$8 sps:$4 sm:$0xff]  }
  0xf9   : > { %4210 = vmatprep.mubr.bf16.mxu0 %v5575_v42  ;;  %v1683_v12 = vrot.slane %v1682_v11, 4  ;;  %v699_v19 = vsel %vm6924_vm4, %v5280_v61, %v698_v2  ;;  %v1703_v20 = vshll.u32 %v7504_v3, 16  ;;  %v1709_v21 = vshll.u32 %v7512_v57, 16 }
  0xfa   : > { %3745 = vmatmul.mubr.bf16.vlgmr.msra.gmra.mrb[0].mxu1 %v5487_v50  ;;  %v1693_v51 = vrot.slane %v1692_v1, 4  ;;  %v702_v62 = vsel %vm6924_vm4, %v700_v41, %v701_v10  ;;  %v1702_v9 = vrot.slane %v1700_v17, 4  ;;  %v1713_v43 = vshrl.u32 %v7512_v57, 16  ;;  %v6574_v50 = vld [vmem:[%s6906_s9 + $0x24] sm:$0xf] }
  0xfb   : > { %5937 = vmatpush1.bf16.msra.mxu1 %v6568_v49  ;;  %3754 = vmatprep.mubr.bf16.mxu1 %v5504_v5  ;;  %v1688_v26 = vsel %vm6933_vm5, %v1683_v12, %v1687_v18  ;;  %v1705_v15 = vrot.slane %v1703_v20, 5  ;;  %v1711_v25 = vrot.slane %v1709_v21, 5  ;;  %v1719_v30 = vshll.u32 %v5417_v14, 16  ;;  %v6576_v10 = vld [vmem:[#allocation2 + $0x220] ss:$8 sps:$4 sm:$0xff]  }
  0xfc   : > { %5922 = vmatprep.subr.bf16.mxu1 %v6569_v29  ;;  %v1698_v33 = vsel %vm6933_vm5, %v1693_v51, %v1697_v13  ;;  %v1715_v6 = vrot.slane %v1713_v43, 4  ;;  %v5281_v56 = vrot.slane %v624_v22, 9  ;;  %v705_v37 = vrot.slane %v6570_v34, 5  ;;  %v6577_v14 = vld [vmem:[%s6906_s9 + $0x28] sm:$0xf] }
  0xfd   : > { %v5576_v35 = vcombine.low %v1688_v26, %v1698_v33  ;;  %v5488_v40 = vcombine.low %v699_v19, %v702_v62  ;;  %v1706_v46 = vor.u32 %v1705_v15, %v1702_v9  ;;  %v708_v47 = vrot.slane %v6571_v38, 5  ;;  %v6578_v12 = vld [vmem:[#allocation2 + $0x234] ss:$8 sps:$4 sm:$0xff]   ;;  %v7558_v19 = vld [vmem:[%s6906_s9 + $0xa8] sm:$0xf] }
  0xfe   : > { %4211 = vmatmul.mubr.bf16.gmra.mrb[32].mxu0 %v5559_v45  ;;  %v5505_v53 = vcombine.low %v6574_v50, %v6573_v23  ;;  %v1716_v32 = vor.u32 %v1715_v6, %v1711_v25  ;;  %v1721_v39 = vrot.slane %v1719_v30, 5  ;;  %v707_v54 = vrot.slane %v705_v37, 4  ;;  %v7561_v20 = vld [vmem:[%s6906_s9 + $0xac] sm:$0xf]  ;;  %v6579_v21 = vld [vmem:[%s6906_s9 + $0x34] sm:$0xf] }
  0xff   : > { %5938 = vmatpush1.bf16.msra.mxu1 %v6572_v27  ;;  %4220 = vmatprep.mubr.bf16.mxu0 %v5576_v35  ;;  %v5560_v52 = vcombine.low %v7478_v44, %v7483_v36  ;;  %v1707_v58 = vrot.slane %v1706_v46, 4  ;;  %v1724_v18 = vshrl.u32 %v7532_v31, 16  ;;  %v1727_v61 = vshll.u32 %v7532_v31, 16  ;;  %v6580_v22 = vld [vmem:[%s6906_s9 + $0x30] sm:$0xf] }
 0x100   : > { %5923 = vmatprep.subr.bf16.mxu1 %v6575_v59  ;;  %v1717_v63 = vrot.slane %v1716_v32, 4  ;;  %v706_v2 = vsel %vm6924_vm4, %v5281_v56, %v705_v37  ;;  %v1733_v28 = vshll.u32 %v7536_v48, 16  ;;  %v1737_v55 = vshrl.u32 %v7536_v48, 16  ;;  %v6581_v9 = vld [vmem:[%s6906_s9 + $0x2c] sm:$0x1] }
 0x101   : > { %v1712_v44 = vsel %vm6933_vm5, %v1707_v58, %v1711_v25  ;;  %v709_v36 = vsel %vm6924_vm4, %v707_v54, %v708_v47  ;;  %v1726_v5 = vrot.slane %v1724_v18, 4  ;;  %v1729_v24 = vrot.slane %v1727_v61, 5  ;;  %v5419_v26 = vld [vmem:[%s6906_s9 + $0xb0] sm:$0x1]  ;;  %v6583_v47 = vld [vmem:[#allocation2 + $0x244] ss:$8 sps:$4 sm:$0xff]  }
 0x102   : > { %3755 = vmatmul.mubr.bf16.gmra.mrb[4].mxu1 %v5488_v40  ;;  %v1722_v8 = vsel %vm6933_vm5, %v1717_v63, %v1721_v39  ;;  %v1735_v42 = vrot.slane %v1733_v28, 5  ;;  %v1739_v11 = vrot.slane %v1737_v55, 4  ;;  %v1743_v41 = vshll.u32 %v5418_v60, 16  ;;  %v6582_v6 = vld [vmem:[#allocation2 + $0x230] ss:$8 sps:$4 sm:$0xff]  }
 0x103   : > { %3764 = vmatprep.mubr.bf16.mxu1 %v5505_v53  ;;  %5939 = vmatpush1.bf16.msra.mxu1 %v6576_v10  ;;  %v5577_v45 = vcombine.low %v1712_v44, %v1722_v8  ;;  %v1730_v1 = vor.u32 %v1729_v24, %v1726_v5  ;;  %v5282_v13 = vrot.slane %v625_v4, 9  ;;  %v712_v17 = vrot.slane %v6577_v14, 5  ;;  %v626_v53 = vld [vmem:[%s6906_s9 + $0x30] sm:$0xe]  ;;  %v7583_v32 = vld [vmem:[%s6906_s9 + $0xb4] sm:$0xf] }
 0x104   : > { %5924 = vmatprep.subr.bf16.mxu1 %v6578_v12  ;;  %v5506_v49 = vcombine.low %v6580_v22, %v6579_v21  ;;  %v1740_v51 = vor.u32 %v1739_v11, %v1735_v42  ;;  %v1745_v62 = vrot.slane %v1743_v41, 5  ;;  %v715_v43 = vrot.slane %v6581_v9, 5  ;;  %v6584_v18 = vld [vmem:[%s6906_s9 + $0x34] sm:$0xf]  ;;  %v6585_v63 = vld [vmem:[#allocation2 + $0x240] ss:$8 sps:$4 sm:$0xff]  }
 0x105   : > { %v5489_v29 = vcombine.low %v706_v2, %v709_v36  ;;  %v1731_v15 = vrot.slane %v1730_v1, 4  ;;  %v7569_v25 = vsel %vm6924_vm4, %v5282_v13, %v712_v17  ;;  %v714_v30 = vrot.slane %v712_v17, 4  ;;  %v7590_v2 = vld [vmem:[%s6906_s9 + $0xb8] sm:$0xf]  ;;  %v5420_v44 = vld [vmem:[%s6906_s9 + $0xbc] sm:$0x1] }
 0x106   : > { %4221 = vmatmul.mubr.bf16.gmra.mrb[36].mxu0 %v5560_v52  ;;  %v1741_v33 = vrot.slane %v1740_v51, 4  ;;  %v1748_v56 = vshrl.u32 %v7558_v19, 16  ;;  %v1751_v34 = vshll.u32 %v7558_v19, 16  ;;  %v1757_v37 = vshll.u32 %v7561_v20, 16  ;;  %v6587_v24 = vld [vmem:[%s6906_s9 + $0x38] sm:$0x1] }
 0x107   : > { %4230 = vmatprep.mubr.bf16.mxu0 %v5577_v45  ;;  %5940 = vmatpush1.bf16.msra.mxu1 %v6582_v6  ;;  %v1736_v35 = vsel %vm6933_vm5, %v1731_v15, %v1735_v42  ;;  %v716_v40 = vsel %vm6924_vm4, %v714_v30, %v715_v43  ;;  %v1761_v46 = vshrl.u32 %v7561_v20, 16  ;;  %v1767_v38 = vshll.u32 %v5419_v26, 16  ;;  %v6588_v1 = vld [vmem:[%s6906_s9 + $0x40] sm:$0xf]  ;;  %v6589_v13 = vld [vmem:[%s6906_s9 + $0x3c] sm:$0xf] }
 0x108   : > { %5925 = vmatprep.subr.bf16.mxu1 %v6583_v47  ;;  %v1746_v27 = vsel %vm6933_vm5, %v1741_v33, %v1745_v62  ;;  %v1750_v23 = vrot.slane %v1748_v56, 4  ;;  %v1753_v50 = vrot.slane %v1751_v34, 5  ;;  %v5561_v39 = vcombine.low %v7504_v3, %v7512_v57  ;;  %v6586_v57 = vld [vmem:[#allocation2 + $0x254] ss:$8 sps:$4 sm:$0xff]   ;;  %v6590_v22 = vld [vmem:[#allocation2 + $0x250] ss:$8 sps:$4 sm:$0xff]  }
 0x109   : > { %v1759_v54 = vrot.slane %v1757_v37, 5  ;;  %v1763_v52 = vrot.slane %v1761_v46, 4  ;;  %v5578_v58 = vcombine.low %v1736_v35, %v1746_v27  ;;  %v5490_v59 = vcombine.low %v7569_v25, %v716_v40  ;;  %v7605_v9 = vld [vmem:[%s6906_s9 + $0xc0] sm:$0xf]  ;;  %v6591_v43 = vld [vmem:[#allocation2 + $0x264] ss:$8 sps:$4 sm:$0xff]  }
 0x10a   : > { %3765 = vmatmul.mubr.bf16.gmra.mrb[8].mxu1 %v5489_v29  ;;  %v1754_v60 = vor.u32 %v1753_v50, %v1750_v23  ;;  %v719_v61 = vrot.slane %v6584_v18, 5  ;;  %v1769_v55 = vrot.slane %v1767_v38, 5  ;;  %v5283_v4 = vrot.slane %v626_v53, 9  ;;  %v7612_v25 = vld [vmem:[%s6906_s9 + $0xc4] sm:$0xf] }
 0x10b   : > { %3774 = vmatprep.mubr.bf16.mxu1 %v5506_v49  ;;  %5941 = vmatpush1.bf16.msra.mxu1 %v6585_v63  ;;  %v1764_v28 = vor.u32 %v1763_v52, %v1759_v54  ;;  %v1772_v3 = vshrl.u32 %v7583_v32, 16  ;;  %v722_v8 = vrot.slane %v6587_v24, 5  ;;  %v1775_v10 = vshll.u32 %v7583_v32, 16  ;;  %v627_v56 = vld [vmem:[%s6906_s9 + $0x3c] sm:$0xe] }
 0x10c   : > { %5926 = vmatprep.subr.bf16.mxu1 %v6586_v57  ;;  %v1755_v36 = vrot.slane %v1754_v60, 4  ;;  %v721_v5 = vrot.slane %v719_v61, 4  ;;  %v1781_v41 = vshll.u32 %v7590_v2, 16  ;;  %v1785_v45 = vshrl.u32 %v7590_v2, 16  ;;  %v6592_v34 = vld [vmem:[%s6906_s9 + $0x40] sm:$0xf] }
 0x10d   : > { %v1765_v42 = vrot.slane %v1764_v28, 4  ;;  %v1774_v11 = vrot.slane %v1772_v3, 4  ;;  %v5507_v14 = vcombine.low %v6589_v13, %v6588_v1  ;;  %v1777_v12 = vrot.slane %v1775_v10, 5  ;;  %v6593_v46 = vld [vmem:[#allocation2 + $0x260] ss:$8 sps:$4 sm:$0xff]  }
 0x10e   : > { %4231 = vmatmul.mubr.bf16.gmra.mrb[40].mxu0 %v5561_v39  ;;  %v1760_v17 = vsel %vm6933_vm5, %v1755_v36, %v1759_v54  ;;  %v1791_v21 = vshll.u32 %v5420_v44, 16  ;;  %v1783_v51 = vrot.slane %v1781_v41, 5  ;;  %v1787_v62 = vrot.slane %v1785_v45, 4  ;;  %v6594_v38 = vld [vmem:[%s6906_s9 + $0x4c] sm:$0xf] }
 0x10f   : > { %4240 = vmatprep.mubr.bf16.mxu0 %v5578_v58  ;;  %5942 = vmatpush1.bf16.msra.mxu1 %v6590_v22  ;;  %v1770_v49 = vsel %vm6933_vm5, %v1765_v42, %v1769_v55  ;;  %v5562_v26 = vcombine.low %v7532_v31, %v7536_v48  ;;  %v720_v29 = vsel %vm6924_vm4, %v5283_v4, %v719_v61  ;;  %v726_v37 = vrot.slane %v6592_v34, 5  ;;  %v6595_v47 = vld [vmem:[%s6906_s9 + $0x48] sm:$0xf]  ;;  %v6596_v53 = vld [vmem:[#allocation2 + $0x274] ss:$8 sps:$4 sm:$0xff]  }
 0x110   : > { %5927 = vmatprep.subr.bf16.mxu1 %v6591_v43  ;;  %v1778_v15 = vor.u32 %v1777_v12, %v1774_v11  ;;  %v5579_v30 = vcombine.low %v1760_v17, %v1770_v49  ;;  %v723_v33 = vsel %vm6924_vm4, %v721_v5, %v722_v8  ;;  %v1788_v6 = vor.u32 %v1787_v62, %v1783_v51  ;;  %v5421_v54 = vld [vmem:[%s6906_s9 + $0xc8] sm:$0x1]  ;;  %v6597_v61 = vld [vmem:[%s6906_s9 + $0x44] sm:$0x1]  ;;  %v7633_v57 = vld [vmem:[%s6906_s9 + $0xcc] sm:$0xf] }
 0x111   : > { %v1793_v48 = vrot.slane %v1791_v21, 5  ;;  %v1796_v35 = vshrl.u32 %v7605_v9, 16  ;;  %v1799_v40 = vshll.u32 %v7605_v9, 16  ;;  %v5508_v27 = vcombine.low %v6595_v47, %v6594_v38  ;;  %v6598_v36 = vld [vmem:[#allocation2 + $0x270] ss:$8 sps:$4 sm:$0xff]  }
 0x112   : > { %3775 = vmatmul.mubr.bf16.gmra.mrb[12].mxu1 %v5490_v59  ;;  %v1779_v31 = vrot.slane %v1778_v15, 4  ;;  %v1789_v23 = vrot.slane %v1788_v6, 4  ;;  %v1805_v50 = vshll.u32 %v7612_v25, 16  ;;  %v5284_v39 = vrot.slane %v627_v56, 9  ;;  %v7636_v24 = vld [vmem:[%s6906_s9 + $0xd0] sm:$0xf] }
 0x113   : > { %3784 = vmatprep.mubr.bf16.mxu1 %v5507_v14  ;;  %5943 = vmatpush1.bf16.msra.mxu1 %v6593_v46  ;;  %v1798_v52 = vrot.slane %v1796_v35, 4  ;;  %v1801_v58 = vrot.slane %v1799_v40, 5  ;;  %v1809_v59 = vshrl.u32 %v7612_v25, 16  ;;  %v5491_v60 = vcombine.low %v720_v29, %v723_v33  ;;  %v6599_v8 = vld [vmem:[#allocation2 + $0x284] ss:$8 sps:$4 sm:$0xff]  }
 0x114   : > { %5928 = vmatprep.subr.bf16.mxu1 %v6596_v53  ;;  %v728_v18 = vrot.slane %v726_v37, 4  ;;  %v729_v63 = vrot.slane %v6597_v61, 5  ;;  %v7626_v28 = vrot.slane %v1805_v50, 5  ;;  %v1784_v55 = vsel %vm6933_vm5, %v1779_v31, %v1783_v51  ;;  %v6600_v17 = vld [vmem:[%s6906_s9 + $0x4c] sm:$0xf] }
 0x115   : > { %v1794_v4 = vsel %vm6933_vm5, %v1789_v23, %v1793_v48  ;;  %v1802_v44 = vor.u32 %v1801_v58, %v1798_v52  ;;  %v1811_v3 = vrot.slane %v1809_v59, 4  ;;  %v1815_v5 = vshll.u32 %v5421_v54, 16  ;;  %v6601_v21 = vld [vmem:[#allocation2 + $0x280] ss:$8 sps:$4 sm:$0xff]   ;;  %v5422_v29 = vld [vmem:[%s6906_s9 + $0xd4] sm:$0x1] }
 0x116   : > { %4241 = vmatmul.mubr.bf16.gmra.mrb[44].mxu0 %v5562_v26  ;;  %v5563_v10 = vcombine.low %v7558_v19, %v7561_v20  ;;  %v727_v42 = vsel %vm6924_vm4, %v5284_v39, %v726_v37  ;;  %v5580_v41 = vcombine.low %v1784_v55, %v1794_v4  ;;  %v730_v45 = vsel %vm6924_vm4, %v728_v18, %v729_v63  ;;  %v628_v51 = vld [vmem:[%s6906_s9 + $0x48] sm:$0xe]  ;;  %v6602_v26 = vld [vmem:[#allocation2 + $0x294] ss:$8 sps:$4 sm:$0xff]   ;;  %v6604_v56 = vld [vmem:[%s6906_s9 + $0x58] sm:$0xf] }
 0x117   : > { %4250 = vmatprep.mubr.bf16.mxu0 %v5579_v30  ;;  %5944 = vmatpush1.bf16.msra.mxu1 %v6598_v36  ;;  %v1812_v11 = vor.u32 %v1811_v3, %v7626_v28  ;;  %v1820_v1 = vshrl.u32 %v7633_v57, 16  ;;  %v1823_v13 = vshll.u32 %v7633_v57, 16  ;;  %v1803_v14 = vrot.slane %v1802_v44, 4  ;;  %v6603_v6 = vld [vmem:[%s6906_s9 + $0x54] sm:$0xf] }
 0x118   : > { %5929 = vmatprep.subr.bf16.mxu1 %v6599_v8  ;;  %v733_v19 = vrot.slane %v6600_v17, 5  ;;  %v1829_v20 = vshll.u32 %v7636_v24, 16  ;;  %v1833_v12 = vshrl.u32 %v7636_v24, 16  ;;  %v1817_v49 = vrot.slane %v1815_v5, 5  ;;  %v6605_v35 = vld [vmem:[%s6906_s9 + $0x50] sm:$0x1] }
 0x119   : > { %v1813_v22 = vrot.slane %v1812_v11, 4  ;;  %v1822_v62 = vrot.slane %v1820_v1, 4  ;;  %v1825_v43 = vrot.slane %v1823_v13, 5  ;;  %v5492_v33 = vcombine.low %v727_v42, %v730_v45  ;;  %v6606_v46 = vld [vmem:[#allocation2 + $0x290] ss:$8 sps:$4 sm:$0xff]  }
 0x11a   : > { %3785 = vmatmul.mubr.bf16.gmra.mrb[16].mxu1 %v5491_v60  ;;  %v1831_v15 = vrot.slane %v1829_v20, 5  ;;  %v1835_v30 = vrot.slane %v1833_v12, 4  ;;  %v5509_v34 = vcombine.low %v6603_v6, %v6604_v56  ;;  %v1808_v37 = vsel %vm6933_vm5, %v1803_v14, %v7626_v28  ;;  %v6607_v50 = vld [vmem:[#allocation2 + $0x2a4] ss:$8 sps:$4 sm:$0xff]   ;;  %v6608_v39 = vld [vmem:[%s6906_s9 + $0x58] sm:$0xf] }
 0x11b   : > { %3794 = vmatprep.mubr.bf16.mxu1 %v5508_v27  ;;  %5945 = vmatpush1.bf16.msra.mxu1 %v6601_v21  ;;  %v5285_v31 = vrot.slane %v628_v51, 9  ;;  %v735_v48 = vrot.slane %v733_v19, 4  ;;  %v736_v40 = vrot.slane %v6605_v35, 5  ;;  %v1818_v38 = vsel %vm6933_vm5, %v1813_v22, %v1817_v49  ;;  %v629_v60 = vld [vmem:[%s6906_s9 + $0x54] sm:$0xe] }
 0x11c   : > { %5930 = vmatprep.subr.bf16.mxu1 %v6602_v26  ;;  %v1826_v47 = vor.u32 %v1825_v43, %v1822_v62  ;;  %v1836_v27 = vor.u32 %v1835_v30, %v1831_v15  ;;  %v1839_v23 = vshll.u32 %v5422_v29, 16  ;;  %v5564_v53 = vcombine.low %v7583_v32, %v7590_v2  ;;  %v6609_v18 = vld [vmem:[#allocation2 + $0x2a0] ss:$8 sps:$4 sm:$0xff]   ;;  %v6610_v32 = vld [vmem:[#allocation2 + $0x2b4] ss:$8 sps:$4 sm:$0xff]  }
 0x11d   : > { %v740_v54 = vrot.slane %v6608_v39, 5  ;;  %v5581_v52 = vcombine.low %v1808_v37, %v1818_v38  ;;  %v734_v58 = vsel %vm6924_vm4, %v5285_v31, %v733_v19  ;;  %v737_v59 = vsel %vm6924_vm4, %v735_v48, %v736_v40  ;;  %v6611_v44 = vld [vmem:[%s6906_s9 + $0x5c] sm:$0x1]  ;;  %v6612_v36 = vld [vmem:[%s6906_s9 + $0x64] sm:$0xf] }
 0x11e   : > { %4251 = vmatmul.mubr.bf16.gmra.mrb[48].mxu0 %v5563_v10  ;;  %v1827_v61 = vrot.slane %v1826_v47, 4  ;;  %v1837_v63 = vrot.slane %v1836_v27, 4  ;;  %v1841_v28 = vrot.slane %v1839_v23, 5  ;;  %v5493_v2 = vcombine.low %v734_v58, %v737_v59  ;;  %v6613_v5 = vld [vmem:[%s6906_s9 + $0x60] sm:$0xf] }
 0x11f   : > { %4260 = vmatprep.mubr.bf16.mxu0 %v5580_v41  ;;  %5946 = vmatpush1.bf16.msra.mxu1 %v6606_v46  ;;  %v5286_v55 = vrot.slane %v629_v60, 9  ;;  %v742_v4 = vrot.slane %v740_v54, 4  ;;  %v743_v3 = vrot.slane %v6611_v44, 5  ;;  %v5510_v8 = vcombine.low %v6613_v5, %v6612_v36  ;;  %v6614_v10 = vld [vmem:[#allocation2 + $0x2b0] ss:$8 sps:$4 sm:$0xff]  }
 0x120   : > { %5931 = vmatprep.subr.bf16.mxu1 %v6607_v50  ;;  %v1832_v42 = vsel %vm6933_vm5, %v1827_v61, %v1831_v15  ;;  %v1842_v11 = vsel %vm6933_vm5, %v1837_v63, %v1841_v28  ;;  %v6615_v41 = vld [vmem:[#allocation2 + $0x2c4] ss:$8 sps:$4 sm:$0xff]   ;;  %v5565_v45 = vcombine.low %v7605_v9, %v7612_v25  ;;  %v630_v20 = vld [vmem:[%s6906_s9 + $0x60] sm:$0xe]  ;;  %v7687_v22 = vld [vmem:[%s6906_s9 + $0x70] sm:$0xf]  ;;  %v5566_v37 = vcombine.low %v7633_v57, %v7636_v24 }
 0x121   : > { %v741_v1 = vsel %vm6924_vm4, %v5286_v55, %v740_v54  ;;  %v744_v13 = vsel %vm6924_vm4, %v742_v4, %v743_v3  ;;  %v6616_v14 = vld [vmem:[%s6906_s9 + $0x64] sm:$0xf]  ;;  %v5582_v19 = vcombine.low %v1832_v42, %v1842_v11  ;;  %v6617_v12 = vld [vmem:[#allocation2 + $0x2c0] ss:$8 sps:$4 sm:$0xff]   ;;  %v7684_v21 = vld [vmem:[%s6906_s9 + $0x6c] sm:$0xf] }
 0x122   : > { %3795 = vmatmul.mubr.bf16.gmra.mrb[20].mxu1 %v5492_v33  ;;  %v747_v17 = vrot.slane %v6616_v14, 5  ;;  %v6618_v9 = vld [vmem:[#allocation2 + $0x2d4] ss:$8 sps:$4 sm:$0xff]   ;;  %v5494_v25 = vcombine.low %v741_v1, %v744_v13  ;;  %v5287_v49 = vrot.slane %v630_v20, 9  ;;  %v6619_v62 = vld [vmem:[%s6906_s9 + $0x68] sm:$0x1]  ;;  %v5511_v30 = vcombine.low %v7684_v21, %v7687_v22 }
 0x123   : > { %3804 = vmatprep.mubr.bf16.mxu1 %v5509_v34  ;;  %5947 = vmatpush1.bf16.msra.mxu1 %v6609_v18  ;;  %v750_v43 = vrot.slane %v6619_v62, 5  ;;  %v5423_v26 = vld [vmem:[%s6906_s9 + $0x18] sm:$0xe]  ;;  %v6620_v29 = vld [vmem:[%s6906_s9 + $0x1c] sm:$0xf]  ;;  %vm5093_vm12 = vcmask 1040384  }
 0x124   : > { %5932 = vmatprep.subr.bf16.mxu1 %v6610_v32  ;;  %v749_v51 = vrot.slane %v747_v17, 4  ;;  %v1909_v15 = vrot.slane %v6620_v29, 5  ;;  %v6621_v33 = vld [vmem:[#allocation2 + $0x2d0] ss:$8 sps:$4 sm:$0xff]   ;;  %v6622_v6 = vld [vmem:[#allocation2 + $0x2e4] ss:$8 sps:$4 sm:$0xff]   ;;  %v748_v48 = vsel %vm6924_vm4, %v5287_v49, %v747_v17 }
 0x125   : > { %v6623_v56 = vld [vmem:[%s6906_s9 + $0x20] sm:$0x1]  ;;  %v5439_v31 = vrot.slane %v5423_v26, 9  ;;  %v631_v46 = vld [vmem:[%s6906_s9 + $0x6c] sm:$0xe] }
 0x126   : > { %4261 = vmatmul.mubr.bf16.gmra.mrb[52].mxu0 %v5564_v53  ;;  %v1912_v34 = vrot.slane %v6623_v56, 5  ;;  %v751_v35 = vsel %vm6924_vm4, %v749_v51, %v750_v43  ;;  %v1911_v40 = vrot.slane %v1909_v15, 4  ;;  %v6624_v38 = vld [vmem:[%s6906_s9 + $0x70] sm:$0xf]  ;;  %v6625_v27 = vld [vmem:[#allocation2 + $0x2e0] ss:$8 sps:$4 sm:$0xff]  }
 0x127   : > { %4270 = vmatprep.mubr.bf16.mxu0 %v5581_v52  ;;  %5948 = vmatpush1.bf16.msra.mxu1 %v6614_v10  ;;  %v754_v47 = vrot.slane %v6624_v38, 5  ;;  %v7704_v23 = vld [vmem:[%s6906_s9 + $0x78] sm:$0xf]  ;;  %v7707_v57 = vld [vmem:[%s6906_s9 + $0x7c] sm:$0xf]  ;;  %v5495_v50 = vcombine.low %v748_v48, %v751_v35  ;;  %v1910_v53 = vsel %vm6924_vm4, %v5439_v31, %v1909_v15  ;;  %v5288_v39 = vrot.slane %v631_v46, 9 }
 0x128   : > { %5933 = vmatprep.subr.bf16.mxu1 %v6615_v41  ;;  %v6626_v24 = vld [vmem:[#allocation2 + $0x2f4] ss:$8 sps:$4 sm:$0xff]   ;;  %v1913_v54 = vsel %vm6924_vm4, %v1911_v40, %v1912_v34  ;;  %v5424_v60 = vld [vmem:[%s6906_s9 + $0x24] sm:$0xe]  ;;  %v6628_v18 = vld [vmem:[%s6906_s9 + $0x28] sm:$0xf]  ;;  %v5512_v63 = vcombine.low %v7704_v23, %v7707_v57 }
 0x129   : > { %v756_v52 = vrot.slane %v754_v47, 4  ;;  %v6627_v58 = vld [vmem:[%s6906_s9 + $0x74] sm:$0x1]  ;;  %v1916_v61 = vrot.slane %v6628_v18, 5  ;;  %v6629_v28 = vld [vmem:[#allocation2 + $0x2f0] ss:$8 sps:$4 sm:$0xff]   ;;  %v5583_v32 = vcombine.low %v1910_v53, %v1913_v54 }
 0x12a   : > { %3805 = vmatmul.mubr.bf16.gmra.mrb[24].mxu1 %v5493_v2  ;;  %v757_v59 = vrot.slane %v6627_v58, 5  ;;  %v755_v2 = vsel %vm6924_vm4, %v5288_v39, %v754_v47  ;;  %v5440_v55 = vrot.slane %v5424_v60, 9  ;;  %v6630_v3 = vld [vmem:[%s6906_s9 + $0x2c] sm:$0x1]  ;;  %v632_v5 = vld [vmem:[%s6906_s9 + $0x78] sm:$0xe] }
 0x12b   : > { %3814 = vmatprep.mubr.bf16.mxu1 %v5510_v8  ;;  %5949 = vmatpush1.bf16.msra.mxu1 %v6617_v12  ;;  %v1918_v44 = vrot.slane %v1916_v61, 4  ;;  %v1919_v36 = vrot.slane %v6630_v3, 5  ;;  %v6631_v8 = vld [vmem:[%s6906_s9 + $0x7c] sm:$0xf]  ;;  %v7727_v42 = vld [vmem:[%s6906_s9 + $0x84] sm:$0xf] }
 0x12c   : > { %5934 = vmatprep.subr.bf16.mxu1 %v6618_v9  ;;  %v758_v4 = vsel %vm6924_vm4, %v756_v52, %v757_v59  ;;  %v761_v10 = vrot.slane %v6631_v8, 5  ;;  %v7730_v11 = vld [vmem:[%s6906_s9 + $0x88] sm:$0xf]  ;;  %v5289_v1 = vrot.slane %v632_v5, 9  ;;  %v6632_v17 = vld [vmem:[%s6906_s9 + $0x80] sm:$0x1] }
 0x12d   : > { %v5496_v41 = vcombine.low %v755_v2, %v758_v4  ;;  %v1920_v13 = vsel %vm6924_vm4, %v1918_v44, %v1919_v36  ;;  %v5425_v20 = vld [vmem:[%s6906_s9 + $0x30] sm:$0xe]  ;;  %v6633_v12 = vld [vmem:[%s6906_s9 + $0x34] sm:$0xf]  ;;  %v6634_v62 = vld [vmem:[%s6906_s9 + $0x38] sm:$0x1] }
 0x12e   : > { %4271 = vmatmul.mubr.bf16.gmra.mrb[56].mxu0 %v5565_v45  ;;  %v1917_v45 = vsel %vm6924_vm4, %v5440_v55, %v1916_v61  ;;  %v763_v14 = vrot.slane %v761_v10, 4  ;;  %v1923_v9 = vrot.slane %v6633_v12, 5  ;;  %v5441_v51 = vrot.slane %v5425_v20, 9  ;;  %v7750_v56 = vld [vmem:[%s6906_s9 + $0x90] sm:$0xf] }
 0x12f   : > { %4280 = vmatprep.mubr.bf16.mxu0 %v5582_v19  ;;  %5950 = vmatpush1.bf16.msra.mxu1 %v6621_v33  ;;  %v764_v19 = vrot.slane %v6632_v17, 5  ;;  %v5584_v49 = vcombine.low %v1917_v45, %v1920_v13  ;;  %v1926_v43 = vrot.slane %v6634_v62, 5  ;;  %v762_v26 = vsel %vm6924_vm4, %v5289_v1, %v761_v10  ;;  %v6635_v33 = vld [vmem:[%s6906_s9 + $0x88] sm:$0xf]  ;;  %v7753_v34 = vld [vmem:[%s6906_s9 + $0x94] sm:$0xf] }
 0x130   : > { %5935 = vmatprep.subr.bf16.mxu1 %v6622_v6  ;;  %v1925_v15 = vrot.slane %v1923_v9, 4  ;;  %v768_v6 = vrot.slane %v6635_v33, 5  ;;  %v1924_v31 = vsel %vm6924_vm4, %v5441_v51, %v1923_v9  ;;  %v6636_v46 = vld [vmem:[%s6906_s9 + $0x8c] sm:$0x1]  ;;  %v5426_v47 = vld [vmem:[%s6906_s9 + $0x3c] sm:$0xe] }
 0x131   : > { %v765_v29 = vsel %vm6924_vm4, %v763_v14, %v764_v19  ;;  %v771_v38 = vrot.slane %v6636_v46, 5  ;;  %v5442_v54 = vrot.slane %v5426_v47, 9  ;;  %v6638_v59 = vld [vmem:[%s6906_s9 + $0x44] sm:$0x1]  ;;  %v634_v18 = vld [vmem:[%s6906_s9 + $0x90] sm:$0xe] }
 0x132   : > { %3815 = vmatmul.mubr.bf16.gmra.mrb[28].mxu1 %v5494_v25  ;;  %v5513_v25 = vcombine.low %v7727_v42, %v7730_v11  ;;  %v1927_v35 = vsel %vm6924_vm4, %v1925_v15, %v1926_v43  ;;  %v770_v40 = vrot.slane %v768_v6, 4  ;;  %v1933_v60 = vrot.slane %v6638_v59, 5  ;;  %v6639_v61 = vld [vmem:[%s6906_s9 + $0x94] sm:$0xf]  ;;  %v6640_v36 = vld [vmem:[%s6906_s9 + $0x98] sm:$0x1] }
 0x133   : > { %3824 = vmatprep.mubr.bf16.mxu1 %v5511_v30  ;;  %5951 = vmatpush1.bf16.msra.mxu1 %v6625_v27  ;;  %v633_v30 = vld [vmem:[%s6906_s9 + $0x84] sm:$0xe]  ;;  %v6637_v27 = vld [vmem:[%s6906_s9 + $0x40] sm:$0xf]  ;;  %v5585_v53 = vcombine.low %v1924_v31, %v1927_v35  ;;  %v5291_v4 = vrot.slane %v634_v18, 9  ;;  %v778_v5 = vrot.slane %v6640_v36, 5 }
 0x134   : > { %5936 = vmatprep.subr.bf16.mxu1 %v6626_v24  ;;  %v5290_v48 = vrot.slane %v633_v30, 9  ;;  %v1930_v24 = vrot.slane %v6637_v27, 5  ;;  %v772_v52 = vsel %vm6924_vm4, %v770_v40, %v771_v38  ;;  %v5427_v8 = vld [vmem:[%s6906_s9 + $0x48] sm:$0xe]  ;;  %v6641_v10 = vld [vmem:[%s6906_s9 + $0x4c] sm:$0xf] }
 0x135   : > { %v5443_v13 = vrot.slane %v5427_v8, 9  ;;  %v6642_v14 = vld [vmem:[%s6906_s9 + $0x50] sm:$0x1]  ;;  %v635_v9 = vld [vmem:[%s6906_s9 + $0x9c] sm:$0xe]  ;;  %v1046_v8 = vshll.u32 %v7684_v21, 16 }
 0x136   : > { %4281 = vmatmul.mubr.bf16.gmra.mrb[60].mxu0 %v5566_v37  ;;  %v5497_v37 = vcombine.low %v762_v26, %v765_v29  ;;  %v769_v39 = vsel %vm6924_vm4, %v5290_v48, %v768_v6  ;;  %v1932_v58 = vrot.slane %v1930_v24, 4  ;;  %v1931_v55 = vsel %vm6924_vm4, %v5442_v54, %v1930_v24  ;;  %v7796_v51 = vld [vmem:[%s6906_s9 + $0xa8] sm:$0xf]  ;;  %v7799_v62 = vld [vmem:[%s6906_s9 + $0xac] sm:$0xf] }
 0x137   : > { %4323 = vmatprep.mubr.bf16.mxu0 %v6714_v0  ;;  %5952 = vmatpush1.bf16.msra.mxu1 %v6629_v28  ;;  %v7773_v28 = vld [vmem:[%s6906_s9 + $0x9c] sm:$0xf]  ;;  %v5498_v2 = vcombine.low %v769_v39, %v772_v52  ;;  %v1940_v17 = vrot.slane %v6642_v14, 5  ;;  %v5292_v29 = vrot.slane %v635_v9, 9  ;;  %v6644_v33 = vld [vmem:[%s6906_s9 + $0xa4] sm:$0x1]  ;;  %v5516_v35 = vcombine.low %v7796_v51, %v7799_v62 }
 0x138   : > { %v1934_v44 = vsel %vm6924_vm4, %v1932_v58, %v1933_v60  ;;  %v785_v6 = vrot.slane %v6644_v33, 5  ;;  %v6645_v31 = vld [vmem:[%s6906_s9 + $0x58] sm:$0xf]  ;;  %v6646_v24 = vld [vmem:[%s6906_s9 + $0x5c] sm:$0x1] }
 0x139   : > { %v5586_v1 = vcombine.low %v1931_v55, %v1934_v44  ;;  %v1944_v48 = vrot.slane %v6645_v31, 5  ;;  %v6647_v39 = vld [vmem:[%s6906_s9 + $0xac] sm:$0xf]  ;;  %v7819_v52 = vld [vmem:[%s6906_s9 + $0xb4] sm:$0xf] }
 0x13a   : > { %3825 = vmatmul.mubr.bf16.gmra.mrb[32].mxu1 %v5495_v50  ;;  %v5514_v50 = vcombine.low %v7750_v56, %v7753_v34  ;;  %v789_v54 = vrot.slane %v6647_v39, 5  ;;  %v7822_v58 = vld [vmem:[%s6906_s9 + $0xb8] sm:$0xf]  ;;  %v6649_v44 = vld [vmem:[%s6906_s9 + $0x64] sm:$0xf] }
 0x13b   : > { %3834 = vmatprep.mubr.bf16.mxu1 %v5512_v63  ;;  %v775_v63 = vrot.slane %v6639_v61, 5  ;;  %v1946_v27 = vrot.slane %v1944_v48, 4  ;;  %v5517_v36 = vcombine.low %v7819_v52, %v7822_v58  ;;  %v6651_v9 = vld [vmem:[%s6906_s9 + $0xb8] sm:$0xf]  ;;  %vm5087_vm9 = vsmask.f32 7938 }
 0x13c   : > { %vm4762_vm10 = vsmask.f32 256  ;;  %vm4763_vm11 = vsmask.f32 4368  ;;  %vm8151_vm14 = vmand %vm5086_vm8, %vm5087_vm9 }
 0x13d   : > { %v777_v3 = vrot.slane %v775_v63, 4  ;;  %v776_v19 = vsel %vm6924_vm4, %v5291_v4, %v775_v63  ;;  %v791_v63 = vrot.slane %v789_v54, 4  ;;  %v5429_v4 = vld [vmem:[%s6906_s9 + $0x60] sm:$0xe]  ;;  %vm8159_vm15 = vmor %vm4762_vm10, %vm4763_vm11 }
 0x13e   : > { %4324 = vmatmul.mubr.bf16.vlgmr.msra.gmra.mrb[0].mxu0 %v5583_v32  ;;  %v7776_v32 = vld [vmem:[%s6906_s9 + $0xa0] sm:$0xf]  ;;  %vm8165_vm0 = vmand %vm5093_vm12, %vm4762_vm10 }
 0x13f   : > { %4333 = vmatprep.mubr.bf16.mxu0 %v6714_v0  ;;  %v5515_v45 = vcombine.low %v7773_v28, %v7776_v32  ;;  %v779_v20 = vsel %vm6924_vm4, %v777_v3, %v778_v5  ;;  %v1951_v3 = vrot.slane %v6649_v44, 5  ;;  %v1043_v5 = vshrl.u32 %v7684_v21, 16  ;;  %v7844_v21 = vld [vmem:[%s6906_s9 + $0xc0] sm:$0xf] }
 0x140   : > { %v5499_v43 = vcombine.low %v776_v19, %v779_v20 }
 0x141   : > { %v1953_v20 = vrot.slane %v1951_v3, 4 }
 0x142   : > { %3835 = vmatmul.mubr.bf16.gmra.mrb[36].mxu1 %v5496_v41  ;;  %v1937_v41 = vrot.slane %v6641_v10, 5  ;;  %v1052_v10 = vshll.u32 %v7687_v22, 16 }
 0x143   : > { %3844 = vmatprep.mubr.bf16.mxu1 %v5513_v25  ;;  %v6643_v25 = vld [vmem:[%s6906_s9 + $0xa0] sm:$0xf] }
 0x144   : > { %v1939_v12 = vrot.slane %v1937_v41, 4  ;;  %v1938_v26 = vsel %vm6924_vm4, %v5443_v13, %v1937_v41  ;;  %v1056_v41 = vshrl.u32 %v7687_v22, 16  ;;  %v6650_v13 = vld [vmem:[%s6906_s9 + $0x68] sm:$0x1] }
 0x145   : > { %v1954_v14 = vrot.slane %v6650_v13, 5 }
 0x146   : > { %4334 = vmatmul.mubr.bf16.gmra.mrb[4].mxu0 %v5584_v49  ;;  %v782_v49 = vrot.slane %v6643_v25, 5  ;;  %v1941_v15 = vsel %vm6924_vm4, %v1939_v12, %v1940_v17  ;;  %v637_v12 = vld [vmem:[%s6906_s9 + $0xb4] sm:$0xe]  ;;  %v796_v25 = vrot.slane %v6651_v9, 5  ;;  %v1058_v33 = vrot.slane %v1056_v41, 4 }
 0x147   : > { %4343 = vmatprep.mubr.bf16.mxu0 %v6714_v0  ;;  %v5587_v40 = vcombine.low %v1938_v26, %v1941_v15  ;;  %v1356_v26 = vrot.slane %v7687_v22, 5  ;;  %v1048_v15 = vrot.slane %v1046_v8, 5  ;;  %v6653_v22 = vld [vmem:[%s6906_s9 + $0x70] sm:$0xf]  ;;  %v1363_v41 = vrot.slane %v7707_v57, 5 }
 0x148   : > { %v784_v30 = vrot.slane %v782_v49, 4  ;;  %v783_v46 = vsel %vm6924_vm4, %v5292_v29, %v782_v49  ;;  %v7849_v49 = vld [vmem:[%s6906_s9 + $0xc4] sm:$0xf]  ;;  %v1045_v29 = vrot.slane %v1043_v5, 4  ;;  %v5431_v9 = vld [vmem:[%s6906_s9 + $0x78] sm:$0xe] }
 0x14a   : > { %3845 = vmatmul.mubr.bf16.gmra.mrb[40].mxu1 %v5497_v37  ;;  %v5428_v37 = vld [vmem:[%s6906_s9 + $0x54] sm:$0xe]  ;;  %v786_v47 = vsel %vm6924_vm4, %v784_v30, %v785_v6  ;;  %v7853_v30 = vrot.slane %v1052_v10, 5  ;;  %v5351_v6 = vld [vmem:[%s6906_s9 + $0x6c] sm:$0xe] }
 0x14b   : > { %3854 = vmatprep.mubr.bf16.mxu1 %v5514_v50  ;;  %v5444_v38 = vrot.slane %v5428_v37, 9  ;;  %v1947_v50 = vrot.slane %v6646_v24, 5  ;;  %v5500_v59 = vcombine.low %v783_v46, %v786_v47  ;;  %v6652_v46 = vld [vmem:[%s6906_s9 + $0xbc] sm:$0x1]  ;;  %v5430_v47 = vld [vmem:[%s6906_s9 + $0x6c] sm:$0xe]  ;;  %v5518_v24 = vcombine.low %v7844_v21, %v7849_v49 }
 0x14c   : > { %v5352_v10 = vld [vmem:[%s6906_s9 + $0x78] sm:$0xe] }
 0x14d   : > { %v1945_v60 = vsel %vm6924_vm4, %v5444_v38, %v1944_v48  ;;  %v1948_v61 = vsel %vm6924_vm4, %v1946_v27, %v1947_v50  ;;  %v5294_v48 = vrot.slane %v637_v12, 9  ;;  %v799_v38 = vrot.slane %v6652_v46, 5 }
 0x14e   : > { %4344 = vmatmul.mubr.bf16.gmra.mrb[8].mxu0 %v5585_v53  ;;  %v636_v53 = vld [vmem:[%s6906_s9 + $0xa8] sm:$0xe]  ;;  %v1958_v27 = vrot.slane %v6653_v22, 5  ;;  %v5367_v50 = vrot.slane %v5351_v6, 9  ;;  %v5447_v46 = vrot.slane %v5431_v9, 9 }
 0x14f   : > { %4353 = vmatprep.mubr.bf16.mxu0 %v6714_v0  ;;  %v5293_v18 = vrot.slane %v636_v53, 9  ;;  %v1358_v53 = vrot.slane %v1356_v26, 4  ;;  %v6656_v22 = vld [vmem:[%s6906_s9 + $0x80] sm:$0x1] }
 0x151   : > { %v790_v17 = vsel %vm6924_vm4, %v5293_v18, %v789_v54  ;;  %v1049_v54 = vor.u32 %v1048_v15, %v1045_v29  ;;  %v1070_v18 = vshll.u32 %v7704_v23, 16 }
 0x152   : > { %3855 = vmatmul.mubr.bf16.gmra.mrb[44].mxu1 %v5498_v2  ;;  %v6648_v2 = vld [vmem:[%s6906_s9 + $0xb0] sm:$0x1] }
 0x153   : > { %3864 = vmatprep.mubr.bf16.mxu1 %v5515_v45  ;;  %v792_v55 = vrot.slane %v6648_v2, 5  ;;  %v5588_v45 = vcombine.low %v1945_v60, %v1948_v61  ;;  %v1067_v60 = vshrl.u32 %v7704_v23, 16  ;;  %v1080_v61 = vshrl.u32 %v7707_v57, 16 }
 0x154   : > { %v5446_v2 = vrot.slane %v5430_v47, 9  ;;  %v1357_v23 = vsel %vm6924_vm4, %v5367_v50, %v1356_v26  ;;  %v1104_v50 = vshrl.u32 %v7730_v11, 16 }
 0x155   : > { %v793_v19 = vsel %vm6924_vm4, %v791_v63, %v792_v55 }
 0x156   : > { %4354 = vmatmul.mubr.bf16.gmra.mrb[12].mxu0 %v5586_v1  ;;  %v5445_v1 = vrot.slane %v5429_v4, 9  ;;  %v5501_v37 = vcombine.low %v790_v17, %v793_v19  ;;  %v797_v4 = vsel %vm6924_vm4, %v5294_v48, %v796_v25  ;;  %v5336_v17 = vld [vmem:[%s6906_s9 + $0x80] sm:$0x1]  ;;  %v1072_v19 = vrot.slane %v1070_v18, 5 }
 0x157   : > { %4363 = vmatprep.mubr.bf16.mxu0 %v6714_v0  ;;  %v1366_v6 = vrot.slane %v5336_v17, 5  ;;  %v1091_v48 = vshrl.u32 %v7727_v42, 16  ;;  %v1100_v18 = vshll.u32 %v7730_v11, 16 }
 0x158   : > { %v1952_v31 = vsel %vm6924_vm4, %v5445_v1, %v1951_v3  ;;  %v1960_v3 = vrot.slane %v1958_v27, 4  ;;  %v1050_v1 = vrot.slane %v1049_v54, 4 }
 0x15a   : > { %3865 = vmatmul.mubr.bf16.gmra.mrb[48].mxu1 %v5499_v43  ;;  %v5335_v43 = vld [vmem:[%s6906_s9 + $0x74] sm:$0x1] }
 0x15b   : > { %3874 = vmatprep.mubr.bf16.mxu1 %v5516_v35  ;;  %v1955_v35 = vsel %vm6924_vm4, %v1953_v20, %v1954_v14  ;;  %v1359_v39 = vrot.slane %v5335_v43, 5  ;;  %v1062_v55 = vshll.u32 %v5335_v43, 16  ;;  %v1069_v14 = vrot.slane %v1067_v60, 4  ;;  %v5353_v60 = vld [vmem:[%s6906_s9 + $0x84] sm:$0xe] }
 0x15c   : > { %v5589_v63 = vcombine.low %v1952_v31, %v1955_v35  ;;  %v1959_v20 = vsel %vm6924_vm4, %v5446_v2, %v1958_v27  ;;  %v1082_v31 = vrot.slane %v1080_v61, 4  ;;  %v1094_v35 = vshll.u32 %v7727_v42, 16 }
 0x15d   : > { %v1360_v8 = vsel %vm6924_vm4, %v1358_v53, %v1359_v39  ;;  %v1064_v12 = vrot.slane %v1062_v55, 5  ;;  %v1968_v27 = vrot.slane %v6656_v22, 5  ;;  %v1086_v39 = vshll.u32 %v5336_v17, 16 }
 0x15e   : > { %4364 = vmatmul.mubr.bf16.gmra.mrb[16].mxu0 %v5587_v40  ;;  %v798_v40 = vrot.slane %v796_v25, 4  ;;  %v6655_v25 = vld [vmem:[%s6906_s9 + $0x7c] sm:$0xf]  ;;  %v5543_v15 = vcombine.low %v1357_v23, %v1360_v8  ;;  %v1370_v42 = vrot.slane %v7730_v11, 5  ;;  %v1093_v61 = vrot.slane %v1091_v48, 4 }
 0x15f   : > { %4373 = vmatprep.mubr.bf16.mxu0 %v6714_v0  ;;  %v1965_v43 = vrot.slane %v6655_v25, 5  ;;  %v1115_v2 = vshrl.u32 %v7750_v56, 16  ;;  %v5432_v11 = vld [vmem:[%s6906_s9 + $0x84] sm:$0xe]  ;;  %v1106_v17 = vrot.slane %v1104_v50, 4  ;;  %v1377_v22 = vrot.slane %v7753_v34, 5 }
 0x160   : > { %v800_v44 = vsel %vm6924_vm4, %v798_v40, %v799_v38  ;;  %v1055_v40 = vsel %vm6933_vm5, %v1050_v1, %v7853_v30  ;;  %v5448_v25 = vrot.slane %v5432_v11, 9  ;;  %v1148_v11 = vshll.u32 %v7776_v32, 16 }
 0x161   : > { %v5502_v26 = vcombine.low %v797_v4, %v800_v44  ;;  %v1967_v47 = vrot.slane %v1965_v43, 4  ;;  %v5337_v4 = vld [vmem:[%s6906_s9 + $0x8c] sm:$0x1]  ;;  %v1966_v44 = vsel %vm6924_vm4, %v5447_v46, %v1965_v43  ;;  %v1139_v46 = vshrl.u32 %v7773_v28, 16 }
 0x162   : > { %3875 = vmatmul.mubr.bf16.gmra.mrb[52].mxu1 %v5500_v59  ;;  %v1059_v59 = vor.u32 %v1058_v33, %v7853_v30  ;;  %v1365_v33 = vrot.slane %v1363_v41, 4 }
 0x163   : > { %3884 = vmatprep.mubr.bf16.mxu1 %v5517_v36  ;;  %v6654_v36 = vld [vmem:[%s6906_s9 + $0x74] sm:$0x1] }
 0x164   : > { %v1961_v5 = vrot.slane %v6654_v36, 5  ;;  %v1060_v13 = vrot.slane %v1059_v59, 4  ;;  %v1367_v54 = vsel %vm6924_vm4, %v1365_v33, %v1366_v6  ;;  %v5433_v6 = vld [vmem:[%s6906_s9 + $0x90] sm:$0xe] }
 0x166   : > { %4374 = vmatmul.mubr.bf16.gmra.mrb[20].mxu0 %v5588_v45  ;;  %v1076_v45 = vshll.u32 %v7707_v57, 16  ;;  %v1962_v29 = vsel %vm6924_vm4, %v1960_v3, %v1961_v5  ;;  %v5368_v57 = vrot.slane %v5352_v10, 9  ;;  %v1065_v38 = vsel %vm6933_vm5, %v1060_v13, %v1064_v12  ;;  %v6657_v5 = vld [vmem:[%s6906_s9 + $0x88] sm:$0xf] }
 0x167   : > { %4383 = vmatprep.mubr.bf16.mxu0 %v6714_v0  ;;  %v5590_v53 = vcombine.low %v1959_v20, %v1962_v29  ;;  %v5527_v55 = vcombine.low %v1055_v40, %v1065_v38  ;;  %v1969_v3 = vsel %vm6924_vm4, %v1967_v47, %v1968_v27  ;;  %v1972_v23 = vrot.slane %v6657_v5, 5  ;;  %v6659_v38 = vld [vmem:[%s6906_s9 + $0x94] sm:$0xf] }
 0x168   : > { %v1364_v30 = vsel %vm6924_vm4, %v5368_v57, %v1363_v41  ;;  %v1088_v10 = vrot.slane %v1086_v39, 5  ;;  %v5369_v41 = vrot.slane %v5353_v60, 9  ;;  %v1373_v13 = vrot.slane %v5337_v4, 5  ;;  %v5338_v39 = vld [vmem:[%s6906_s9 + $0x98] sm:$0x1] }
 0x169   : > { %v5544_v8 = vcombine.low %v1364_v30, %v1367_v54  ;;  %v1118_v20 = vshll.u32 %v7750_v56, 16  ;;  %v1128_v12 = vshrl.u32 %v7753_v34, 16  ;;  %v5591_v9 = vcombine.low %v1966_v44, %v1969_v3 }
 0x16a   : > { %3885 = vmatmul.mubr.bf16.gmra.mrb[56].mxu1 %v5501_v37  ;;  %v7890_v37 = vrot.slane %v1076_v45, 5  ;;  %v1372_v45 = vrot.slane %v1370_v42, 4  ;;  %v1974_v43 = vrot.slane %v1972_v23, 4  ;;  %v1371_v57 = vsel %vm6924_vm4, %v5369_v41, %v1370_v42  ;;  %v5354_v42 = vld [vmem:[%s6906_s9 + $0x90] sm:$0xe] }
 0x16b   : > { %3894 = vmatprep.mubr.bf16.mxu1 %v5518_v24  ;;  %v1073_v24 = vor.u32 %v1072_v19, %v1069_v14  ;;  %v7918_v14 = vrot.slane %v1100_v18, 5  ;;  %v7920_v19 = vrot.slane %v1115_v2, 4  ;;  %v1124_v56 = vshll.u32 %v7753_v34, 16 }
 0x16c   : > { %v1083_v59 = vor.u32 %v1082_v31, %v7890_v37  ;;  %v1374_v48 = vsel %vm6924_vm4, %v1372_v45, %v1373_v13  ;;  %v1110_v40 = vshll.u32 %v5337_v4, 16  ;;  %v1979_v47 = vrot.slane %v6659_v38, 5 }
 0x16d   : > { %v1074_v36 = vrot.slane %v1073_v24, 4  ;;  %v1142_v27 = vshll.u32 %v7773_v28, 16  ;;  %v1973_v24 = vsel %vm6924_vm4, %v5448_v25, %v1972_v23  ;;  %v5545_v54 = vcombine.low %v1371_v57, %v1374_v48  ;;  %v5355_v57 = vld [vmem:[%s6906_s9 + $0x9c] sm:$0xe] }
 0x16e   : > { %4384 = vmatmul.mubr.bf16.gmra.mrb[24].mxu0 %v5589_v63  ;;  %v1096_v63 = vrot.slane %v1094_v35, 5  ;;  %v1084_v1 = vrot.slane %v1083_v59, 4  ;;  %v1107_v35 = vor.u32 %v1106_v17, %v7918_v14  ;;  %v7947_v59 = vrot.slane %v1124_v56, 5 }
 0x16f   : > { %4393 = vmatprep.mubr.bf16.mxu0 %v6714_v0  ;;  %v1130_v60 = vrot.slane %v1128_v12, 4  ;;  %v1112_v28 = vrot.slane %v1110_v40, 5  ;;  %v1981_v2 = vrot.slane %v1979_v47, 4  ;;  %v1379_v4 = vrot.slane %v1377_v22, 4  ;;  %v5434_v12 = vld [vmem:[%s6906_s9 + $0x9c] sm:$0xe] }
 0x170   : > { %v1097_v33 = vor.u32 %v1096_v63, %v1093_v61  ;;  %v1089_v31 = vsel %vm6933_vm5, %v1084_v1, %v1088_v10  ;;  %v1108_v18 = vrot.slane %v1107_v35, 4  ;;  %v6660_v61 = vld [vmem:[%s6906_s9 + $0x98] sm:$0x1]  ;;  %v1380_v44 = vrot.slane %v5338_v39, 5 }
 0x171   : > { %v1982_v63 = vrot.slane %v6660_v61, 5  ;;  %v1152_v3 = vshrl.u32 %v7776_v32, 16  ;;  %v1134_v5 = vshll.u32 %v5338_v39, 16  ;;  %v1141_v23 = vrot.slane %v1139_v46, 4  ;;  %v5340_v61 = vld [vmem:[%s6906_s9 + $0xb0] sm:$0x1] }
 0x172   : > { %3895 = vmatmul.mubr.bf16.gmra.mrb[60].mxu1 %v5502_v26  ;;  %v6658_v26 = vld [vmem:[%s6906_s9 + $0x8c] sm:$0x1]  ;;  %v1098_v34 = vrot.slane %v1097_v33, 4  ;;  %v1131_v10 = vor.u32 %v1130_v60, %v7947_v59  ;;  %v1144_v41 = vrot.slane %v1142_v27, 5  ;;  %v1113_v1 = vsel %vm6933_vm5, %v1108_v18, %v1112_v28 }
 0x173   : > { %4017 = vmatprep.mubr.bf16.mxu1 %v5543_v15  ;;  %v1975_v29 = vrot.slane %v6658_v26, 5  ;;  %v1079_v15 = vsel %vm6933_vm5, %v1074_v36, %v7890_v37  ;;  %v1120_v37 = vrot.slane %v1118_v20, 5  ;;  %v1983_v17 = vsel %vm6924_vm4, %v1981_v2, %v1982_v63  ;;  %v5356_v63 = vld [vmem:[%s6906_s9 + $0xa8] sm:$0xe] }
 0x174   : > { %v5528_v30 = vcombine.low %v1079_v15, %v1089_v31  ;;  %v1103_v45 = vsel %vm6933_vm5, %v1098_v34, %v7918_v14  ;;  %v1381_v20 = vsel %vm6924_vm4, %v1379_v4, %v1380_v44  ;;  %v1384_v25 = vrot.slane %v7776_v32, 5  ;;  %v5435_v44 = vld [vmem:[%s6906_s9 + $0xa8] sm:$0xe] }
 0x175   : > { %v1976_v50 = vsel %vm6924_vm4, %v1974_v43, %v1975_v29  ;;  %v1121_v36 = vor.u32 %v1120_v37, %v7920_v19  ;;  %v1163_v14 = vshrl.u32 %v7796_v51, 16  ;;  %v1136_v26 = vrot.slane %v1134_v5, 5  ;;  %v6661_v29 = vld [vmem:[%s6906_s9 + $0xa0] sm:$0xf] }
 0x176   : > { %4394 = vmatmul.mubr.bf16.gmra.mrb[28].mxu0 %v5590_v53  ;;  %v5449_v53 = vrot.slane %v5433_v6, 9  ;;  %v1986_v15 = vrot.slane %v6661_v29, 5  ;;  %v5529_v33 = vcombine.low %v1103_v45, %v1113_v1  ;;  %v1132_v6 = vrot.slane %v1131_v10, 4 }
 0x177   : > { %4403 = vmatprep.mubr.bf16.mxu0 %v6714_v0  ;;  %v1122_v43 = vrot.slane %v1121_v36, 4  ;;  %v7974_v56 = vrot.slane %v1148_v11, 5  ;;  %v1154_v31 = vrot.slane %v1152_v3, 4  ;;  %v1166_v48 = vshll.u32 %v7796_v51, 16  ;;  %v6663_v3 = vld [vmem:[%s6906_s9 + $0xac] sm:$0xf] }
 0x178   : > { %v1980_v13 = vsel %vm6924_vm4, %v5449_v53, %v1979_v47  ;;  %v1176_v35 = vshrl.u32 %v7799_v62, 16  ;;  %v5450_v37 = vrot.slane %v5434_v12, 9  ;;  %v5371_v46 = vrot.slane %v5355_v57, 9 }
 0x179   : > { %v5593_v32 = vcombine.low %v1980_v13, %v1983_v17  ;;  %v1386_v38 = vrot.slane %v1384_v25, 4  ;;  %v1988_v27 = vrot.slane %v1986_v15, 4  ;;  %v1145_v51 = vor.u32 %v1144_v41, %v1141_v23 }
 0x17a   : > { %4018 = vmatmul.mubr.bf16.vlgmr.msra.gmra.mrb[32].mxu1 %v5527_v55  ;;  %v5370_v55 = vrot.slane %v5354_v42, 9  ;;  %v1137_v53 = vsel %vm6933_vm5, %v1132_v6, %v1136_v26  ;;  %v1155_v39 = vor.u32 %v1154_v31, %v7974_v56  ;;  %v1168_v60 = vrot.slane %v1166_v48, 5 }
 0x17b   : > { %4027 = vmatprep.mubr.bf16.mxu1 %v5544_v8  ;;  %v5592_v8 = vcombine.low %v1973_v24, %v1976_v50  ;;  %v6662_v24 = vld [vmem:[%s6906_s9 + $0xa4] sm:$0x1]  ;;  %v1987_v34 = vsel %vm6924_vm4, %v5450_v37, %v1986_v15  ;;  %v1385_v18 = vsel %vm6924_vm4, %v5371_v46, %v1384_v25  ;;  %v1146_v4 = vrot.slane %v1145_v51, 4 }
 0x17c   : > { %v1378_v19 = vsel %vm6924_vm4, %v5370_v55, %v1377_v22  ;;  %v1127_v22 = vsel %vm6933_vm5, %v1122_v43, %v7947_v59  ;;  %v1989_v50 = vrot.slane %v6662_v24, 5  ;;  %v1391_v59 = vrot.slane %v7799_v62, 5 }
 0x17d   : > { %v5546_v40 = vcombine.low %v1378_v19, %v1381_v20  ;;  %v5530_v2 = vcombine.low %v1127_v22, %v1137_v53  ;;  %v1156_v36 = vrot.slane %v1155_v39, 4  ;;  %v5372_v11 = vrot.slane %v5356_v63, 9 }
 0x17e   : > { %4404 = vmatmul.mubr.bf16.gmra.mrb[32].mxu0 %v5591_v9  ;;  %v5339_v9 = vld [vmem:[%s6906_s9 + $0xa4] sm:$0x1]  ;;  %v1990_v55 = vsel %vm6924_vm4, %v1988_v27, %v1989_v50  ;;  %v1393_v41 = vrot.slane %v1391_v59, 4  ;;  %v1394_v45 = vrot.slane %v5340_v61, 5  ;;  %v1187_v1 = vshrl.u32 %v7819_v52, 16 }
 0x17f   : > { %4413 = vmatprep.mubr.bf16.mxu0 %v6714_v0  ;;  %v1387_v47 = vrot.slane %v5339_v9, 5  ;;  %v1158_v42 = vshll.u32 %v5339_v9, 16  ;;  %v1190_v13 = vshll.u32 %v7819_v52, 16  ;;  %v1200_v17 = vshrl.u32 %v7822_v58, 16  ;;  %v6664_v9 = vld [vmem:[%s6906_s9 + $0xb0] sm:$0x1] }
 0x180   : > { %v5451_v19 = vrot.slane %v5435_v44, 9  ;;  %v5594_v20 = vcombine.low %v1987_v34, %v1990_v55  ;;  %v1996_v25 = vrot.slane %v6664_v9, 5  ;;  %v1151_v43 = vsel %vm6933_vm5, %v1146_v4, %v7974_v56  ;;  %v5436_v50 = vld [vmem:[%s6906_s9 + $0xb4] sm:$0xe] }
 0x181   : > { %v1388_v28 = vsel %vm6924_vm4, %v1386_v38, %v1387_v47  ;;  %v1160_v5 = vrot.slane %v1158_v42, 5  ;;  %v1182_v29 = vshll.u32 %v5340_v61, 16  ;;  %v1392_v15 = vsel %vm6924_vm4, %v5372_v11, %v1391_v59  ;;  %v6665_v38 = vld [vmem:[%s6906_s9 + $0xb8] sm:$0xf]  ;;  %v5342_v11 = vld [vmem:[%s6906_s9 + $0xc8] sm:$0x1] }
 0x182   : > { %4028 = vmatmul.mubr.bf16.gmra.mrb[36].mxu1 %v5528_v30  ;;  %v1172_v30 = vshll.u32 %v7799_v62, 16  ;;  %v1993_v62 = vrot.slane %v6663_v3, 5  ;;  %v5547_v10 = vcombine.low %v1385_v18, %v1388_v28  ;;  %v1395_v57 = vsel %vm6924_vm4, %v1393_v41, %v1394_v45  ;;  %v6666_v28 = vld [vmem:[%s6906_s9 + $0xbc] sm:$0x1]  ;;  %v5358_v41 = vld [vmem:[%s6906_s9 + $0xc0] sm:$0xe] }
 0x183   : > { %4037 = vmatprep.mubr.bf16.mxu1 %v5545_v54  ;;  %v1165_v54 = vrot.slane %v1163_v14, 4  ;;  %v1161_v26 = vsel %vm6933_vm5, %v1156_v36, %v1160_v5  ;;  %v1398_v6 = vrot.slane %v7822_v58, 5  ;;  %v1196_v56 = vshll.u32 %v7822_v58, 16 }
 0x184   : > { %v8000_v23 = vrot.slane %v1172_v30, 5  ;;  %v1995_v12 = vrot.slane %v1993_v62, 4  ;;  %v1189_v31 = vrot.slane %v1187_v1, 4  ;;  %v1192_v48 = vrot.slane %v1190_v13, 5 }
 0x185   : > { %v1169_v14 = vor.u32 %v1168_v60, %v1165_v54  ;;  %v2000_v47 = vrot.slane %v6665_v38, 5  ;;  %v5548_v22 = vcombine.low %v1392_v15, %v1395_v57  ;;  %v1184_v24 = vrot.slane %v1182_v29, 5  ;;  %v6668_v57 = vld [vmem:[%s6906_s9 + $0xc8] sm:$0x1] }
 0x186   : > { %4414 = vmatmul.mubr.bf16.gmra.mrb[36].mxu0 %v5592_v8  ;;  %v1178_v8 = vrot.slane %v1176_v35, 4  ;;  %v1994_v35 = vsel %vm6924_vm4, %v5451_v19, %v1993_v62  ;;  %v1997_v37 = vsel %vm6924_vm4, %v1995_v12, %v1996_v25  ;;  %v1400_v51 = vrot.slane %v1398_v6, 4  ;;  %v5437_v12 = vld [vmem:[%s6906_s9 + $0xc0] sm:$0xe] }
 0x187   : > { %4423 = vmatprep.mubr.bf16.mxu0 %v6714_v0  ;;  %v1170_v46 = vrot.slane %v1169_v14, 4  ;;  %v1198_v39 = vrot.slane %v1196_v56, 5  ;;  %v1202_v42 = vrot.slane %v1200_v17, 4  ;;  %v1211_v30 = vshrl.u32 %v7844_v21, 16  ;;  %v6667_v17 = vld [vmem:[%s6906_s9 + $0xc4] sm:$0xf] }
 0x188   : > { %v1179_v52 = vor.u32 %v1178_v8, %v8000_v23  ;;  %v1214_v54 = vshll.u32 %v7844_v21, 16  ;;  %v1224_v59 = vshrl.u32 %v7849_v49, 16  ;;  %v5595_v60 = vcombine.low %v1994_v35, %v1997_v37 }
 0x189   : > { %v5452_v34 = vrot.slane %v5436_v50, 9  ;;  %v2002_v18 = vrot.slane %v2000_v47, 4  ;;  %v2003_v61 = vrot.slane %v6666_v28, 5  ;;  %v1175_v63 = vsel %vm6933_vm5, %v1170_v46, %v8000_v23  ;;  %v5438_v50 = vld [vmem:[%s6906_s9 + $0xcc] sm:$0xe] }
 0x18a   : > { %4038 = vmatmul.mubr.bf16.gmra.mrb[40].mxu1 %v5529_v33  ;;  %v5357_v33 = vld [vmem:[%s6906_s9 + $0xb4] sm:$0xe]  ;;  %v1180_v27 = vrot.slane %v1179_v52, 4  ;;  %v1193_v55 = vor.u32 %v1192_v48, %v1189_v31  ;;  %v1203_v44 = vor.u32 %v1202_v42, %v1198_v39  ;;  %v1220_v62 = vshll.u32 %v7849_v49, 16 }
 0x18b   : > { %4047 = vmatprep.mubr.bf16.mxu1 %v5546_v40  ;;  %v5531_v40 = vcombine.low %v1151_v43, %v1161_v26  ;;  %v5373_v58 = vrot.slane %v5357_v33, 9  ;;  %v1405_v36 = vrot.slane %v7849_v49, 5  ;;  %v1213_v5 = vrot.slane %v1211_v30, 4 }
 0x18c   : > { %v1216_v23 = vrot.slane %v1214_v54, 5  ;;  %v2001_v8 = vsel %vm6924_vm4, %v5452_v34, %v2000_v47  ;;  %v1194_v13 = vrot.slane %v1193_v55, 4  ;;  %v2007_v19 = vrot.slane %v6667_v17, 5 }
 0x18d   : > { %v1399_v21 = vsel %vm6924_vm4, %v5373_v58, %v1398_v6  ;;  %v1204_v49 = vrot.slane %v1203_v44, 4  ;;  %v1222_v9 = vrot.slane %v1220_v62, 5  ;;  %v1226_v25 = vrot.slane %v1224_v59, 4  ;;  %v6669_v58 = vld [vmem:[%s6906_s9 + $0xd0] sm:$0xf] }
 0x18e   : > { %4424 = vmatmul.mubr.bf16.gmra.mrb[40].mxu0 %v5593_v32  ;;  %v5341_v32 = vld [vmem:[%s6906_s9 + $0xbc] sm:$0x1]  ;;  %v5374_v14 = vrot.slane %v5358_v41, 9  ;;  %v1407_v43 = vrot.slane %v1405_v36, 4  ;;  %v1408_v26 = vrot.slane %v5342_v11, 5  ;;  %v5453_v29 = vrot.slane %v5437_v12, 9 }
 0x18f   : > { %4433 = vmatprep.mubr.bf16.mxu0 %v6714_v0  ;;  %v1401_v53 = vrot.slane %v5341_v32, 5  ;;  %v1206_v3 = vshll.u32 %v5341_v32, 16  ;;  %v2009_v15 = vrot.slane %v2007_v19, 4  ;;  %v2010_v33 = vrot.slane %v6668_v57, 5  ;;  %v6670_v59 = vld [vmem:[%s6906_s9 + $0xd4] sm:$0x1] }
 0x190   : > { %v1217_v6 = vor.u32 %v1216_v23, %v1213_v5  ;;  %v1199_v56 = vsel %vm6933_vm5, %v1194_v13, %v1198_v39  ;;  %v1227_v48 = vor.u32 %v1226_v25, %v1222_v9  ;;  %v1230_v35 = vshll.u32 %v5342_v11, 16 }
 0x191   : > { %v1402_v4 = vsel %vm6924_vm4, %v1400_v51, %v1401_v53  ;;  %v1406_v32 = vsel %vm6924_vm4, %v5374_v14, %v1405_v36  ;;  %v2008_v46 = vsel %vm6924_vm4, %v5453_v29, %v2007_v19  ;;  %v2011_v38 = vsel %vm6924_vm4, %v2009_v15, %v2010_v33  ;;  %v2787_v33 = vld [vmem:[%s8458_s2] sm:$0x3] }
 0x192   : > { %4048 = vmatmul.mubr.bf16.gmra.mrb[44].mxu1 %v5530_v2  ;;  %v1185_v2 = vsel %vm6933_vm5, %v1180_v27, %v1184_v24  ;;  %v5549_v1 = vcombine.low %v1399_v21, %v1402_v4  ;;  %v1218_v47 = vrot.slane %v1217_v6, 4  ;;  %v1228_v27 = vrot.slane %v1227_v48, 4 }
 0x193   : > { %4057 = vmatprep.mubr.bf16.mxu1 %v5547_v10  ;;  %v2004_v10 = vsel %vm6924_vm4, %v2002_v18, %v2003_v61  ;;  %v5532_v45 = vcombine.low %v1175_v63, %v1185_v2  ;;  %v1232_v24 = vrot.slane %v1230_v35, 5  ;;  %v2014_v51 = vrot.slane %v6669_v58, 5 }
 0x194   : > { %v5596_v52 = vcombine.low %v2001_v8, %v2004_v10  ;;  %v5597_v53 = vcombine.low %v2008_v46, %v2011_v38  ;;  %v5454_v39 = vrot.slane %v5438_v50, 9  ;;  %v1223_v42 = vsel %vm6933_vm5, %v1218_v47, %v1222_v9 }
 0x195   : > { %v1233_v30 = vsel %vm6933_vm5, %v1228_v27, %v1232_v24  ;;  %v2016_v54 = vrot.slane %v2014_v51, 4  ;;  %v2789_v25 = vlaneseq  ;;  %v6715_v50 = vmov 0.0  }
 0x196   : > { %4434 = vmatmul.mubr.bf16.gmra.mrb[44].mxu0 %v5594_v20  ;;  %v1208_v20 = vrot.slane %v1206_v3, 5  ;;  %v5534_v34 = vcombine.low %v1223_v42, %v1233_v30  ;;  %v2015_v18 = vsel %vm6924_vm4, %v5454_v39, %v2014_v51 }
 0x197   : > { %4443 = vmatprep.mubr.bf16.mxu0 %v6714_v0 }
 0x198   : > { %v1209_v31 = vsel %vm6933_vm5, %v1204_v49, %v1208_v20 }
 0x199   : > { %v5533_v37 = vcombine.low %v1199_v56, %v1209_v31 }
 0x19a   : > { %4058 = vmatmul.mubr.bf16.gmra.mrb[48].mxu1 %v5531_v40  ;;  %v1409_v40 = vsel %vm6924_vm4, %v1407_v43, %v1408_v26  ;;  %v2790_v43 = vshrl.u32 %v2789_v25, 7 }
 0x19b   : > { %4067 = vmatprep.mubr.bf16.mxu1 %v5548_v22  ;;  %v5550_v22 = vcombine.low %v1406_v32, %v1409_v40 }
 0x19c   : > { %v2791_v15 = vsub.s32 0, %v2790_v43  ;;  %v2795_v6 = vsub.s32 1, %v2790_v43 }
 0x19e   : > { %4444 = vmatmul.mubr.bf16.gmra.mrb[48].mxu0 %v5595_v60  ;;  %v2017_v60 = vrot.slane %v6670_v59, 5  ;;  %v8133_v56 = vrot.slane %v2787_v33, %v2791_v15  ;;  %v8135_v31 = vrot.slane %v2787_v33, %v2795_v6  ;;  %v5807_v33 = vld [vmem:[%s6791_s6 + $0xc] sm:$0xf] }
 0x19f   : > { %4453 = vmatprep.mubr.bf16.mxu0 %v6714_v0 }
 0x1a0   : > { %v2018_v28 = vsel %vm6924_vm4, %v2016_v54, %v2017_v60 }
 0x1a1   : > { %v5598_v61 = vcombine.low %v2015_v18, %v2018_v28 }
 0x1a2   : > { %4068 = vmatmul.mubr.bf16.gmra.mrb[52].mxu1 %v5532_v45 }
 0x1a3   : > { %4077 = vmatprep.mubr.bf16.mxu1 %v5549_v1 }
 0x1a6   : > { %4454 = vmatmul.mubr.bf16.gmra.mrb[52].mxu0 %v5596_v52 }
 0x1a7   : > { %4463 = vmatprep.mubr.bf16.mxu0 %v6714_v0 }
 0x1aa   : > { %4078 = vmatmul.mubr.bf16.gmra.mrb[56].mxu1 %v5533_v37 }
 0x1ab   : > { %4087 = vmatprep.mubr.bf16.mxu1 %v5550_v22 }
 0x1ae   : > { %4464 = vmatmul.mubr.bf16.gmra.mrb[56].mxu0 %v5597_v53 }
 0x1af   : > { %4473 = vmatprep.mubr.bf16.mxu0 %v6714_v0 }
 0x1b2   : > { %4088 = vmatmul.mubr.bf16.gmra.mrb[60].mxu1 %v5534_v34 }
 0x1b6   : > { %4474 = vmatmul.mubr.bf16.gmra.mrb[60].mxu0 %v5598_v61 }
 0x1cd   : > { %v3746_v63 = vpop.f32.mrb[0].mxu1 }
 0x1ce   : > { %v3748_v2 = vpop.f32.mrb[1].mxu1  ;;  %v5953_v48 = vadd.f32 %v3746_v63, %v8133_v56 }
 0x1cf   : > { %v3750_v16 = vpop.f32.mrb[2].mxu1  ;;  %v5955_v35 = vadd.f32 %v3748_v2, %v8135_v31 }
 0x1d0   : > { %v3752_v21 = vpop.f32.mrb[3].mxu1  ;;  %v5957_v40 = vadd.f32 %v3750_v16, %v8133_v56 }
 0x1d1   : > { %v5959_v38 = vadd.f32 %v3752_v21, %v8135_v31 }
 0x1d5   : > { %v3756_v55 = vpop.f32.mrb[4].mxu1 }
 0x1d6   : > { %v3758_v4 = vpop.f32.mrb[5].mxu1  ;;  %v5961_v42 = vadd.f32 %v3756_v55, %v8133_v56 }
 0x1d7   : > { %v8078_v44 = vpop.f32.mrb[6].mxu1  ;;  %v5963_v59 = vadd.f32 %v3758_v4, %v8135_v31 }
 0x1d8   : > { %v8080_v3 = vpop.f32.mrb[7].mxu1  ;;  %v5965_v63 = vadd.f32 %v8078_v44, %v8133_v56 }
 0x1d9   : > { %v5967_v2 = vadd.f32 %v8080_v3, %v8135_v31 }
 0x1dd   : > { %v8082_v0 = vpop.f32.mrb[8].mxu1 }
 0x1de   : > { %v8084_v62 = vpop.f32.mrb[9].mxu1 }
 0x1df   : > { %v8086_v36 = vpop.f32.mrb[10].mxu1 }
 0x1e0   : > { %v8088_v7 = vpop.f32.mrb[11].mxu1 }
 0x1e5   : > { %v8090_v5 = vpop.f32.mrb[12].mxu1 }
 0x1e6   : > { %v8092_v23 = vpop.f32.mrb[13].mxu1 }
 0x1e7   : > { %v8094_v8 = vpop.f32.mrb[14].mxu1 }
 0x1e8   : > { %v8096_v10 = vpop.f32.mrb[15].mxu1 }
 0x1ed   : > { %v8098_v11 = vpop.f32.mrb[16].mxu1 }
 0x1ee   : > { %v8100_v41 = vpop.f32.mrb[17].mxu1 }
 0x1ef   : > { %v8102_v45 = vpop.f32.mrb[18].mxu1 }
 0x1f0   : > { %v8104_v1 = vpop.f32.mrb[19].mxu1 }
 0x1f5   : > { %v8106_v13 = vpop.f32.mrb[20].mxu1 }
 0x1f6   : > { %v8108_v17 = vpop.f32.mrb[21].mxu1 }
 0x1f7   : > { %v8110_v19 = vpop.f32.mrb[22].mxu1 }
 0x1f8   : > { %v8112_v49 = vpop.f32.mrb[23].mxu1 }
 0x1fd   : > { %v8114_v20 = vpop.f32.mrb[24].mxu1 }
 0x1fe   : > { %v8116_v12 = vpop.f32.mrb[25].mxu1 }
 0x1ff   : > { %v8118_v9 = vpop.f32.mrb[26].mxu1 }
 0x200   : > { %v8120_v14 = vpop.f32.mrb[27].mxu1 }
 0x205   : > { %v8122_v26 = vpop.f32.mrb[28].mxu1 }
 0x206   : > { %v8124_v52 = vpop.f32.mrb[29].mxu1 }
 0x207   : > { %v8126_v29 = vpop.f32.mrb[30].mxu1 }
 0x208   : > { %v8128_v57 = vpop.f32.mrb[31].mxu1 }
 0x211   : > { %v4325_v32 = vpop.f32.mrb[0].mxu0 }
 0x212   : > { %v5954_v37 = vadd.f32 %v5953_v48, %v4325_v32  ;;  %v4327_v46 = vpop.f32.mrb[1].mxu0 }
 0x213   : > { %v5956_v47 = vadd.f32 %v5955_v35, %v4327_v46  ;;  %v4329_v22 = vpop.f32.mrb[2].mxu0 }
 0x214   : > { %vm4484_vm6 = vcmp.ge.f32.partialorder %v5954_v37, 0.0  ;;  %v5958_v27 = vadd.f32 %v5957_v40, %v4329_v22  ;;  %v4331_v24 = vpop.f32.mrb[3].mxu0 }
 0x215   : > { %v5743_v58 = vsel %vm4484_vm6, 1.0, %v6715_v50  ;;  %v5960_v51 = vadd.f32 %v5959_v38, %v4331_v24 }
 0x216   : > { %v4580_v53 = vmul.f32 %v5956_v47, %v5743_v58  ;;  %vm4485_vm7 = vcmp.ge.f32.partialorder %v5958_v27, 0.0  ;;  %v5810_v47 = vld [vmem:[%s6791_s6 + $0x14] sm:$0x1] }
 0x217   : > { %v5744_v39 = vsel %vm4485_vm7, 1.0, %v6715_v50 }
 0x218   : > { %v5889_v30 = vpack.c.bf16 %v4580_v53, %v4580_v53  ;;  %v4581_v54 = vmul.f32 %v5960_v51, %v5744_v39  ;;  %v5969_v51 = vadd.f32 %v8082_v0, %v8133_v56  ;;  %v5971_v53 = vadd.f32 %v8084_v62, %v8135_v31 }
 0x219   : > { %v4335_v60 = vpop.f32.mrb[4].mxu0  ;;  %v5975_v0 = vadd.f32 %v8088_v7, %v8135_v31 }
 0x21a   : > { %v4766_v34 = vshrl.u32 %v5889_v30, 16  ;;  %v5890_v18 = vpack.c.bf16 %v4581_v54, %v4581_v54  ;;  %v5962_v28 = vadd.f32 %v5961_v42, %v4335_v60  ;;  %v4337_v61 = vpop.f32.mrb[5].mxu0  ;;  %v4769_v4 = vshll.u32 %v5889_v30, 16 }
 0x21b   : > { %v5964_v16 = vadd.f32 %v5963_v59, %v4337_v61  ;;  %v4339_v21 = vpop.f32.mrb[6].mxu0  ;;  %v5973_v30 = vadd.f32 %v8086_v36, %v8133_v56 }
 0x21c   : > { %v4768_v55 = vrot.slane %v4766_v34, 7  ;;  %v4774_v25 = vshrl.u32 %v5890_v18, 16  ;;  %vm4486_vm13 = vcmp.ge.f32.partialorder %v5962_v28, 0.0  ;;  %v4341_v43 = vpop.f32.mrb[7].mxu0  ;;  %v5966_v6 = vadd.f32 %v5965_v63, %v4339_v21  ;;  %v5812_v21 = vld [vmem:[%s6791_s6 + $0x18] sm:$0xf] }
 0x21d   : > { %v5745_v44 = vsel %vm4486_vm13, 1.0, %v6715_v50  ;;  %v5968_v3 = vadd.f32 %v5967_v2, %v4341_v43  ;;  %v4777_v40 = vshll.u32 %v5890_v18, 16 }
 0x21e   : > { %v4771_v48 = vor.u32 %v4769_v4, %v4768_v55  ;;  %v4776_v32 = vrot.slane %v4774_v25, 7  ;;  %v4582_v37 = vmul.f32 %v5964_v16, %v5745_v44  ;;  %v4772_v46 = vrot.slane %v4768_v55, 4 }
 0x21f   : > { %vm4487_vm1 = vcmp.ge.f32.partialorder %v5966_v6, 0.0  ;;  %v5977_v6 = vadd.f32 %v8090_v5, %v8133_v56  ;;  %v5815_v5 = vld [vmem:[%s6791_s6 + $0x20] sm:$0x1] }
 0x220   : > { %v5090_v22 = vsel %vm8151_vm14, %v4771_v48, %v5807_v33  ;;  %v4779_v27 = vor.u32 %v4777_v40, %v4776_v32  ;;  %v4781_v24 = vrot.slane %v4776_v32, 4  ;;  %v5891_v58 = vpack.c.bf16 %v4582_v37, %v4582_v37 }
 0x221   : > { %5808 = vst [vmem:[%s6791_s6 + $0xc] sm:$0xf] %v5090_v22  ;;  %v5746_v39 = vsel %vm4487_vm1, 1.0, %v6715_v50  ;;  %v4345_v42 = vpop.f32.mrb[8].mxu0  ;;  %v5981_v40 = vadd.f32 %v8094_v8, %v8133_v56 }
 0x222   : > { %v4780_v54 = vsel %vm8159_vm15, %v4772_v46, %v4779_v27  ;;  %v5096_v59 = vsel %vm8165_vm0, %v4781_v24, %v5810_v47  ;;  %v4783_v60 = vshrl.u32 %v5891_v58, 16  ;;  %v4347_v34 = vpop.f32.mrb[9].mxu0  ;;  %v4583_v62 = vmul.f32 %v5968_v3, %v5746_v39 }
 0x223   : > { %5809 = vst [vmem:[%s6791_s6 + $0x10] sm:$0xf] %v4780_v54  ;;  %5811 = vst [vmem:[%s6791_s6 + $0x14] sm:$0x1] %v5096_v59  ;;  %v5970_v18 = vadd.f32 %v5969_v51, %v4345_v42  ;;  %v5972_v28 = vadd.f32 %v5971_v53, %v4347_v34  ;;  %v4349_v61 = vpop.f32.mrb[10].mxu0  ;;  %v4786_v36 = vshll.u32 %v5891_v58, 16  ;;  %v5979_v3 = vadd.f32 %v8092_v23, %v8135_v31 }
 0x224   : > { %v4785_v63 = vrot.slane %v4783_v60, 7  ;;  %v5974_v2 = vadd.f32 %v5973_v30, %v4349_v61  ;;  %v4351_v16 = vpop.f32.mrb[11].mxu0  ;;  %v5892_v55 = vpack.c.bf16 %v4583_v62, %v4583_v62  ;;  %v5983_v27 = vadd.f32 %v8096_v10, %v8135_v31 }
 0x225   : > { %vm4488_vm2 = vcmp.ge.f32.partialorder %v5970_v18, 0.0  ;;  %v5976_v4 = vadd.f32 %v5975_v0, %v4351_v16 }
 0x226   : > { %v4788_v25 = vor.u32 %v4786_v36, %v4785_v63  ;;  %v5747_v43 = vsel %vm4488_vm2, 1.0, %v6715_v50  ;;  %vm4489_vm3 = vcmp.ge.f32.partialorder %v5974_v2, 0.0  ;;  %v4791_v7 = vshrl.u32 %v5892_v55, 16 }
 0x227   : > { %v4584_v33 = vmul.f32 %v5972_v28, %v5747_v43  ;;  %v5748_v44 = vsel %vm4489_vm3, 1.0, %v6715_v50  ;;  %v4794_v46 = vshll.u32 %v5892_v55, 16  ;;  %v4789_v24 = vrot.slane %v4785_v63, 4  ;;  %v5817_v28 = vld [vmem:[%s6791_s6 + $0x24] sm:$0xf] }
 0x228   : > { %v5099_v48 = vsel %vm8151_vm14, %v4788_v25, %v5812_v21  ;;  %v4585_v32 = vmul.f32 %v5976_v4, %v5748_v44  ;;  %v4793_v37 = vrot.slane %v4791_v7, 7  ;;  %v5820_v55 = vld [vmem:[%s6791_s6 + $0x2c] sm:$0x1]  ;;  %v5985_v7 = vadd.f32 %v8098_v11, %v8133_v56 }
 0x229   : > { %5813 = vst [vmem:[%s6791_s6 + $0x18] sm:$0xf] %v5099_v48  ;;  %v5893_v47 = vpack.c.bf16 %v4584_v33, %v4584_v33  ;;  %v4355_v22 = vpop.f32.mrb[12].mxu0  ;;  %v5987_v33 = vadd.f32 %v8100_v41, %v8135_v31  ;;  %v5989_v48 = vadd.f32 %v8102_v45, %v8133_v56  ;;  %v5991_v41 = vadd.f32 %v8104_v1, %v8135_v31 }
 0x22a   : > { %v5894_v58 = vpack.c.bf16 %v4585_v32, %v4585_v32  ;;  %v5978_v51 = vadd.f32 %v5977_v6, %v4355_v22  ;;  %v4357_v23 = vpop.f32.mrb[13].mxu0  ;;  %v4796_v53 = vor.u32 %v4794_v46, %v4793_v37  ;;  %v4798_v39 = vrot.slane %v4793_v37, 4 }
 0x22b   : > { %v4800_v42 = vshrl.u32 %v5893_v47, 16  ;;  %v4803_v8 = vshll.u32 %v5893_v47, 16  ;;  %v4359_v30 = vpop.f32.mrb[14].mxu0  ;;  %v5980_v60 = vadd.f32 %v5979_v3, %v4357_v23 }
 0x22c   : > { %v4808_v54 = vshrl.u32 %v5894_v58, 16  ;;  %v4811_v59 = vshll.u32 %v5894_v58, 16  ;;  %vm4490_vm4 = vcmp.ge.f32.partialorder %v5978_v51, 0.0  ;;  %v4361_v34 = vpop.f32.mrb[15].mxu0  ;;  %v4797_v10 = vsel %vm8159_vm15, %v4789_v24, %v4796_v53  ;;  %v5822_v51 = vld [vmem:[%s6791_s6 + $0x30] sm:$0xf] }
 0x22d   : > { %v5103_v0 = vsel %vm8165_vm0, %v4798_v39, %v5815_v5  ;;  %v4802_v62 = vrot.slane %v4800_v42, 7  ;;  %v5749_v18 = vsel %vm4490_vm4, 1.0, %v6715_v50  ;;  %5814 = vst [vmem:[%s6791_s6 + $0x1c] sm:$0xf] %v4797_v10  ;;  %v5982_v36 = vadd.f32 %v5981_v40, %v4359_v30 }
 0x22e   : > { %5816 = vst [vmem:[%s6791_s6 + $0x20] sm:$0x1] %v5103_v0  ;;  %v4810_v61 = vrot.slane %v4808_v54, 7  ;;  %v4586_v63 = vmul.f32 %v5980_v60, %v5749_v18  ;;  %v5984_v2 = vadd.f32 %v5983_v27, %v4361_v34  ;;  %v5993_v54 = vadd.f32 %v8106_v13, %v8133_v56  ;;  %v5825_v13 = vld [vmem:[%s6791_s6 + $0x38] sm:$0x1] }
 0x22f   : > { %v4805_v16 = vor.u32 %v4803_v8, %v4802_v62  ;;  %v4806_v21 = vrot.slane %v4802_v62, 4  ;;  %vm4491_vm5 = vcmp.ge.f32.partialorder %v5982_v36, 0.0  ;;  %v5997_v10 = vadd.f32 %v8110_v19, %v8133_v56 }
 0x230   : > { %v4813_v4 = vor.u32 %v4811_v59, %v4810_v61  ;;  %v4815_v25 = vrot.slane %v4810_v61, 4  ;;  %v5895_v43 = vpack.c.bf16 %v4586_v63, %v4586_v63  ;;  %v5750_v6 = vsel %vm4491_vm5, 1.0, %v6715_v50 }
 0x231   : > { %v5106_v44 = vsel %vm8151_vm14, %v4805_v16, %v5817_v28  ;;  %v4365_v3 = vpop.f32.mrb[16].mxu0  ;;  %v4587_v46 = vmul.f32 %v5984_v2, %v5750_v6  ;;  %v5995_v59 = vadd.f32 %v8108_v17, %v8135_v31  ;;  %v5999_v61 = vadd.f32 %v8112_v49, %v8135_v31 }
 0x232   : > { %5818 = vst [vmem:[%s6791_s6 + $0x24] sm:$0xf] %v5106_v44  ;;  %v4814_v32 = vsel %vm8159_vm15, %v4806_v21, %v4813_v4  ;;  %v5110_v11 = vsel %vm8165_vm0, %v4815_v25, %v5820_v55  ;;  %v4817_v40 = vshrl.u32 %v5895_v43, 16  ;;  %v4367_v37 = vpop.f32.mrb[17].mxu0  ;;  %v5986_v47 = vadd.f32 %v5985_v7, %v4365_v3 }
 0x233   : > { %5819 = vst [vmem:[%s6791_s6 + $0x28] sm:$0xf] %v4814_v32  ;;  %5821 = vst [vmem:[%s6791_s6 + $0x2c] sm:$0x1] %v5110_v11  ;;  %v5988_v22 = vadd.f32 %v5987_v33, %v4367_v37  ;;  %v4369_v27 = vpop.f32.mrb[18].mxu0  ;;  %v4820_v24 = vshll.u32 %v5895_v43, 16  ;;  %v5896_v23 = vpack.c.bf16 %v4587_v46, %v4587_v46 }
 0x234   : > { %v4819_v45 = vrot.slane %v4817_v40, 7  ;;  %v5990_v5 = vadd.f32 %v5989_v48, %v4369_v27  ;;  %v4371_v58 = vpop.f32.mrb[19].mxu0  ;;  %vm4492_vm6 = vcmp.ge.f32.partialorder %v5986_v47, 0.0  ;;  %v5827_v48 = vld [vmem:[%s6791_s6 + $0x3c] sm:$0xf] }
 0x235   : > { %v5992_v53 = vadd.f32 %v5991_v41, %v4371_v58  ;;  %v5751_v42 = vsel %vm4492_vm6, 1.0, %v6715_v50  ;;  %v4825_v1 = vshrl.u32 %v5896_v23, 16  ;;  %v4828_v62 = vshll.u32 %v5896_v23, 16  ;;  %v5830_v47 = vld [vmem:[%s6791_s6 + $0x44] sm:$0x1] }
 0x236   : > { %v4822_v39 = vor.u32 %v4820_v24, %v4819_v45  ;;  %vm4493_vm7 = vcmp.ge.f32.partialorder %v5990_v5, 0.0  ;;  %v4588_v8 = vmul.f32 %v5988_v22, %v5751_v42  ;;  %v4823_v63 = vrot.slane %v4819_v45, 4 }
 0x237   : > { %v5752_v30 = vsel %vm4493_vm7, 1.0, %v6715_v50  ;;  %v4827_v0 = vrot.slane %v4825_v1, 7  ;;  %v6001_v24 = vadd.f32 %v8114_v20, %v8133_v56  ;;  %v6003_v5 = vadd.f32 %v8116_v12, %v8135_v31 }
 0x238   : > { %v5113_v60 = vsel %vm8151_vm14, %v4822_v39, %v5822_v51  ;;  %v4589_v34 = vmul.f32 %v5992_v53, %v5752_v30  ;;  %v5897_v18 = vpack.c.bf16 %v4588_v8, %v4588_v8  ;;  %v6005_v53 = vadd.f32 %v8118_v9, %v8133_v56 }
 0x239   : > { %5823 = vst [vmem:[%s6791_s6 + $0x30] sm:$0xf] %v5113_v60  ;;  %v4375_v28 = vpop.f32.mrb[20].mxu0  ;;  %v4830_v16 = vor.u32 %v4828_v62, %v4827_v0  ;;  %v4832_v21 = vrot.slane %v4827_v0, 4  ;;  %v6007_v12 = vadd.f32 %v8120_v14, %v8135_v31  ;;  %v5832_v0 = vld [vmem:[%s6791_s6 + $0x48] sm:$0xf] }
 0x23a   : > { %v5898_v36 = vpack.c.bf16 %v4589_v34, %v4589_v34  ;;  %v5994_v2 = vadd.f32 %v5993_v54, %v4375_v28  ;;  %v4377_v17 = vpop.f32.mrb[21].mxu0  ;;  %v4834_v55 = vshrl.u32 %v5897_v18, 16  ;;  %v4837_v19 = vshll.u32 %v5897_v18, 16 }
 0x23b   : > { %v4379_v4 = vpop.f32.mrb[22].mxu0  ;;  %v5996_v7 = vadd.f32 %v5995_v59, %v4377_v17  ;;  %v4831_v49 = vsel %vm8159_vm15, %v4823_v63, %v4830_v16  ;;  %v5117_v44 = vsel %vm8165_vm0, %v4832_v21, %v5825_v13  ;;  %v6013_v21 = vadd.f32 %v8126_v29, %v8133_v56 }
 0x23c   : > { %v4842_v25 = vshrl.u32 %v5898_v36, 16  ;;  %v4845_v43 = vshll.u32 %v5898_v36, 16  ;;  %vm4494_vm8 = vcmp.ge.f32.partialorder %v5994_v2, 0.0  ;;  %v4381_v33 = vpop.f32.mrb[23].mxu0  ;;  %v4836_v6 = vrot.slane %v4834_v55, 7 }
 0x23d   : > { %v5753_v3 = vsel %vm4494_vm8, 1.0, %v6715_v50  ;;  %5824 = vst [vmem:[%s6791_s6 + $0x34] sm:$0xf] %v4831_v49  ;;  %5826 = vst [vmem:[%s6791_s6 + $0x38] sm:$0x1] %v5117_v44  ;;  %v5998_v40 = vadd.f32 %v5997_v10, %v4379_v4  ;;  %v6000_v37 = vadd.f32 %v5999_v61, %v4381_v33  ;;  %v6009_v36 = vadd.f32 %v8122_v26, %v8133_v56 }
 0x23e   : > { %v4844_v32 = vrot.slane %v4842_v25, 7  ;;  %v4590_v11 = vmul.f32 %v5996_v7, %v5753_v3  ;;  %v4839_v41 = vor.u32 %v4837_v19, %v4836_v6  ;;  %v4840_v46 = vrot.slane %v4836_v6, 4  ;;  %v5835_v26 = vld [vmem:[%s6791_s6 + $0x50] sm:$0x1] }
 0x23f   : > { %vm4495_vm9 = vcmp.ge.f32.partialorder %v5998_v40, 0.0  ;;  %v6011_v2 = vadd.f32 %v8124_v52, %v8135_v31 }
 0x240   : > { %v4847_v22 = vor.u32 %v4845_v43, %v4844_v32  ;;  %v4849_v27 = vrot.slane %v4844_v32, 4  ;;  %v5899_v45 = vpack.c.bf16 %v4590_v11, %v4590_v11  ;;  %v5120_v58 = vsel %vm8151_vm14, %v4839_v41, %v5827_v48 }
 0x241   : > { %v5754_v51 = vsel %vm4495_vm9, 1.0, %v6715_v50  ;;  %v4385_v23 = vpop.f32.mrb[24].mxu0  ;;  %5828 = vst [vmem:[%s6791_s6 + $0x3c] sm:$0xf] %v5120_v58  ;;  %v6015_v43 = vadd.f32 %v8128_v57, %v8135_v31 }
 0x242   : > { %v4848_v39 = vsel %vm8159_vm15, %v4840_v46, %v4847_v22  ;;  %v5124_v20 = vsel %vm8165_vm0, %v4849_v27, %v5830_v47  ;;  %v4851_v42 = vshrl.u32 %v5899_v45, 16  ;;  %v4387_v1 = vpop.f32.mrb[25].mxu0  ;;  %v4591_v8 = vmul.f32 %v6000_v37, %v5754_v51  ;;  %v5837_v27 = vld [vmem:[%s6791_s6 + $0x54] sm:$0xf] }
 0x243   : > { %5829 = vst [vmem:[%s6791_s6 + $0x40] sm:$0xf] %v4848_v39  ;;  %5831 = vst [vmem:[%s6791_s6 + $0x44] sm:$0x1] %v5124_v20  ;;  %v6002_v30 = vadd.f32 %v6001_v24, %v4385_v23  ;;  %v6004_v54 = vadd.f32 %v6003_v5, %v4387_v1  ;;  %v4389_v59 = vpop.f32.mrb[26].mxu0  ;;  %v4854_v60 = vshll.u32 %v5899_v45, 16 }
 0x244   : > { %v4853_v9 = vrot.slane %v4851_v42, 7  ;;  %v6006_v34 = vadd.f32 %v6005_v53, %v4389_v59  ;;  %v4391_v10 = vpop.f32.mrb[27].mxu0  ;;  %v5900_v62 = vpack.c.bf16 %v4591_v8, %v4591_v8  ;;  %v5840_v39 = vld [vmem:[%s6791_s6 + $0x5c] sm:$0x1] }
 0x245   : > { %vm4496_vm10 = vcmp.ge.f32.partialorder %v6002_v30, 0.0  ;;  %v6008_v18 = vadd.f32 %v6007_v12, %v4391_v10 }
 0x246   : > { %v4856_v28 = vor.u32 %v4854_v60, %v4853_v9  ;;  %v5755_v61 = vsel %vm4496_vm10, 1.0, %v6715_v50  ;;  %vm4497_vm11 = vcmp.ge.f32.partialorder %v6006_v34, 0.0  ;;  %v4859_v14 = vshrl.u32 %v5900_v62, 16 }
 0x247   : > { %v4592_v63 = vmul.f32 %v6004_v54, %v5755_v61  ;;  %v5756_v13 = vsel %vm4497_vm11, 1.0, %v6715_v50  ;;  %v4862_v19 = vshll.u32 %v5900_v62, 16  ;;  %v4857_v7 = vrot.slane %v4853_v9, 4 }
 0x248   : > { %v5127_v17 = vsel %vm8151_vm14, %v4856_v28, %v5832_v0  ;;  %v4593_v16 = vmul.f32 %v6008_v18, %v5756_v13  ;;  %v4861_v55 = vrot.slane %v4859_v14, 7 }
 0x249   : > { %5833 = vst [vmem:[%s6791_s6 + $0x48] sm:$0xf] %v5127_v17  ;;  %v5901_v4 = vpack.c.bf16 %v4592_v63, %v4592_v63  ;;  %v4395_v25 = vpop.f32.mrb[28].mxu0 }
 0x24a   : > { %v5902_v33 = vpack.c.bf16 %v4593_v16, %v4593_v16  ;;  %v6010_v49 = vadd.f32 %v6009_v36, %v4395_v25  ;;  %v4397_v52 = vpop.f32.mrb[29].mxu0  ;;  %v4864_v44 = vor.u32 %v4862_v19, %v4861_v55  ;;  %v4866_v6 = vrot.slane %v4861_v55, 4 }
 0x24b   : > { %v4868_v3 = vshrl.u32 %v5901_v4, 16  ;;  %v4871_v29 = vshll.u32 %v5901_v4, 16  ;;  %v4399_v48 = vpop.f32.mrb[30].mxu0  ;;  %v6012_v40 = vadd.f32 %v6011_v2, %v4397_v52 }
 0x24c   : > { %v4876_v32 = vshrl.u32 %v5902_v33, 16  ;;  %v4879_v11 = vshll.u32 %v5902_v33, 16  ;;  %vm4498_vm12 = vcmp.ge.f32.partialorder %v6010_v49, 0.0  ;;  %v4401_v37 = vpop.f32.mrb[31].mxu0  ;;  %v4865_v57 = vsel %vm8159_vm15, %v4857_v7, %v4864_v44 }
 0x24d   : > { %v5131_v41 = vsel %vm8165_vm0, %v4866_v6, %v5835_v26  ;;  %v4870_v46 = vrot.slane %v4868_v3, 7  ;;  %v5757_v47 = vsel %vm4498_vm12, 1.0, %v6715_v50  ;;  %v4019_v22 = vpop.f32.mrb[32].mxu1  ;;  %5834 = vst [vmem:[%s6791_s6 + $0x4c] sm:$0xf] %v4865_v57  ;;  %v6014_v5 = vadd.f32 %v6013_v21, %v4399_v48 }
 0x24e   : > { %5836 = vst [vmem:[%s6791_s6 + $0x50] sm:$0x1] %v5131_v41  ;;  %v4878_v45 = vrot.slane %v4876_v32, 7  ;;  %v4594_v24 = vmul.f32 %v6012_v40, %v5757_v47  ;;  %v6016_v58 = vadd.f32 %v6015_v43, %v4401_v37  ;;  %v4021_v51 = vpop.f32.mrb[33].mxu1  ;;  %v6017_v20 = vadd.f32 %v4019_v22, %v8133_v56  ;;  %v5842_v21 = vld [vmem:[%s6791_s6 + $0x60] sm:$0xf] }
 0x24f   : > { %v4873_v23 = vor.u32 %v4871_v29, %v4870_v46  ;;  %v4874_v53 = vrot.slane %v4870_v46, 4  ;;  %v6019_v42 = vadd.f32 %v4021_v51, %v8135_v31  ;;  %v4023_v1 = vpop.f32.mrb[34].mxu1  ;;  %vm4499_vm13 = vcmp.ge.f32.partialorder %v6014_v5, 0.0  ;;  %v5845_v41 = vld [vmem:[%s6791_s6 + $0x68] sm:$0x1] }
 0x250   : > { %v4881_v12 = vor.u32 %v4879_v11, %v4878_v45  ;;  %v4883_v8 = vrot.slane %v4878_v45, 4  ;;  %v5903_v30 = vpack.c.bf16 %v4594_v24, %v4594_v24  ;;  %v4025_v54 = vpop.f32.mrb[35].mxu1  ;;  %v5758_v9 = vsel %vm4499_vm13, 1.0, %v6715_v50 }
 0x251   : > { %v5134_v59 = vsel %vm8151_vm14, %v4873_v23, %v5837_v27  ;;  %v4405_v60 = vpop.f32.mrb[32].mxu0  ;;  %v6021_v34 = vadd.f32 %v4023_v1, %v8133_v56  ;;  %v6023_v10 = vadd.f32 %v4025_v54, %v8135_v31  ;;  %v4595_v61 = vmul.f32 %v6016_v58, %v5758_v9 }
 0x252   : > { %5838 = vst [vmem:[%s6791_s6 + $0x54] sm:$0xf] %v5134_v59  ;;  %v4882_v0 = vsel %vm8159_vm15, %v4874_v53, %v4881_v12  ;;  %v5138_v62 = vsel %vm8165_vm0, %v4883_v8, %v5840_v39  ;;  %v4885_v18 = vshrl.u32 %v5903_v30, 16  ;;  %v4407_v28 = vpop.f32.mrb[33].mxu0  ;;  %v6018_v14 = vadd.f32 %v6017_v20, %v4405_v60  ;;  %v5847_v59 = vld [vmem:[%s6791_s6 + $0x6c] sm:$0xf] }
 0x253   : > { %5839 = vst [vmem:[%s6791_s6 + $0x58] sm:$0xf] %v4882_v0  ;;  %5841 = vst [vmem:[%s6791_s6 + $0x5c] sm:$0x1] %v5138_v62  ;;  %v6020_v63 = vadd.f32 %v6019_v42, %v4407_v28  ;;  %v4409_v13 = vpop.f32.mrb[34].mxu0  ;;  %v4888_v2 = vshll.u32 %v5903_v30, 16  ;;  %v5904_v55 = vpack.c.bf16 %v4595_v61, %v4595_v61 }
 0x254   : > { %v4887_v36 = vrot.slane %v4885_v18, 7  ;;  %v6022_v17 = vadd.f32 %v6021_v34, %v4409_v13  ;;  %v4411_v16 = vpop.f32.mrb[35].mxu0  ;;  %vm4500_vm1 = vcmp.ge.f32.partialorder %v6018_v14, 0.0  ;;  %v5850_v28 = vld [vmem:[%s6791_s6 + $0x74] sm:$0x1] }
 0x255   : > { %v6024_v19 = vadd.f32 %v6023_v10, %v4411_v16  ;;  %v4029_v4 = vpop.f32.mrb[36].mxu1  ;;  %v5759_v43 = vsel %vm4500_vm1, 1.0, %v6715_v50  ;;  %v4893_v26 = vshrl.u32 %v5904_v55, 16  ;;  %v4896_v40 = vshll.u32 %v5904_v55, 16 }
 0x256   : > { %v4890_v25 = vor.u32 %v4888_v2, %v4887_v36  ;;  %vm4501_vm2 = vcmp.ge.f32.partialorder %v6022_v17, 0.0  ;;  %v4031_v7 = vpop.f32.mrb[37].mxu1  ;;  %v4596_v33 = vmul.f32 %v6020_v63, %v5759_v43  ;;  %v6025_v3 = vadd.f32 %v4029_v4, %v8133_v56 }
 0x257   : > { %v5760_v49 = vsel %vm4501_vm2, 1.0, %v6715_v50  ;;  %v4033_v52 = vpop.f32.mrb[38].mxu1  ;;  %v6027_v29 = vadd.f32 %v4031_v7, %v8135_v31  ;;  %v4891_v32 = vrot.slane %v4887_v36, 4  ;;  %v4895_v11 = vrot.slane %v4893_v26, 7 }
 0x258   : > { %v5141_v44 = vsel %vm8151_vm14, %v4890_v25, %v5842_v21  ;;  %v4597_v6 = vmul.f32 %v6024_v19, %v5760_v49  ;;  %v4035_v48 = vpop.f32.mrb[39].mxu1  ;;  %v5905_v37 = vpack.c.bf16 %v4596_v33, %v4596_v33  ;;  %v6029_v27 = vadd.f32 %v4033_v52, %v8133_v56 }
 0x259   : > { %5843 = vst [vmem:[%s6791_s6 + $0x60] sm:$0xf] %v5141_v44  ;;  %v4415_v57 = vpop.f32.mrb[36].mxu0  ;;  %v6031_v45 = vadd.f32 %v4035_v48, %v8135_v31  ;;  %v4898_v24 = vor.u32 %v4896_v40, %v4895_v11  ;;  %v4900_v5 = vrot.slane %v4895_v11, 4 }
 0x25a   : > { %v5906_v46 = vpack.c.bf16 %v4597_v6, %v4597_v6  ;;  %v6026_v47 = vadd.f32 %v6025_v3, %v4415_v57  ;;  %v4417_v22 = vpop.f32.mrb[37].mxu0  ;;  %v4902_v58 = vshrl.u32 %v5905_v37, 16  ;;  %v4905_v51 = vshll.u32 %v5905_v37, 16 }
 0x25b   : > { %v4419_v23 = vpop.f32.mrb[38].mxu0  ;;  %v6028_v20 = vadd.f32 %v6027_v29, %v4417_v22  ;;  %v4899_v1 = vsel %vm8159_vm15, %v4891_v32, %v4898_v24  ;;  %v5145_v12 = vsel %vm8165_vm0, %v4900_v5, %v5845_v41  ;;  %v5852_v32 = vld [vmem:[%s6791_s6 + $0x78] sm:$0xf] }
 0x25c   : > { %v4910_v53 = vshrl.u32 %v5906_v46, 16  ;;  %v4913_v39 = vshll.u32 %v5906_v46, 16  ;;  %vm4502_vm3 = vcmp.ge.f32.partialorder %v6026_v47, 0.0  ;;  %v4421_v42 = vpop.f32.mrb[39].mxu0  ;;  %v4904_v8 = vrot.slane %v4902_v58, 7 }
 0x25d   : > { %v5761_v30 = vsel %vm4502_vm3, 1.0, %v6715_v50  ;;  %v4039_v54 = vpop.f32.mrb[40].mxu1  ;;  %5844 = vst [vmem:[%s6791_s6 + $0x64] sm:$0xf] %v4899_v1  ;;  %5846 = vst [vmem:[%s6791_s6 + $0x68] sm:$0x1] %v5145_v12  ;;  %v6030_v34 = vadd.f32 %v6029_v27, %v4419_v23  ;;  %v6032_v10 = vadd.f32 %v6031_v45, %v4421_v42 }
 0x25e   : > { %v4912_v9 = vrot.slane %v4910_v53, 7  ;;  %v4598_v60 = vmul.f32 %v6028_v20, %v5761_v30  ;;  %v4041_v0 = vpop.f32.mrb[41].mxu1  ;;  %v4907_v62 = vor.u32 %v4905_v51, %v4904_v8  ;;  %v4908_v18 = vrot.slane %v4904_v8, 4  ;;  %v5855_v12 = vld [vmem:[%s6791_s6 + $0x80] sm:$0x1] }
 0x25f   : > { %v6033_v61 = vadd.f32 %v4039_v54, %v8133_v56  ;;  %v6035_v14 = vadd.f32 %v4041_v0, %v8135_v31  ;;  %v4043_v63 = vpop.f32.mrb[42].mxu1  ;;  %vm4503_vm4 = vcmp.ge.f32.partialorder %v6030_v34, 0.0 }
 0x260   : > { %v4915_v13 = vor.u32 %v4913_v39, %v4912_v9  ;;  %v4917_v36 = vrot.slane %v4912_v9, 4  ;;  %v5907_v2 = vpack.c.bf16 %v4598_v60, %v4598_v60  ;;  %v4045_v17 = vpop.f32.mrb[43].mxu1  ;;  %v5148_v16 = vsel %vm8151_vm14, %v4907_v62, %v5847_v59 }
 0x261   : > { %v5762_v21 = vsel %vm4503_vm4, 1.0, %v6715_v50  ;;  %v4425_v55 = vpop.f32.mrb[40].mxu0  ;;  %v6037_v19 = vadd.f32 %v4043_v63, %v8133_v56  ;;  %v6039_v4 = vadd.f32 %v4045_v17, %v8135_v31  ;;  %5848 = vst [vmem:[%s6791_s6 + $0x6c] sm:$0xf] %v5148_v16  ;;  %v5857_v16 = vld [vmem:[%s6791_s6 + $0x84] sm:$0xf] }
 0x262   : > { %v4916_v25 = vsel %vm8159_vm15, %v4908_v18, %v4915_v13  ;;  %v5152_v43 = vsel %vm8165_vm0, %v4917_v36, %v5850_v28  ;;  %v4919_v7 = vshrl.u32 %v5907_v2, 16  ;;  %v4427_v26 = vpop.f32.mrb[41].mxu0  ;;  %v4599_v33 = vmul.f32 %v6032_v10, %v5762_v21 }
 0x263   : > { %5849 = vst [vmem:[%s6791_s6 + $0x70] sm:$0xf] %v4916_v25  ;;  %5851 = vst [vmem:[%s6791_s6 + $0x74] sm:$0x1] %v5152_v43  ;;  %v6034_v49 = vadd.f32 %v6033_v61, %v4425_v55  ;;  %v6036_v52 = vadd.f32 %v6035_v14, %v4427_v26  ;;  %v4429_v44 = vpop.f32.mrb[42].mxu0  ;;  %v4922_v3 = vshll.u32 %v5907_v2, 16 }
 0x264   : > { %v4921_v6 = vrot.slane %v4919_v7, 7  ;;  %v6038_v29 = vadd.f32 %v6037_v19, %v4429_v44  ;;  %v4431_v48 = vpop.f32.mrb[43].mxu0  ;;  %v5908_v11 = vpack.c.bf16 %v4599_v33, %v4599_v33  ;;  %v5860_v26 = vld [vmem:[%s6791_s6 + $0x8c] sm:$0x1] }
 0x265   : > { %vm4504_vm5 = vcmp.ge.f32.partialorder %v6034_v49, 0.0  ;;  %v6040_v40 = vadd.f32 %v6039_v4, %v4431_v48  ;;  %v4049_v37 = vpop.f32.mrb[44].mxu1 }
 0x266   : > { %v4924_v57 = vor.u32 %v4922_v3, %v4921_v6  ;;  %v5763_v41 = vsel %vm4504_vm5, 1.0, %v6715_v50  ;;  %vm4505_vm6 = vcmp.ge.f32.partialorder %v6038_v29, 0.0  ;;  %v4051_v46 = vpop.f32.mrb[45].mxu1  ;;  %v4927_v47 = vshrl.u32 %v5908_v11, 16 }
 0x267   : > { %v4600_v22 = vmul.f32 %v6036_v52, %v5763_v41  ;;  %v5764_v27 = vsel %vm4505_vm6, 1.0, %v6715_v50  ;;  %v4053_v45 = vpop.f32.mrb[46].mxu1  ;;  %v6041_v58 = vadd.f32 %v4049_v37, %v8133_v56  ;;  %v6043_v51 = vadd.f32 %v4051_v46, %v8135_v31 }
 0x268   : > { %v5155_v24 = vsel %vm8151_vm14, %v4924_v57, %v5852_v32  ;;  %v4601_v5 = vmul.f32 %v6040_v40, %v5764_v27  ;;  %v4055_v23 = vpop.f32.mrb[47].mxu1  ;;  %v4925_v53 = vrot.slane %v4921_v6, 4  ;;  %v4929_v39 = vrot.slane %v4927_v47, 7 }
 0x269   : > { %5853 = vst [vmem:[%s6791_s6 + $0x78] sm:$0xf] %v5155_v24  ;;  %v4930_v20 = vshll.u32 %v5908_v11, 16  ;;  %v5909_v42 = vpack.c.bf16 %v4600_v22, %v4600_v22  ;;  %v4435_v1 = vpop.f32.mrb[44].mxu0  ;;  %v6045_v59 = vadd.f32 %v4053_v45, %v8133_v56  ;;  %v6047_v9 = vadd.f32 %v4055_v23, %v8135_v31 }
 0x26a   : > { %v5910_v8 = vpack.c.bf16 %v4601_v5, %v4601_v5  ;;  %v6042_v30 = vadd.f32 %v6041_v58, %v4435_v1  ;;  %v4437_v54 = vpop.f32.mrb[45].mxu0  ;;  %v4934_v34 = vrot.slane %v4929_v39, 4 }
 0x26b   : > { %v4932_v60 = vor.u32 %v4930_v20, %v4929_v39  ;;  %v4936_v10 = vshrl.u32 %v5909_v42, 16  ;;  %v4939_v0 = vshll.u32 %v5909_v42, 16  ;;  %v4439_v62 = vpop.f32.mrb[46].mxu0  ;;  %v6044_v61 = vadd.f32 %v6043_v51, %v4437_v54 }
 0x26c   : > { %v4944_v18 = vshrl.u32 %v5910_v8, 16  ;;  %v4947_v28 = vshll.u32 %v5910_v8, 16  ;;  %vm4506_vm7 = vcmp.ge.f32.partialorder %v6042_v30, 0.0  ;;  %v4441_v14 = vpop.f32.mrb[47].mxu0  ;;  %v5159_v13 = vsel %vm8165_vm0, %v4934_v34, %v5855_v12 }
 0x26d   : > { %v4933_v63 = vsel %vm8159_vm15, %v4925_v53, %v4932_v60  ;;  %v4938_v36 = vrot.slane %v4936_v10, 7  ;;  %v5765_v2 = vsel %vm4506_vm7, 1.0, %v6715_v50  ;;  %v4059_v17 = vpop.f32.mrb[48].mxu1  ;;  %5856 = vst [vmem:[%s6791_s6 + $0x80] sm:$0x1] %v5159_v13  ;;  %v6046_v19 = vadd.f32 %v6045_v59, %v4439_v62 }
 0x26e   : > { %5854 = vst [vmem:[%s6791_s6 + $0x7c] sm:$0xf] %v4933_v63  ;;  %v4946_v21 = vrot.slane %v4944_v18, 7  ;;  %v4602_v55 = vmul.f32 %v6044_v61, %v5765_v2  ;;  %v6048_v4 = vadd.f32 %v6047_v9, %v4441_v14  ;;  %v4061_v25 = vpop.f32.mrb[49].mxu1  ;;  %v6049_v33 = vadd.f32 %v4059_v17, %v8133_v56  ;;  %v5862_v53 = vld [vmem:[%s6791_s6 + $0x90] sm:$0xf] }
 0x26f   : > { %v4941_v43 = vor.u32 %v4939_v0, %v4938_v36  ;;  %v4942_v7 = vrot.slane %v4938_v36, 4  ;;  %v6051_v49 = vadd.f32 %v4061_v25, %v8135_v31  ;;  %v4063_v52 = vpop.f32.mrb[50].mxu1  ;;  %vm4507_vm8 = vcmp.ge.f32.partialorder %v6046_v19, 0.0  ;;  %v5865_v13 = vld [vmem:[%s6791_s6 + $0x98] sm:$0x1] }
 0x270   : > { %v4949_v44 = vor.u32 %v4947_v28, %v4946_v21  ;;  %v4951_v6 = vrot.slane %v4946_v21, 4  ;;  %v5911_v3 = vpack.c.bf16 %v4602_v55, %v4602_v55  ;;  %v4065_v29 = vpop.f32.mrb[51].mxu1  ;;  %v5766_v32 = vsel %vm4507_vm8, 1.0, %v6715_v50 }
 0x271   : > { %v5162_v48 = vsel %vm8151_vm14, %v4941_v43, %v5857_v16  ;;  %v4445_v11 = vpop.f32.mrb[48].mxu0  ;;  %v6053_v40 = vadd.f32 %v4063_v52, %v8133_v56  ;;  %v6055_v37 = vadd.f32 %v4065_v29, %v8135_v31  ;;  %v4603_v22 = vmul.f32 %v6048_v4, %v5766_v32 }
 0x272   : > { %5858 = vst [vmem:[%s6791_s6 + $0x84] sm:$0xf] %v5162_v48  ;;  %v4950_v57 = vsel %vm8159_vm15, %v4942_v7, %v4949_v44  ;;  %v5166_v41 = vsel %vm8165_vm0, %v4951_v6, %v5860_v26  ;;  %v4953_v46 = vshrl.u32 %v5911_v3, 16  ;;  %v4447_v47 = vpop.f32.mrb[49].mxu0  ;;  %v6050_v27 = vadd.f32 %v6049_v33, %v4445_v11  ;;  %v5867_v48 = vld [vmem:[%s6791_s6 + $0x9c] sm:$0xf] }
 0x273   : > { %5859 = vst [vmem:[%s6791_s6 + $0x88] sm:$0xf] %v4950_v57  ;;  %5861 = vst [vmem:[%s6791_s6 + $0x8c] sm:$0x1] %v5166_v41  ;;  %v6052_v45 = vadd.f32 %v6051_v49, %v4447_v47  ;;  %v4449_v24 = vpop.f32.mrb[50].mxu0  ;;  %v4956_v58 = vshll.u32 %v5911_v3, 16  ;;  %v5912_v39 = vpack.c.bf16 %v4603_v22, %v4603_v22 }
 0x274   : > { %v4955_v5 = vrot.slane %v4953_v46, 7  ;;  %v6054_v51 = vadd.f32 %v6053_v40, %v4449_v24  ;;  %v4451_v23 = vpop.f32.mrb[51].mxu0  ;;  %vm4508_vm9 = vcmp.ge.f32.partialorder %v6050_v27, 0.0  ;;  %v5870_v47 = vld [vmem:[%s6791_s6 + $0xa4] sm:$0x1] }
 0x275   : > { %v6056_v20 = vadd.f32 %v6055_v37, %v4451_v23  ;;  %v4069_v42 = vpop.f32.mrb[52].mxu1  ;;  %v5767_v12 = vsel %vm4508_vm9, 1.0, %v6715_v50  ;;  %v4961_v30 = vshrl.u32 %v5912_v39, 16  ;;  %v4964_v61 = vshll.u32 %v5912_v39, 16 }
 0x276   : > { %v4958_v1 = vor.u32 %v4956_v58, %v4955_v5  ;;  %vm4509_vm10 = vcmp.ge.f32.partialorder %v6054_v51, 0.0  ;;  %v4071_v8 = vpop.f32.mrb[53].mxu1  ;;  %v4604_v54 = vmul.f32 %v6052_v45, %v5767_v12  ;;  %v6057_v10 = vadd.f32 %v4069_v42, %v8133_v56 }
 0x277   : > { %v5768_v59 = vsel %vm4509_vm10, 1.0, %v6715_v50  ;;  %v4073_v9 = vpop.f32.mrb[54].mxu1  ;;  %v6059_v0 = vadd.f32 %v4071_v8, %v8135_v31  ;;  %v4959_v18 = vrot.slane %v4955_v5, 4  ;;  %v4963_v28 = vrot.slane %v4961_v30, 7 }
 0x278   : > { %v5169_v60 = vsel %vm8151_vm14, %v4958_v1, %v5862_v53  ;;  %v4605_v34 = vmul.f32 %v6056_v20, %v5768_v59  ;;  %v4075_v62 = vpop.f32.mrb[55].mxu1  ;;  %v5913_v14 = vpack.c.bf16 %v4604_v54, %v4604_v54  ;;  %v6061_v16 = vadd.f32 %v4073_v9, %v8133_v56 }
 0x279   : > { %5863 = vst [vmem:[%s6791_s6 + $0x90] sm:$0xf] %v5169_v60  ;;  %v4455_v63 = vpop.f32.mrb[52].mxu0  ;;  %v6063_v21 = vadd.f32 %v4075_v62, %v8135_v31  ;;  %v4966_v55 = vor.u32 %v4964_v61, %v4963_v28  ;;  %v4968_v19 = vrot.slane %v4963_v28, 4 }
 0x27a   : > { %v5914_v36 = vpack.c.bf16 %v4605_v34, %v4605_v34  ;;  %v6058_v2 = vadd.f32 %v6057_v10, %v4455_v63  ;;  %v4457_v17 = vpop.f32.mrb[53].mxu0  ;;  %v4970_v4 = vshrl.u32 %v5913_v14, 16  ;;  %v4973_v25 = vshll.u32 %v5913_v14, 16 }
 0x27b   : > { %v4459_v43 = vpop.f32.mrb[54].mxu0  ;;  %v6060_v33 = vadd.f32 %v6059_v0, %v4457_v17  ;;  %v4967_v52 = vsel %vm8159_vm15, %v4959_v18, %v4966_v55  ;;  %v5173_v44 = vsel %vm8165_vm0, %v4968_v19, %v5865_v13  ;;  %v5872_v18 = vld [vmem:[%s6791_s6 + $0xa8] sm:$0xf] }
 0x27c   : > { %v4978_v7 = vshrl.u32 %v5914_v36, 16  ;;  %v4981_v26 = vshll.u32 %v5914_v36, 16  ;;  %vm4510_vm11 = vcmp.ge.f32.partialorder %v6058_v2, 0.0  ;;  %v4461_v49 = vpop.f32.mrb[55].mxu0  ;;  %v4972_v6 = vrot.slane %v4970_v4, 7 }
 0x27d   : > { %v5769_v3 = vsel %vm4510_vm11, 1.0, %v6715_v50  ;;  %v4079_v29 = vpop.f32.mrb[56].mxu1  ;;  %5864 = vst [vmem:[%s6791_s6 + $0x94] sm:$0xf] %v4967_v52  ;;  %5866 = vst [vmem:[%s6791_s6 + $0x98] sm:$0x1] %v5173_v44  ;;  %v6062_v40 = vadd.f32 %v6061_v16, %v4459_v43  ;;  %v6064_v37 = vadd.f32 %v6063_v21, %v4461_v49 }
 0x27e   : > { %v4980_v32 = vrot.slane %v4978_v7, 7  ;;  %v4606_v11 = vmul.f32 %v6060_v33, %v5769_v3  ;;  %v4081_v57 = vpop.f32.mrb[57].mxu1  ;;  %v4975_v41 = vor.u32 %v4973_v25, %v4972_v6  ;;  %v4976_v46 = vrot.slane %v4972_v6, 4  ;;  %v5875_v44 = vld [vmem:[%s6791_s6 + $0xb0] sm:$0x1] }
 0x27f   : > { %v6065_v22 = vadd.f32 %v4079_v29, %v8133_v56  ;;  %v6067_v27 = vadd.f32 %v4081_v57, %v8135_v31  ;;  %v4083_v45 = vpop.f32.mrb[58].mxu1  ;;  %vm4511_vm12 = vcmp.ge.f32.partialorder %v6062_v40, 0.0 }
 0x280   : > { %v4983_v24 = vor.u32 %v4981_v26, %v4980_v32  ;;  %v4985_v5 = vrot.slane %v4980_v32, 4  ;;  %v5915_v58 = vpack.c.bf16 %v4606_v11, %v4606_v11  ;;  %v4085_v51 = vpop.f32.mrb[59].mxu1  ;;  %v5176_v23 = vsel %vm8151_vm14, %v4975_v41, %v5867_v48 }
 0x281   : > { %v5770_v53 = vsel %vm4511_vm12, 1.0, %v6715_v50  ;;  %v4465_v39 = vpop.f32.mrb[56].mxu0  ;;  %v6069_v20 = vadd.f32 %v4083_v45, %v8133_v56  ;;  %v6071_v42 = vadd.f32 %v4085_v51, %v8135_v31  ;;  %5868 = vst [vmem:[%s6791_s6 + $0x9c] sm:$0xf] %v5176_v23 }
 0x282   : > { %v4984_v1 = vsel %vm8159_vm15, %v4976_v46, %v4983_v24  ;;  %v5180_v12 = vsel %vm8165_vm0, %v4985_v5, %v5870_v47  ;;  %v4987_v8 = vshrl.u32 %v5915_v58, 16  ;;  %v4467_v30 = vpop.f32.mrb[57].mxu0  ;;  %v4607_v54 = vmul.f32 %v6064_v37, %v5770_v53  ;;  %v5877_v5 = vld [vmem:[%s6791_s6 + $0xb4] sm:$0xf] }
 0x283   : > { %5869 = vst [vmem:[%s6791_s6 + $0xa0] sm:$0xf] %v4984_v1  ;;  %5871 = vst [vmem:[%s6791_s6 + $0xa4] sm:$0x1] %v5180_v12  ;;  %v6066_v59 = vadd.f32 %v6065_v22, %v4465_v39  ;;  %v6068_v9 = vadd.f32 %v6067_v27, %v4467_v30  ;;  %v4469_v60 = vpop.f32.mrb[58].mxu0  ;;  %v4990_v10 = vshll.u32 %v5915_v58, 16 }
 0x284   : > { %v4989_v34 = vrot.slane %v4987_v8, 7  ;;  %v6070_v0 = vadd.f32 %v6069_v20, %v4469_v60  ;;  %v4471_v62 = vpop.f32.mrb[59].mxu0  ;;  %v5916_v28 = vpack.c.bf16 %v4607_v54, %v4607_v54 }
 0x285   : > { %vm4512_vm13 = vcmp.ge.f32.partialorder %v6066_v59, 0.0  ;;  %v6072_v61 = vadd.f32 %v6071_v42, %v4471_v62  ;;  %v4089_v14 = vpop.f32.mrb[60].mxu1  ;;  %v5880_v42 = vld [vmem:[%s6791_s6 + $0xbc] sm:$0x1]  ;;  %v5882_v62 = vld [vmem:[%s6791_s6 + $0xc0] sm:$0xf] }
 0x286   : > { %v4992_v63 = vor.u32 %v4990_v10, %v4989_v34  ;;  %v5771_v13 = vsel %vm4512_vm13, 1.0, %v6715_v50  ;;  %vm4513_vm1 = vcmp.ge.f32.partialorder %v6070_v0, 0.0  ;;  %v4091_v36 = vpop.f32.mrb[61].mxu1  ;;  %v4995_v2 = vshrl.u32 %v5916_v28, 16 }
 0x287   : > { %v4608_v17 = vmul.f32 %v6068_v9, %v5771_v13  ;;  %v5772_v16 = vsel %vm4513_vm1, 1.0, %v6715_v50  ;;  %v4093_v21 = vpop.f32.mrb[62].mxu1  ;;  %v6073_v4 = vadd.f32 %v4089_v14, %v8133_v56  ;;  %v6075_v25 = vadd.f32 %v4091_v36, %v8135_v31  ;;  %v5885_v13 = vld [vmem:[%s6791_s6 + $0xc8] sm:$0x1] }
 0x288   : > { %v5183_v55 = vsel %vm8151_vm14, %v4992_v63, %v5872_v18  ;;  %v4609_v19 = vmul.f32 %v6072_v61, %v5772_v16  ;;  %v4095_v43 = vpop.f32.mrb[63].mxu1  ;;  %v4993_v7 = vrot.slane %v4989_v34, 4  ;;  %v4997_v26 = vrot.slane %v4995_v2, 7 }
 0x289   : > { %5873 = vst [vmem:[%s6791_s6 + $0xa8] sm:$0xf] %v5183_v55  ;;  %v4998_v33 = vshll.u32 %v5916_v28, 16  ;;  %v5917_v49 = vpack.c.bf16 %v4608_v17, %v4608_v17  ;;  %v4475_v52 = vpop.f32.mrb[60].mxu0  ;;  %v6077_v48 = vadd.f32 %v4093_v21, %v8133_v56  ;;  %v6079_v32 = vadd.f32 %v4095_v43, %v8135_v31 }
 0x28a   : > { %v5918_v6 = vpack.c.bf16 %v4609_v19, %v4609_v19  ;;  %v6074_v3 = vadd.f32 %v6073_v4, %v4475_v52  ;;  %v4477_v29 = vpop.f32.mrb[61].mxu0  ;;  %v5002_v40 = vrot.slane %v4997_v26, 4 }
 0x28b   : > { %v5000_v11 = vor.u32 %v4998_v33, %v4997_v26  ;;  %v5004_v37 = vshrl.u32 %v5917_v49, 16  ;;  %v5007_v57 = vshll.u32 %v5917_v49, 16  ;;  %v4479_v41 = vpop.f32.mrb[62].mxu0  ;;  %v6076_v22 = vadd.f32 %v6075_v25, %v4477_v29 }
 0x28c   : > { %v5012_v46 = vshrl.u32 %v5918_v6, 16  ;;  %v5015_v47 = vshll.u32 %v5918_v6, 16  ;;  %vm4514_vm2 = vcmp.ge.f32.partialorder %v6074_v3, 0.0  ;;  %v4481_v27 = vpop.f32.mrb[63].mxu0  ;;  %v5187_v56 = vsel %vm8165_vm0, %v5002_v40, %v5875_v44 }
 0x28d   : > { %v5001_v45 = vsel %vm8159_vm15, %v4993_v7, %v5000_v11  ;;  %v5006_v31 = vrot.slane %v5004_v37, 7  ;;  %v5773_v24 = vsel %vm4514_vm2, 1.0, %v6715_v50  ;;  %5876 = vst [vmem:[%s6791_s6 + $0xb0] sm:$0x1] %v5187_v56  ;;  %v6078_v23 = vadd.f32 %v6077_v48, %v4479_v41 }
 0x28e   : > { %5874 = vst [vmem:[%s6791_s6 + $0xac] sm:$0xf] %v5001_v45  ;;  %v5014_v58 = vrot.slane %v5012_v46, 7  ;;  %v4610_v51 = vmul.f32 %v6076_v22, %v5773_v24  ;;  %v6080_v53 = vadd.f32 %v6079_v32, %v4481_v27 }
 0x28f   : > { %v5009_v39 = vor.u32 %v5007_v57, %v5006_v31  ;;  %v5010_v20 = vrot.slane %v5006_v31, 4  ;;  %vm4515_vm3 = vcmp.ge.f32.partialorder %v6078_v23, 0.0 }
 0x290   : > { %v5017_v1 = vor.u32 %v5015_v47, %v5014_v58  ;;  %v5019_v12 = vrot.slane %v5014_v58, 4  ;;  %v5919_v8 = vpack.c.bf16 %v4610_v51, %v4610_v51  ;;  %v5774_v54 = vsel %vm4515_vm3, 1.0, %v6715_v50 }
 0x291   : > { %v5190_v30 = vsel %vm8151_vm14, %v5009_v39, %v5877_v5  ;;  %v4611_v34 = vmul.f32 %v6080_v53, %v5774_v54 }
 0x292   : > { %5878 = vst [vmem:[%s6791_s6 + $0xb4] sm:$0xf] %v5190_v30  ;;  %v5018_v59 = vsel %vm8159_vm15, %v5010_v20, %v5017_v1  ;;  %v5194_v9 = vsel %vm8165_vm0, %v5019_v12, %v5880_v42  ;;  %v5021_v60 = vshrl.u32 %v5919_v8, 16  ;;  %v5024_v0 = vshll.u32 %v5919_v8, 16 }
 0x293   : > { %5879 = vst [vmem:[%s6791_s6 + $0xb8] sm:$0xf] %v5018_v59  ;;  %5881 = vst [vmem:[%s6791_s6 + $0xbc] sm:$0x1] %v5194_v9  ;;  %v5920_v18 = vpack.c.bf16 %v4611_v34, %v4611_v34 }
 0x294   : > { %v5023_v10 = vrot.slane %v5021_v60, 7 }
 0x295   : > { %v5029_v50 = vshrl.u32 %v5920_v18, 16  ;;  %v5032_v63 = vshll.u32 %v5920_v18, 16 }
 0x296   : > { %v5026_v28 = vor.u32 %v5024_v0, %v5023_v10  ;;  %v5027_v36 = vrot.slane %v5023_v10, 4 }
 0x297   : > { %v5031_v14 = vrot.slane %v5029_v50, 7 }
 0x298   : > { %v5197_v61 = vsel %vm8151_vm14, %v5026_v28, %v5882_v62 }
 0x299   : > { %5883 = vst [vmem:[%s6791_s6 + $0xc0] sm:$0xf] %v5197_v61  ;;  %v5034_v2 = vor.u32 %v5032_v63, %v5031_v14  ;;  %v5036_v17 = vrot.slane %v5031_v14, 4 }
 0x29b   : > { %v5035_v16 = vsel %vm8159_vm15, %v5027_v36, %v5034_v2  ;;  %v5201_v21 = vsel %vm8165_vm0, %v5036_v17, %v5885_v13 }
 0x29c   : > { %5884 = vst [vmem:[%s6791_s6 + $0xc4] sm:$0xf] %v5035_v16  ;;  %5886 = vst [vmem:[%s6791_s6 + $0xc8] sm:$0x1] %v5201_v21 }
 0x29d PF: > { %s14_s12 = sadd.s32 1, %s6709_s12  }
 0x29e   : > { %p11_p3 = scmp.ge.s32.totalorder %s14_s12, 4  }
 0x2a0   :  { %13 = sbr.rel (!%p11_p3) target bundleno = 1 (0x1), region = 70 }
 0x2a7   :  { %5224 = vsyncpa [#allocation3], 1 }
 0x2a8   :  { %5226 = vsyncpa [#allocation3 + $0x1], 1 }

</bundles_post_ra>
